<compile_context>
chip_gen: v7x
topology: tpu7x:2x2x1
jax: 0.10.0
libtpu: 0.0.40
codegen_flags: <defaults>
</compile_context>

<pallas_src>
import functools
import math

import jax
import jax.numpy as jnp
import numpy as np
from jax.experimental import pallas as pl
from jax.experimental.pallas import tpu as pltpu


# ---------------------------------------------------------------------------
# Helpers
# ---------------------------------------------------------------------------

def get_sinusoid_encoding_table(n_position, d_model):
    """Sinusoid position-encoding table (straight port of the PyTorch helper)."""
    def cal_angle(position, hid_i):
        return position / np.power(10000, 2 * (hid_i // 2) / d_model)
    table = np.array([[cal_angle(p, j) for j in range(d_model)]
                      for p in range(n_position)])
    table[:, 0::2] = np.sin(table[:, 0::2])
    table[:, 1::2] = np.cos(table[:, 1::2])
    return table.astype(np.float32)


def _layernorm(z, g, b, eps=1e-6):
    """LayerNorm over the last dim; kept entirely in f32."""
    mu = jnp.mean(z, axis=-1, keepdims=True)
    c = z - mu
    var = jnp.mean(c * c, axis=-1, keepdims=True)
    return c * jax.lax.rsqrt(var + eps) * g + b


def _round_up(n, m):
    return pl.cdiv(n, m) * m


def _pad_rows(a, n_rows):
    if a.shape[0] == n_rows:
        return a
    return jnp.pad(a, ((0, n_rows - a.shape[0]), (0, 0)))


def _choose_tm(n, tm):
    """Row tile: multiple of 8 sublanes, no bigger than needed, and small enough
    that the 'parallel' row axis has >=2 grid steps (lets v7x use both TCs)."""
    tm = max(8, min(tm, _round_up(n, 8)))
    if _round_up(n, tm) // tm < 2 and n > 8:
        tm = _round_up(pl.cdiv(n, 2), 8)
    return tm


def _resident_spec(arr):
    """BlockSpec for grid-invariant operands (weights / biases / LN rows)."""
    nd = arr.ndim
    return pl.BlockSpec(arr.shape, lambda i, _nd=nd: (0,) * _nd)


def _cparams():
    # Per-call VMEM footprint here is ~1-2 MiB; the default scoped-VMEM limit is
    # ample on v5e/v6e/v7x, so no explicit vmem_limit_bytes (per perf review).
    return pltpu.CompilerParams(dimension_semantics=("parallel",))


# ---------------------------------------------------------------------------
# Kernel 1: fused Q/K/V projection (only needed for layer 0)
# ---------------------------------------------------------------------------

def _qkv_kernel(x_ref, w_ref, b_ref, qkv_ref, *, matmul_dtype):
    x = x_ref[...].astype(matmul_dtype)            # bf16 MXU inputs
    y = jnp.dot(x, w_ref[...], preferred_element_type=jnp.float32) + b_ref[...]
    qkv_ref[...] = y.astype(qkv_ref.dtype)         # bf16 inter-kernel slab


def _qkv_rows(x_pad, wqkv, bqkv, *, tm, matmul_dtype):
    n_pad, d_in = x_pad.shape
    d_out = wqkv.shape[1]
    return pl.pallas_call(
        functools.partial(_qkv_kernel, matmul_dtype=matmul_dtype),
        out_shape=jax.ShapeDtypeStruct((n_pad, d_out), matmul_dtype),
        grid=(n_pad // tm,),
        in_specs=[pl.BlockSpec((tm, d_in), lambda i: (i, 0)),
                  _resident_spec(wqkv), _resident_spec(bqkv)],
        out_specs=pl.BlockSpec((tm, d_out), lambda i: (i, 0)),
        compiler_params=_cparams(),
    )(x_pad, wqkv, bqkv)


# ---------------------------------------------------------------------------
# Kernel 2: scaled dot-product attention, ALL heads of one batch per grid step
# ---------------------------------------------------------------------------

def _attention_kernel(q_ref, k_ref, v_ref, bias_ref, ctx_ref, attn_ref, *,
                      scale, matmul_dtype):
    q = q_ref[...]                                  # (H, S, d_k) bf16
    k = k_ref[...]
    s = jnp.einsum("hqd,hkd->hqk", q, k, preferred_element_type=jnp.float32)
    s = s * scale + bias_ref[...]                   # (1, S) additive pad-key bias
    m = jnp.max(s, axis=-1, keepdims=True)          # softmax kept in f32
    e = jnp.exp(s - m)
    p = e * pl.reciprocal(jnp.sum(e, axis=-1, keepdims=True), approx=True)
    attn_ref[...] = p.astype(attn_ref.dtype)
    ctx = jnp.einsum("hqk,hkd->hqd", p.astype(matmul_dtype), v_ref[...],
                     preferred_element_type=jnp.float32)
    ctx_ref[...] = ctx.astype(ctx_ref.dtype)        # bf16 inter-kernel slab


def _attention(q, k, v, attn_bias, *, scale, matmul_dtype):
    B, H, S, d_k = q.shape
    d_v = v.shape[-1]
    kern = functools.partial(_attention_kernel, scale=scale,
                             matmul_dtype=matmul_dtype)
    ctx, attn = pl.pallas_call(
        kern,
        out_shape=(jax.ShapeDtypeStruct((B, H, S, d_v), matmul_dtype),
                   jax.ShapeDtypeStruct((B, H, S, S), jnp.float32)),
        grid=(B,),
        in_specs=[
            pl.BlockSpec((None, H, S, d_k), lambda b: (b, 0, 0, 0)),
            pl.BlockSpec((None, H, S, d_k), lambda b: (b, 0, 0, 0)),
            pl.BlockSpec((None, H, S, d_v), lambda b: (b, 0, 0, 0)),
            pl.BlockSpec((None, 1, S), lambda b: (b, 0, 0)),
        ],
        out_specs=(
            pl.BlockSpec((None, H, S, d_v), lambda b: (b, 0, 0, 0)),
            pl.BlockSpec((None, H, S, S), lambda b: (b, 0, 0, 0)),
        ),
        compiler_params=_cparams(),
    )(q, k, v, attn_bias)
    return ctx, attn


# ---------------------------------------------------------------------------
# Kernel 3: fused layer tail = out-proj + LN_mha + LN_enc + FFN + LN_ffn + LN_enc
#           (+ the NEXT layer's fused Q/K/V projection, when there is one)
# ---------------------------------------------------------------------------

def _tail_kernel(ctx_ref, x_ref, wo_ref, bo_ref, g_mha_ref, b_mha_ref,
                 w1_ref, c1_ref, w2_ref, c2_ref, g_ffn_ref, b_ffn_ref,
                 g_el_ref, b_el_ref, *rest, matmul_dtype, fuse_qkv):
    if fuse_qkv:
        wqkv_ref, bqkv_ref, x_out_ref, qkv_ref = rest
    else:
        (x_out_ref,) = rest

    x = x_ref[...]                                   # f32 residual

    # MultiHeadAttention tail: output projection + dropout + residual + LayerNorm.
    # TODO(synk): dropout is an eval-mode identity; training-mode PRNG dropout not modeled.
    y = jnp.dot(ctx_ref[...], wo_ref[...],
                preferred_element_type=jnp.float32) + bo_ref[...]
    z = _layernorm(y + x, g_mha_ref[...], b_mha_ref[...])

    # EncoderLayer: layer_norm(attention_block_out + enc_inputs)
    x1 = _layernorm(z + x, g_el_ref[...], b_el_ref[...])

    # PoswiseFeedForwardNet: two 1x1 convs == per-token matmuls (bf16 MXU, f32 acc).
    h = jnp.dot(x1.astype(matmul_dtype), w1_ref[...],
                preferred_element_type=jnp.float32) + c1_ref[...]
    h = jnp.maximum(h, 0.0).astype(matmul_dtype)     # ReLU, narrowed for 2nd MXU pass
    y2 = jnp.dot(h, w2_ref[...], preferred_element_type=jnp.float32) + c2_ref[...]
    z2 = _layernorm(y2 + x1, g_ffn_ref[...], b_ffn_ref[...])

    # EncoderLayer: layer_norm(ffn_out + attention_block_out)
    x_out = _layernorm(z2 + x1, g_el_ref[...], b_el_ref[...])
    x_out_ref[...] = x_out

    if fuse_qkv:
        # Next layer's fused Q/K/V projection of the just-computed activations.
        qkv = jnp.dot(x_out.astype(matmul_dtype), wqkv_ref[...],
                      preferred_element_type=jnp.float32) + bqkv_ref[...]
        qkv_ref[...] = qkv.astype(qkv_ref.dtype)


def _layer_tail(ctx2d, x2d, lp, next_wqkv, next_bqkv, *, tm, matmul_dtype):
    n_pad, d_model = x2d.shape
    d_ctx = ctx2d.shape[1]
    fuse_qkv = next_wqkv is not None

    weights = [lp["wo"], lp["bo"], lp["ln_mha_g"], lp["ln_mha_b"],
               lp["w1"], lp["b1"], lp["w2"], lp["b2"],
               lp["ln_ffn_g"], lp["ln_ffn_b"], lp["ln_el_g"], lp["ln_el_b"]]
    if fuse_qkv:
        weights += [next_wqkv, next_bqkv]

    in_specs = [pl.BlockSpec((tm, d_ctx), lambda i: (i, 0)),
                pl.BlockSpec((tm, d_model), lambda i: (i, 0))]
    in_specs += [_resident_spec(w) for w in weights]

    out_shape = [jax.ShapeDtypeStruct((n_pad, d_model), jnp.float32)]
    out_specs = [pl.BlockSpec((tm, d_model), lambda i: (i, 0))]
    if fuse_qkv:
        d_qkv = next_wqkv.shape[1]
        out_shape.append(jax.ShapeDtypeStruct((n_pad, d_qkv), matmul_dtype))
        out_specs.append(pl.BlockSpec((tm, d_qkv), lambda i: (i, 0)))

    res = pl.pallas_call(
        functools.partial(_tail_kernel, matmul_dtype=matmul_dtype,
                          fuse_qkv=fuse_qkv),
        out_shape=tuple(out_shape),
        grid=(n_pad // tm,),
        in_specs=in_specs,
        out_specs=tuple(out_specs),
        compiler_params=_cparams(),
    )(ctx2d, x2d, *weights)
    if fuse_qkv:
        return res[0], res[1]
    return res[0], None


# ---------------------------------------------------------------------------
# One-time parameter packing (hoisted out of the forward)
# ---------------------------------------------------------------------------

def pack_params(params, matmul_dtype=jnp.bfloat16):
    row = lambda a: a.reshape(1, -1).astype(jnp.float32)
    layers = []
    for lp in params["layers"]:
        layers.append(dict(
            wqkv=jnp.concatenate([lp["wq"], lp["wk"], lp["wv"]], axis=1).astype(matmul_dtype),
            bqkv=jnp.concatenate([lp["bq"], lp["bk"], lp["bv"]]).reshape(1, -1).astype(jnp.float32),
            wo=lp["wo"].astype(matmul_dtype), bo=row(lp["bo"]),
            w1=lp["w1"].astype(matmul_dtype), b1=row(lp["b1"]),
            w2=lp["w2"].astype(matmul_dtype), b2=row(lp["b2"]),
            ln_mha_g=row(lp["ln_mha_g"]), ln_mha_b=row(lp["ln_mha_b"]),
            ln_ffn_g=row(lp["ln_ffn_g"]), ln_ffn_b=row(lp["ln_ffn_b"]),
            ln_el_g=row(lp["ln_el_g"]), ln_el_b=row(lp["ln_el_b"]),
        ))
    return dict(src_emb=params["src_emb"], pos_table=params["pos_table"],
                layers=layers)


# ---------------------------------------------------------------------------
# Encoder forward (Pallas) and pure-JAX reference
# ---------------------------------------------------------------------------

def encoder_forward(tokens, packed, cfg, *, tm=128, matmul_dtype=jnp.bfloat16):
    """Encoder.forward: returns (enc_outputs, [attn per layer])."""
    B, S = tokens.shape
    D = cfg["d_model"]
    H, d_k, d_v = cfg["n_heads"], cfg["d_k"], cfg["d_v"]
    n = B * S
    layers = packed["layers"]
    n_layers = len(layers)

    # Token + sinusoid position embeddings.
    # TODO(synk): embedding gathers are done with jnp.take in the wrapper (dynamic row
    # gather has no clean BlockSpec form at this scale).
    pos = jnp.arange(1, S + 1, dtype=jnp.int32)[None, :]
    pos = jnp.where(tokens == cfg["padding_idx"], 0, pos)
    x = (jnp.take(packed["src_emb"], tokens, axis=0)
         + jnp.take(packed["pos_table"], pos, axis=0)).astype(jnp.float32)

    # Pad-key attention mask as a compact (B, 1, S) additive f32 bias.
    attn_bias = jnp.where(tokens == cfg["padding_idx"],
                          jnp.float32(-1e9), jnp.float32(0.0))[:, None, :]

    tm = _choose_tm(n, tm)
    n_pad = _round_up(n, tm)
    x2d = _pad_rows(x.reshape(n, D), n_pad)    # padded ONCE, kept padded across layers

    hq, hv = H * d_k, H * d_v
    scale = 1.0 / math.sqrt(d_k)

    # Layer 0 Q/K/V projection (later layers get theirs fused into the previous tail).
    qkv = _qkv_rows(x2d, layers[0]["wqkv"], layers[0]["bqkv"],
                    tm=tm, matmul_dtype=matmul_dtype)

    attns = []
    for l, lp in enumerate(layers):
        qkv_n = qkv if n_pad == n else qkv[:n]                       # bf16 slab
        q = qkv_n[:, :hq].reshape(B, S, H, d_k).transpose(0, 2, 1, 3)
        k = qkv_n[:, hq:2 * hq].reshape(B, S, H, d_k).transpose(0, 2, 1, 3)
        v = qkv_n[:, 2 * hq:].reshape(B, S, H, d_v).transpose(0, 2, 1, 3)

        ctx, attn = _attention(q, k, v, attn_bias, scale=scale,
                               matmul_dtype=matmul_dtype)
        attns.append(attn)

        ctx2d = _pad_rows(ctx.transpose(0, 2, 1, 3).reshape(n, hv), n_pad)   # bf16

        nxt = layers[l + 1] if l + 1 < n_layers else None
        x2d, qkv = _layer_tail(
            ctx2d, x2d, lp,
            nxt["wqkv"] if nxt is not None else None,
            nxt["bqkv"] if nxt is not None else None,
            tm=tm, matmul_dtype=matmul_dtype)

    return x2d[:n].reshape(B, S, D), attns


def encoder_reference(tokens, params, cfg, *, matmul_dtype=None):
    """Pure-JAX port of the PyTorch Encoder.  matmul_dtype=None -> exact f32 module
    semantics; matmul_dtype=jnp.bfloat16 -> mirrors the kernels' matmul casts."""
    B, S = tokens.shape
    H, d_k, d_v = cfg["n_heads"], cfg["d_k"], cfg["d_v"]
    hi = jax.lax.Precision.HIGHEST
    cast = (lambda a: a) if matmul_dtype is None else (lambda a: a.astype(matmul_dtype))

    def mm(a, w):
        return jnp.matmul(cast(a), cast(w), precision=hi,
                          preferred_element_type=jnp.float32)

    def ln(z, g, b):
        mu = jnp.mean(z, -1, keepdims=True)
        var = jnp.mean((z - mu) ** 2, -1, keepdims=True)
        return (z - mu) * jax.lax.rsqrt(var + 1e-6) * g + b

    pos = jnp.arange(1, S + 1, dtype=jnp.int32)[None, :]
    pos = jnp.where(tokens == cfg["padding_idx"], 0, pos)
    x = (jnp.take(params["src_emb"], tokens, axis=0)
         + jnp.take(params["pos_table"], pos, axis=0)).astype(jnp.float32)
    mask = jnp.broadcast_to((tokens == cfg["padding_idx"])[:, None, :], (B, S, S))

    attns = []
    for lp in params["layers"]:
        q = (mm(x, lp["wq"]) + lp["bq"]).reshape(B, S, H, d_k).transpose(0, 2, 1, 3)
        k = (mm(x, lp["wk"]) + lp["bk"]).reshape(B, S, H, d_k).transpose(0, 2, 1, 3)
        v = (mm(x, lp["wv"]) + lp["bv"]).reshape(B, S, H, d_v).transpose(0, 2, 1, 3)
        scores = jnp.matmul(cast(q), jnp.swapaxes(cast(k), -1, -2), precision=hi,
                            preferred_element_type=jnp.float32) / math.sqrt(d_k)
        scores = jnp.where(mask[:, None, :, :], -1e9, scores)
        attn = jax.nn.softmax(scores, axis=-1)
        ctx = jnp.matmul(cast(attn), cast(v), precision=hi,
                         preferred_element_type=jnp.float32)
        ctx = ctx.transpose(0, 2, 1, 3).reshape(B, S, H * d_v)
        mha = ln(mm(ctx, lp["wo"]) + lp["bo"] + x, lp["ln_mha_g"], lp["ln_mha_b"])
        x1 = ln(mha + x, lp["ln_el_g"], lp["ln_el_b"])
        h = jnp.maximum(mm(x1, lp["w1"]) + lp["b1"], 0.0)
        y = mm(h, lp["w2"]) + lp["b2"]
        ffn = ln(y + x1, lp["ln_ffn_g"], lp["ln_ffn_b"])
        x = ln(ffn + x1, lp["ln_el_g"], lp["ln_el_b"])
        attns.append(attn)
    return x, attns


def init_params(key, cfg):
    D, F = cfg["d_model"], cfg["d_ff"]
    H, d_k, d_v = cfg["n_heads"], cfg["d_k"], cfg["d_v"]
    keys = jax.random.split(key, cfg["n_layers"] + 1)

    def dense(k, fan_in, fan_out):
        return jax.random.normal(k, (fan_in, fan_out), jnp.float32) * (fan_in ** -0.5)

    params = {
        "src_emb": jax.random.normal(keys[0], (cfg["src_vocab_size"], D), jnp.float32),
        "pos_table": jnp.asarray(
            get_sinusoid_encoding_table(cfg["max_src_seq_length"] + 1, D)),
        "layers": [],
    }
    for l in range(cfg["n_layers"]):
        ks = jax.random.split(keys[l + 1], 18)
        params["layers"].append(dict(
            # NOTE: weights stored (in, out), i.e. transposed nn.Linear / squeezed k=1 Conv1d.
            wq=dense(ks[0], D, H * d_k), bq=0.02 * jax.random.normal(ks[1], (H * d_k,), jnp.float32),
            wk=dense(ks[2], D, H * d_k), bk=0.02 * jax.random.normal(ks[3], (H * d_k,), jnp.float32),
            wv=dense(ks[4], D, H * d_v), bv=0.02 * jax.random.normal(ks[5], (H * d_v,), jnp.float32),
            wo=dense(ks[6], H * d_v, D), bo=0.02 * jax.random.normal(ks[7], (D,), jnp.float32),
            w1=dense(ks[8], D, F), b1=0.02 * jax.random.normal(ks[9], (F,), jnp.float32),
            w2=dense(ks[10], F, D), b2=0.02 * jax.random.normal(ks[11], (D,), jnp.float32),
            ln_mha_g=1.0 + 0.1 * jax.random.normal(ks[12], (D,), jnp.float32),
            ln_mha_b=0.05 * jax.random.normal(ks[13], (D,), jnp.float32),
            ln_ffn_g=1.0 + 0.1 * jax.random.normal(ks[14], (D,), jnp.float32),
            ln_ffn_b=0.05 * jax.random.normal(ks[15], (D,), jnp.float32),
            ln_el_g=1.0 + 0.1 * jax.random.normal(ks[16], (D,), jnp.float32),
            ln_el_b=0.05 * jax.random.normal(ks[17], (D,), jnp.float32),
        ))
    return params


# ---------------------------------------------------------------------------
# Demo / self-check
# ---------------------------------------------------------------------------

if __name__ == "__main__":
    cfg = dict(
        src_vocab_size=48,
        max_src_seq_length=16,
        padding_idx=0,
        d_model=128,    # lane-dense (multiple of 128) -> unmasked vector stores
        d_ff=256,
        d_k=32,
        d_v=32,
        n_heads=4,      # n_heads * d_k = 128 -> lane-dense QKV / context slabs
        n_layers=2,
        dropout=0.1,    # eval-mode identity
    )
    B, S = 2, 16

    key = jax.random.PRNGKey(0)
    k_tok, k_par = jax.random.split(key)
    tokens = jax.random.randint(k_tok, (B, S), 1, cfg["src_vocab_size"], dtype=jnp.int32)
    tokens = tokens.at[0, -2:].set(cfg["padding_idx"])   # padding to exercise the mask
    tokens = tokens.at[1, -5:].set(cfg["padding_idx"])

    params = init_params(k_par, cfg)
    packed = pack_params(params, matmul_dtype=jnp.bfloat16)   # one-time packing

    fwd = jax.jit(lambda tok, prm: encoder_forward(tok, prm, cfg, tm=128,
                                                   matmul_dtype=jnp.bfloat16))
    out, attns = fwd(tokens, packed)
    out = jax.block_until_ready(out)

    assert out.shape == (B, S, cfg["d_model"])
    assert len(attns) == cfg["n_layers"]
    assert attns[0].shape == (B, cfg["n_heads"], S, S)

    # (1) structural check vs a pure-JAX reference mirroring the kernels' bf16 casts
    ref_m, attns_m = encoder_reference(tokens, params, cfg, matmul_dtype=jnp.bfloat16)
    max_err = float(jnp.max(jnp.abs(out - ref_m)))
    assert jnp.allclose(out, ref_m, atol=1e-2, rtol=1e-2), \
        f"mismatch vs matched reference (max abs err {max_err})"
    assert jnp.allclose(jnp.stack(attns), jnp.stack(attns_m), atol=5e-3, rtol=5e-3), \
        "attention mismatch vs matched reference"

    # (2) fidelity check vs an exact f32 port of the PyTorch module (bounds bf16 drift)
    ref_f32, _ = encoder_reference(tokens, params, cfg, matmul_dtype=None)
    drift = float(jnp.max(jnp.abs(out - ref_f32)))
    assert drift < 0.15, f"bf16 drift vs f32 module reference too large: {drift}"

    print("KERNEL_OK")
</pallas_src>

<mosaic_0001>
module attributes {stable_mosaic.version = 11 : i64} {
  func.func @_qkv_kernel(%arg0: i32, %arg1: memref<16x128xf32, #tpu.memory_space<vmem>>, %arg2: memref<128x384xbf16, #tpu.memory_space<vmem>>, %arg3: memref<1x384xf32, #tpu.memory_space<vmem>>, %arg4: memref<16x384xbf16, #tpu.memory_space<vmem>>) attributes {dimension_semantics = [#tpu.dimension_semantics<parallel>], iteration_bounds = array<i64: 2>, scalar_prefetch = 0 : i64, scratch_operands = 0 : i64, tpu.core_type = #tpu.core_type<tc>, window_params = [{transform_indices = @transform_0, window_bounds = array<i64: 16, 128>}, {pipeline_mode = #tpu.pipeline_mode<synchronous>, transform_indices = @transform_1, window_bounds = array<i64: 128, 384>}, {pipeline_mode = #tpu.pipeline_mode<synchronous>, transform_indices = @transform_2, window_bounds = array<i64: 1, 384>}, {transform_indices = @transform_3, window_bounds = array<i64: 16, 384>}]} {
    %c0 = arith.constant 0 : index
    %c0_0 = arith.constant 0 : index
    %0 = vector.load %arg1[%c0, %c0_0] : memref<16x128xf32, #tpu.memory_space<vmem>>, vector<16x128xf32>
    %1 = arith.truncf %0 : vector<16x128xf32> to vector<16x128xbf16>
    %c0_1 = arith.constant 0 : index
    %c0_2 = arith.constant 0 : index
    %2 = vector.load %arg2[%c0_1, %c0_2] : memref<128x384xbf16, #tpu.memory_space<vmem>>, vector<128x384xbf16>
    %cst = arith.constant dense<0.000000e+00> : vector<16x384xf32>
    %3 = tpu.matmul %1, %2, %cst {dimension_numbers = #tpu.dot_dimension_numbers<[1], [0], [0], [1], [0, 0, 1, 1], [], []>} : vector<16x128xbf16>, vector<128x384xbf16>, vector<16x384xf32> -> vector<16x384xf32>
    %c0_3 = arith.constant 0 : index
    %c0_4 = arith.constant 0 : index
    %4 = vector.load %arg3[%c0_3, %c0_4] : memref<1x384xf32, #tpu.memory_space<vmem>>, vector<1x384xf32>
    %5 = vector.broadcast %4 : vector<1x384xf32> to vector<16x384xf32>
    %6 = arith.addf %3, %5 : vector<16x384xf32>
    %7 = arith.truncf %6 : vector<16x384xf32> to vector<16x384xbf16>
    %c0_5 = arith.constant 0 : index
    %c0_6 = arith.constant 0 : index
    %8 = vector.load %arg4[%c0_5, %c0_6] : memref<16x384xbf16, #tpu.memory_space<vmem>>, vector<16x384xbf16>
    tpu.vector_store %arg4[%c0_5, %c0_6], %7 {strides = array<i32>} : memref<16x384xbf16, #tpu.memory_space<vmem>>, vector<16x384xbf16>,
    return
  }
  func.func @transform_0(%arg0: i32) -> (i32, i32) {
    %c0_i32 = arith.constant 0 : i32
    %c0_i32_0 = arith.constant 0 : i32
    return %arg0, %c0_i32 : i32, i32
  }
  func.func @transform_1(%arg0: i32) -> (i32, i32) {
    %c0_i32 = arith.constant 0 : i32
    %c0_i32_0 = arith.constant 0 : i32
    %c0_i32_1 = arith.constant 0 : i32
    return %c0_i32, %c0_i32_0 : i32, i32
  }
  func.func @transform_2(%arg0: i32) -> (i32, i32) {
    %c0_i32 = arith.constant 0 : i32
    %c0_i32_0 = arith.constant 0 : i32
    %c0_i32_1 = arith.constant 0 : i32
    return %c0_i32, %c0_i32_0 : i32, i32
  }
  func.func @transform_3(%arg0: i32) -> (i32, i32) {
    %c0_i32 = arith.constant 0 : i32
    %c0_i32_0 = arith.constant 0 : i32
    return %arg0, %c0_i32 : i32, i32
  }
}

module attributes {stable_mosaic.version = 11 : i64} {
  func.func @_attention_kernel(%arg0: i32, %arg1: memref<1x4x16x32xbf16, #tpu.memory_space<vmem>>, %arg2: memref<1x4x16x32xbf16, #tpu.memory_space<vmem>>, %arg3: memref<1x4x16x32xbf16, #tpu.memory_space<vmem>>, %arg4: memref<1x1x16xf32, #tpu.memory_space<vmem>>, %arg5: memref<1x4x16x32xbf16, #tpu.memory_space<vmem>>, %arg6: memref<1x4x16x16xf32, #tpu.memory_space<vmem>>) attributes {dimension_semantics = [#tpu.dimension_semantics<parallel>], iteration_bounds = array<i64: 2>, scalar_prefetch = 0 : i64, scratch_operands = 0 : i64, tpu.core_type = #tpu.core_type<tc>, window_params = [{transform_indices = @transform_0, window_bounds = array<i64: 1, 4, 16, 32>}, {transform_indices = @transform_1, window_bounds = array<i64: 1, 4, 16, 32>}, {transform_indices = @transform_2, window_bounds = array<i64: 1, 4, 16, 32>}, {transform_indices = @transform_3, window_bounds = array<i64: 1, 1, 16>}, {transform_indices = @transform_4, window_bounds = array<i64: 1, 4, 16, 32>}, {transform_indices = @transform_5, window_bounds = array<i64: 1, 4, 16, 16>}]} {
    %c0 = arith.constant 0 : index
    %c0_0 = arith.constant 0 : index
    %c0_1 = arith.constant 0 : index
    %c0_2 = arith.constant 0 : index
    %0 = vector.load %arg1[%c0, %c0_0, %c0_1, %c0_2] : memref<1x4x16x32xbf16, #tpu.memory_space<vmem>>, vector<1x4x16x32xbf16>
    %1 = vector.shape_cast %0 : vector<1x4x16x32xbf16> to vector<4x16x32xbf16>
    %c0_3 = arith.constant 0 : index
    %c0_4 = arith.constant 0 : index
    %c0_5 = arith.constant 0 : index
    %c0_6 = arith.constant 0 : index
    %2 = vector.load %arg2[%c0_3, %c0_4, %c0_5, %c0_6] : memref<1x4x16x32xbf16, #tpu.memory_space<vmem>>, vector<1x4x16x32xbf16>
    %3 = vector.shape_cast %2 : vector<1x4x16x32xbf16> to vector<4x16x32xbf16>
    "tpu.trace_start"() <{level = 10 : i32, message = "hqd,hkd->hqk"}> : () -> ()
    %cst = arith.constant dense<0.000000e+00> : vector<4x16x16xf32>
    %4 = tpu.matmul %1, %3, %cst {dimension_numbers = #tpu.dot_dimension_numbers<[2], [2], [1], [1], [0, 0, 0, 1, 1, 1], [0], [0]>} : vector<4x16x32xbf16>, vector<4x16x32xbf16>, vector<4x16x16xf32> -> vector<4x16x16xf32>
    "tpu.trace_stop"() : () -> ()
    %cst_7 = arith.constant 0.176776692 : f32
    %5 = vector.broadcast %cst_7 : f32 to vector<4x16x16xf32>
    %6 = arith.mulf %4, %5 : vector<4x16x16xf32>
    %c0_8 = arith.constant 0 : index
    %c0_9 = arith.constant 0 : index
    %c0_10 = arith.constant 0 : index
    %7 = vector.load %arg4[%c0_8, %c0_9, %c0_10] : memref<1x1x16xf32, #tpu.memory_space<vmem>>, vector<1x1x16xf32>
    %8 = vector.shape_cast %7 : vector<1x1x16xf32> to vector<1x16xf32>
    %9 = vector.shape_cast %8 : vector<1x16xf32> to vector<1x1x16xf32>
    %10 = vector.broadcast %9 : vector<1x1x16xf32> to vector<4x16x16xf32>
    %11 = arith.addf %6, %10 : vector<4x16x16xf32>
    %cst_11 = arith.constant dense<0xFF800000> : vector<4x16xf32>
    %12 = vector.multi_reduction <maximumf>, %11, %cst_11 [2] : vector<4x16x16xf32> to vector<4x16xf32>
    %13 = vector.shape_cast %12 : vector<4x16xf32> to vector<4x16x1xf32>
    %14 = vector.broadcast %13 : vector<4x16x1xf32> to vector<4x16x16xf32>
    %15 = arith.subf %11, %14 : vector<4x16x16xf32>
    %16 = math.exp %15 : vector<4x16x16xf32>
    %cst_12 = arith.constant dense<0.000000e+00> : vector<4x16xf32>
    %17 = vector.multi_reduction <add>, %16, %cst_12 [2] : vector<4x16x16xf32> to vector<4x16xf32>
    %18 = vector.shape_cast %17 : vector<4x16xf32> to vector<4x16x1xf32>
    %19 = tpu.reciprocal %18 {approx = true} : vector<4x16x1xf32> -> vector<4x16x1xf32>
    %20 = vector.broadcast %19 : vector<4x16x1xf32> to vector<4x16x16xf32>
    %21 = arith.mulf %16, %20 : vector<4x16x16xf32>
    %c0_13 = arith.constant 0 : index
    %c0_14 = arith.constant 0 : index
    %c0_15 = arith.constant 0 : index
    %c0_16 = arith.constant 0 : index
    %22 = vector.load %arg6[%c0_13, %c0_14, %c0_15, %c0_16] : memref<1x4x16x16xf32, #tpu.memory_space<vmem>>, vector<1x4x16x16xf32>
    %23 = vector.shape_cast %22 : vector<1x4x16x16xf32> to vector<4x16x16xf32>
    %24 = vector.shape_cast %21 : vector<4x16x16xf32> to vector<1x4x16x16xf32>
    tpu.vector_store %arg6[%c0_13, %c0_14, %c0_15, %c0_16], %24 {strides = array<i32>} : memref<1x4x16x16xf32, #tpu.memory_space<vmem>>, vector<1x4x16x16xf32>,
    %25 = arith.truncf %21 : vector<4x16x16xf32> to vector<4x16x16xbf16>
    %c0_17 = arith.constant 0 : index
    %c0_18 = arith.constant 0 : index
    %c0_19 = arith.constant 0 : index
    %c0_20 = arith.constant 0 : index
    %26 = vector.load %arg3[%c0_17, %c0_18, %c0_19, %c0_20] : memref<1x4x16x32xbf16, #tpu.memory_space<vmem>>, vector<1x4x16x32xbf16>
    %27 = vector.shape_cast %26 : vector<1x4x16x32xbf16> to vector<4x16x32xbf16>
    "tpu.trace_start"() <{level = 10 : i32, message = "hqk,hkd->hqd"}> : () -> ()
    %cst_21 = arith.constant dense<0.000000e+00> : vector<4x16x32xf32>
    %28 = tpu.matmul %25, %27, %cst_21 {dimension_numbers = #tpu.dot_dimension_numbers<[2], [1], [1], [2], [0, 0, 0, 1, 1, 2], [0], [0]>} : vector<4x16x16xbf16>, vector<4x16x32xbf16>, vector<4x16x32xf32> -> vector<4x16x32xf32>
    "tpu.trace_stop"() : () -> ()
    %29 = arith.truncf %28 : vector<4x16x32xf32> to vector<4x16x32xbf16>
    %c0_22 = arith.constant 0 : index
    %c0_23 = arith.constant 0 : index
    %c0_24 = arith.constant 0 : index
    %c0_25 = arith.constant 0 : index
    %30 = vector.load %arg5[%c0_22, %c0_23, %c0_24, %c0_25] : memref<1x4x16x32xbf16, #tpu.memory_space<vmem>>, vector<1x4x16x32xbf16>
    %31 = vector.shape_cast %30 : vector<1x4x16x32xbf16> to vector<4x16x32xbf16>
    %32 = vector.shape_cast %29 : vector<4x16x32xbf16> to vector<1x4x16x32xbf16>
    tpu.vector_store %arg5[%c0_22, %c0_23, %c0_24, %c0_25], %32 {strides = array<i32>} : memref<1x4x16x32xbf16, #tpu.memory_space<vmem>>, vector<1x4x16x32xbf16>,
    return
  }
  func.func @transform_0(%arg0: i32) -> (i32, i32, i32, i32) {
    %c0_i32 = arith.constant 0 : i32
    %c0_i32_0 = arith.constant 0 : i32
    %c0_i32_1 = arith.constant 0 : i32
    %c0_i32_2 = arith.constant 0 : i32
    return %arg0, %c0_i32, %c0_i32_0, %c0_i32_1 : i32, i32, i32, i32
  }
  func.func @transform_1(%arg0: i32) -> (i32, i32, i32, i32) {
    %c0_i32 = arith.constant 0 : i32
    %c0_i32_0 = arith.constant 0 : i32
    %c0_i32_1 = arith.constant 0 : i32
    %c0_i32_2 = arith.constant 0 : i32
    return %arg0, %c0_i32, %c0_i32_0, %c0_i32_1 : i32, i32, i32, i32
  }
  func.func @transform_2(%arg0: i32) -> (i32, i32, i32, i32) {
    %c0_i32 = arith.constant 0 : i32
    %c0_i32_0 = arith.constant 0 : i32
    %c0_i32_1 = arith.constant 0 : i32
    %c0_i32_2 = arith.constant 0 : i32
    return %arg0, %c0_i32, %c0_i32_0, %c0_i32_1 : i32, i32, i32, i32
  }
  func.func @transform_3(%arg0: i32) -> (i32, i32, i32) {
    %c0_i32 = arith.constant 0 : i32
    %c0_i32_0 = arith.constant 0 : i32
    %c0_i32_1 = arith.constant 0 : i32
    return %arg0, %c0_i32, %c0_i32_0 : i32, i32, i32
  }
  func.func @transform_4(%arg0: i32) -> (i32, i32, i32, i32) {
    %c0_i32 = arith.constant 0 : i32
    %c0_i32_0 = arith.constant 0 : i32
    %c0_i32_1 = arith.constant 0 : i32
    %c0_i32_2 = arith.constant 0 : i32
    return %arg0, %c0_i32, %c0_i32_0, %c0_i32_1 : i32, i32, i32, i32
  }
  func.func @transform_5(%arg0: i32) -> (i32, i32, i32, i32) {
    %c0_i32 = arith.constant 0 : i32
    %c0_i32_0 = arith.constant 0 : i32
    %c0_i32_1 = arith.constant 0 : i32
    %c0_i32_2 = arith.constant 0 : i32
    return %arg0, %c0_i32, %c0_i32_0, %c0_i32_1 : i32, i32, i32, i32
  }
}

module attributes {stable_mosaic.version = 11 : i64} {
  func.func @_tail_kernel(%arg0: i32, %arg1: memref<16x128xbf16, #tpu.memory_space<vmem>>, %arg2: memref<16x128xf32, #tpu.memory_space<vmem>>, %arg3: memref<128x128xbf16, #tpu.memory_space<vmem>>, %arg4: memref<1x128xf32, #tpu.memory_space<vmem>>, %arg5: memref<1x128xf32, #tpu.memory_space<vmem>>, %arg6: memref<1x128xf32, #tpu.memory_space<vmem>>, %arg7: memref<128x256xbf16, #tpu.memory_space<vmem>>, %arg8: memref<1x256xf32, #tpu.memory_space<vmem>>, %arg9: memref<256x128xbf16, #tpu.memory_space<vmem>>, %arg10: memref<1x128xf32, #tpu.memory_space<vmem>>, %arg11: memref<1x128xf32, #tpu.memory_space<vmem>>, %arg12: memref<1x128xf32, #tpu.memory_space<vmem>>, %arg13: memref<1x128xf32, #tpu.memory_space<vmem>>, %arg14: memref<1x128xf32, #tpu.memory_space<vmem>>, %arg15: memref<128x384xbf16, #tpu.memory_space<vmem>>, %arg16: memref<1x384xf32, #tpu.memory_space<vmem>>, %arg17: memref<16x128xf32, #tpu.memory_space<vmem>>, %arg18: memref<16x384xbf16, #tpu.memory_space<vmem>>) attributes {dimension_semantics = [#tpu.dimension_semantics<parallel>], iteration_bounds = array<i64: 2>, scalar_prefetch = 0 : i64, scratch_operands = 0 : i64, tpu.core_type = #tpu.core_type<tc>, window_params = [{transform_indices = @transform_0, window_bounds = array<i64: 16, 128>}, {transform_indices = @transform_1, window_bounds = array<i64: 16, 128>}, {pipeline_mode = #tpu.pipeline_mode<synchronous>, transform_indices = @transform_2, window_bounds = array<i64: 128, 128>}, {pipeline_mode = #tpu.pipeline_mode<synchronous>, transform_indices = @transform_3, window_bounds = array<i64: 1, 128>}, {pipeline_mode = #tpu.pipeline_mode<synchronous>, transform_indices = @transform_4, window_bounds = array<i64: 1, 128>}, {pipeline_mode = #tpu.pipeline_mode<synchronous>, transform_indices = @transform_5, window_bounds = array<i64: 1, 128>}, {pipeline_mode = #tpu.pipeline_mode<synchronous>, transform_indices = @transform_6, window_bounds = array<i64: 128, 256>}, {pipeline_mode = #tpu.pipeline_mode<synchronous>, transform_indices = @transform_7, window_bounds = array<i64: 1, 256>}, {pipeline_mode = #tpu.pipeline_mode<synchronous>, transform_indices = @transform_8, window_bounds = array<i64: 256, 128>}, {pipeline_mode = #tpu.pipeline_mode<synchronous>, transform_indices = @transform_9, window_bounds = array<i64: 1, 128>}, {pipeline_mode = #tpu.pipeline_mode<synchronous>, transform_indices = @transform_10, window_bounds = array<i64: 1, 128>}, {pipeline_mode = #tpu.pipeline_mode<synchronous>, transform_indices = @transform_11, window_bounds = array<i64: 1, 128>}, {pipeline_mode = #tpu.pipeline_mode<synchronous>, transform_indices = @transform_12, window_bounds = array<i64: 1, 128>}, {pipeline_mode = #tpu.pipeline_mode<synchronous>, transform_indices = @transform_13, window_bounds = array<i64: 1, 128>}, {pipeline_mode = #tpu.pipeline_mode<synchronous>, transform_indices = @transform_14, window_bounds = array<i64: 128, 384>}, {pipeline_mode = #tpu.pipeline_mode<synchronous>, transform_indices = @transform_15, window_bounds = array<i64: 1, 384>}, {transform_indices = @transform_16, window_bounds = array<i64: 16, 128>}, {transform_indices = @transform_17, window_bounds = array<i64: 16, 384>}]} {
    %c0 = arith.constant 0 : index
    %c0_0 = arith.constant 0 : index
    %0 = vector.load %arg2[%c0, %c0_0] : memref<16x128xf32, #tpu.memory_space<vmem>>, vector<16x128xf32>
    %c0_1 = arith.constant 0 : index
    %c0_2 = arith.constant 0 : index
    %1 = vector.load %arg1[%c0_1, %c0_2] : memref<16x128xbf16, #tpu.memory_space<vmem>>, vector<16x128xbf16>
    %c0_3 = arith.constant 0 : index
    %c0_4 = arith.constant 0 : index
    %2 = vector.load %arg3[%c0_3, %c0_4] : memref<128x128xbf16, #tpu.memory_space<vmem>>, vector<128x128xbf16>
    %cst = arith.constant dense<0.000000e+00> : vector<16x128xf32>
    %3 = tpu.matmul %1, %2, %cst {dimension_numbers = #tpu.dot_dimension_numbers<[1], [0], [0], [1], [0, 0, 1, 1], [], []>} : vector<16x128xbf16>, vector<128x128xbf16>, vector<16x128xf32> -> vector<16x128xf32>
    %c0_5 = arith.constant 0 : index
    %c0_6 = arith.constant 0 : index
    %4 = vector.load %arg4[%c0_5, %c0_6] : memref<1x128xf32, #tpu.memory_space<vmem>>, vector<1x128xf32>
    %5 = vector.broadcast %4 : vector<1x128xf32> to vector<16x128xf32>
    %6 = arith.addf %3, %5 : vector<16x128xf32>
    %7 = arith.addf %6, %0 : vector<16x128xf32>
    %c0_7 = arith.constant 0 : index
    %c0_8 = arith.constant 0 : index
    %8 = vector.load %arg5[%c0_7, %c0_8] : memref<1x128xf32, #tpu.memory_space<vmem>>, vector<1x128xf32>
    %c0_9 = arith.constant 0 : index
    %c0_10 = arith.constant 0 : index
    %9 = vector.load %arg6[%c0_9, %c0_10] : memref<1x128xf32, #tpu.memory_space<vmem>>, vector<1x128xf32>
    %cst_11 = arith.constant dense<0.000000e+00> : vector<16xf32>
    %10 = vector.multi_reduction <add>, %7, %cst_11 [1] : vector<16x128xf32> to vector<16xf32>
    %11 = vector.shape_cast %10 : vector<16xf32> to vector<16x1xf32>
    %cst_12 = arith.constant 1.280000e+02 : f32
    %12 = vector.broadcast %cst_12 : f32 to vector<16x1xf32>
    %13 = arith.divf %11, %12 : vector<16x1xf32>
    %14 = vector.broadcast %13 : vector<16x1xf32> to vector<16x128xf32>
    %15 = arith.subf %7, %14 : vector<16x128xf32>
    %16 = arith.mulf %15, %15 : vector<16x128xf32>
    %cst_13 = arith.constant dense<0.000000e+00> : vector<16xf32>
    %17 = vector.multi_reduction <add>, %16, %cst_13 [1] : vector<16x128xf32> to vector<16xf32>
    %18 = vector.shape_cast %17 : vector<16xf32> to vector<16x1xf32>
    %cst_14 = arith.constant 1.280000e+02 : f32
    %19 = vector.broadcast %cst_14 : f32 to vector<16x1xf32>
    %20 = arith.divf %18, %19 : vector<16x1xf32>
    %cst_15 = arith.constant 9.99999997E-7 : f32
    %21 = vector.broadcast %cst_15 : f32 to vector<16x1xf32>
    %22 = arith.addf %20, %21 : vector<16x1xf32>
    %23 = math.rsqrt %22 : vector<16x1xf32>
    %24 = vector.broadcast %23 : vector<16x1xf32> to vector<16x128xf32>
    %25 = arith.mulf %15, %24 : vector<16x128xf32>
    %26 = vector.broadcast %8 : vector<1x128xf32> to vector<16x128xf32>
    %27 = arith.mulf %25, %26 : vector<16x128xf32>
    %28 = vector.broadcast %9 : vector<1x128xf32> to vector<16x128xf32>
    %29 = arith.addf %27, %28 : vector<16x128xf32>
    %30 = arith.addf %29, %0 : vector<16x128xf32>
    %c0_16 = arith.constant 0 : index
    %c0_17 = arith.constant 0 : index
    %31 = vector.load %arg13[%c0_16, %c0_17] : memref<1x128xf32, #tpu.memory_space<vmem>>, vector<1x128xf32>
    %c0_18 = arith.constant 0 : index
    %c0_19 = arith.constant 0 : index
    %32 = vector.load %arg14[%c0_18, %c0_19] : memref<1x128xf32, #tpu.memory_space<vmem>>, vector<1x128xf32>
    %cst_20 = arith.constant dense<0.000000e+00> : vector<16xf32>
    %33 = vector.multi_reduction <add>, %30, %cst_20 [1] : vector<16x128xf32> to vector<16xf32>
    %34 = vector.shape_cast %33 : vector<16xf32> to vector<16x1xf32>
    %cst_21 = arith.constant 1.280000e+02 : f32
    %35 = vector.broadcast %cst_21 : f32 to vector<16x1xf32>
    %36 = arith.divf %34, %35 : vector<16x1xf32>
    %37 = vector.broadcast %36 : vector<16x1xf32> to vector<16x128xf32>
    %38 = arith.subf %30, %37 : vector<16x128xf32>
    %39 = arith.mulf %38, %38 : vector<16x128xf32>
    %cst_22 = arith.constant dense<0.000000e+00> : vector<16xf32>
    %40 = vector.multi_reduction <add>, %39, %cst_22 [1] : vector<16x128xf32> to vector<16xf32>
    %41 = vector.shape_cast %40 : vector<16xf32> to vector<16x1xf32>
    %cst_23 = arith.constant 1.280000e+02 : f32
    %42 = vector.broadcast %cst_23 : f32 to vector<16x1xf32>
    %43 = arith.divf %41, %42 : vector<16x1xf32>
    %cst_24 = arith.constant 9.99999997E-7 : f32
    %44 = vector.broadcast %cst_24 : f32 to vector<16x1xf32>
    %45 = arith.addf %43, %44 : vector<16x1xf32>
    %46 = math.rsqrt %45 : vector<16x1xf32>
    %47 = vector.broadcast %46 : vector<16x1xf32> to vector<16x128xf32>
    %48 = arith.mulf %38, %47 : vector<16x128xf32>
    %49 = vector.broadcast %31 : vector<1x128xf32> to vector<16x128xf32>
    %50 = arith.mulf %48, %49 : vector<16x128xf32>
    %51 = vector.broadcast %32 : vector<1x128xf32> to vector<16x128xf32>
    %52 = arith.addf %50, %51 : vector<16x128xf32>
    %53 = arith.truncf %52 : vector<16x128xf32> to vector<16x128xbf16>
    %c0_25 = arith.constant 0 : index
    %c0_26 = arith.constant 0 : index
    %54 = vector.load %arg7[%c0_25, %c0_26] : memref<128x256xbf16, #tpu.memory_space<vmem>>, vector<128x256xbf16>
    %cst_27 = arith.constant dense<0.000000e+00> : vector<16x256xf32>
    %55 = tpu.matmul %53, %54, %cst_27 {dimension_numbers = #tpu.dot_dimension_numbers<[1], [0], [0], [1], [0, 0, 1, 1], [], []>} : vector<16x128xbf16>, vector<128x256xbf16>, vector<16x256xf32> -> vector<16x256xf32>
    %c0_28 = arith.constant 0 : index
    %c0_29 = arith.constant 0 : index
    %56 = vector.load %arg8[%c0_28, %c0_29] : memref<1x256xf32, #tpu.memory_space<vmem>>, vector<1x256xf32>
    %57 = vector.broadcast %56 : vector<1x256xf32> to vector<16x256xf32>
    %58 = arith.addf %55, %57 : vector<16x256xf32>
    %cst_30 = arith.constant 0.000000e+00 : f32
    %59 = vector.broadcast %cst_30 : f32 to vector<16x256xf32>
    %60 = arith.maximumf %58, %59 : vector<16x256xf32>
    %61 = arith.truncf %60 : vector<16x256xf32> to vector<16x256xbf16>
    %c0_31 = arith.constant 0 : index
    %c0_32 = arith.constant 0 : index
    %62 = vector.load %arg9[%c0_31, %c0_32] : memref<256x128xbf16, #tpu.memory_space<vmem>>, vector<256x128xbf16>
    %cst_33 = arith.constant dense<0.000000e+00> : vector<16x128xf32>
    %63 = tpu.matmul %61, %62, %cst_33 {dimension_numbers = #tpu.dot_dimension_numbers<[1], [0], [0], [1], [0, 0, 1, 1], [], []>} : vector<16x256xbf16>, vector<256x128xbf16>, vector<16x128xf32> -> vector<16x128xf32>
    %c0_34 = arith.constant 0 : index
    %c0_35 = arith.constant 0 : index
    %64 = vector.load %arg10[%c0_34, %c0_35] : memref<1x128xf32, #tpu.memory_space<vmem>>, vector<1x128xf32>
    %65 = vector.broadcast %64 : vector<1x128xf32> to vector<16x128xf32>
    %66 = arith.addf %63, %65 : vector<16x128xf32>
    %67 = arith.addf %66, %52 : vector<16x128xf32>
    %c0_36 = arith.constant 0 : index
    %c0_37 = arith.constant 0 : index
    %68 = vector.load %arg11[%c0_36, %c0_37] : memref<1x128xf32, #tpu.memory_space<vmem>>, vector<1x128xf32>
    %c0_38 = arith.constant 0 : index
    %c0_39 = arith.constant 0 : index
    %69 = vector.load %arg12[%c0_38, %c0_39] : memref<1x128xf32, #tpu.memory_space<vmem>>, vector<1x128xf32>
    %cst_40 = arith.constant dense<0.000000e+00> : vector<16xf32>
    %70 = vector.multi_reduction <add>, %67, %cst_40 [1] : vector<16x128xf32> to vector<16xf32>
    %71 = vector.shape_cast %70 : vector<16xf32> to vector<16x1xf32>
    %cst_41 = arith.constant 1.280000e+02 : f32
    %72 = vector.broadcast %cst_41 : f32 to vector<16x1xf32>
    %73 = arith.divf %71, %72 : vector<16x1xf32>
    %74 = vector.broadcast %73 : vector<16x1xf32> to vector<16x128xf32>
    %75 = arith.subf %67, %74 : vector<16x128xf32>
    %76 = arith.mulf %75, %75 : vector<16x128xf32>
    %cst_42 = arith.constant dense<0.000000e+00> : vector<16xf32>
    %77 = vector.multi_reduction <add>, %76, %cst_42 [1] : vector<16x128xf32> to vector<16xf32>
    %78 = vector.shape_cast %77 : vector<16xf32> to vector<16x1xf32>
    %cst_43 = arith.constant 1.280000e+02 : f32
    %79 = vector.broadcast %cst_43 : f32 to vector<16x1xf32>
    %80 = arith.divf %78, %79 : vector<16x1xf32>
    %cst_44 = arith.constant 9.99999997E-7 : f32
    %81 = vector.broadcast %cst_44 : f32 to vector<16x1xf32>
    %82 = arith.addf %80, %81 : vector<16x1xf32>
    %83 = math.rsqrt %82 : vector<16x1xf32>
    %84 = vector.broadcast %83 : vector<16x1xf32> to vector<16x128xf32>
    %85 = arith.mulf %75, %84 : vector<16x128xf32>
    %86 = vector.broadcast %68 : vector<1x128xf32> to vector<16x128xf32>
    %87 = arith.mulf %85, %86 : vector<16x128xf32>
    %88 = vector.broadcast %69 : vector<1x128xf32> to vector<16x128xf32>
    %89 = arith.addf %87, %88 : vector<16x128xf32>
    %90 = arith.addf %89, %52 : vector<16x128xf32>
    %c0_45 = arith.constant 0 : index
    %c0_46 = arith.constant 0 : index
    %91 = vector.load %arg13[%c0_45, %c0_46] : memref<1x128xf32, #tpu.memory_space<vmem>>, vector<1x128xf32>
    %c0_47 = arith.constant 0 : index
    %c0_48 = arith.constant 0 : index
    %92 = vector.load %arg14[%c0_47, %c0_48] : memref<1x128xf32, #tpu.memory_space<vmem>>, vector<1x128xf32>
    %cst_49 = arith.constant dense<0.000000e+00> : vector<16xf32>
    %93 = vector.multi_reduction <add>, %90, %cst_49 [1] : vector<16x128xf32> to vector<16xf32>
    %94 = vector.shape_cast %93 : vector<16xf32> to vector<16x1xf32>
    %cst_50 = arith.constant 1.280000e+02 : f32
    %95 = vector.broadcast %cst_50 : f32 to vector<16x1xf32>
    %96 = arith.divf %94, %95 : vector<16x1xf32>
    %97 = vector.broadcast %96 : vector<16x1xf32> to vector<16x128xf32>
    %98 = arith.subf %90, %97 : vector<16x128xf32>
    %99 = arith.mulf %98, %98 : vector<16x128xf32>
    %cst_51 = arith.constant dense<0.000000e+00> : vector<16xf32>
    %100 = vector.multi_reduction <add>, %99, %cst_51 [1] : vector<16x128xf32> to vector<16xf32>
    %101 = vector.shape_cast %100 : vector<16xf32> to vector<16x1xf32>
    %cst_52 = arith.constant 1.280000e+02 : f32
    %102 = vector.broadcast %cst_52 : f32 to vector<16x1xf32>
    %103 = arith.divf %101, %102 : vector<16x1xf32>
    %cst_53 = arith.constant 9.99999997E-7 : f32
    %104 = vector.broadcast %cst_53 : f32 to vector<16x1xf32>
    %105 = arith.addf %103, %104 : vector<16x1xf32>
    %106 = math.rsqrt %105 : vector<16x1xf32>
    %107 = vector.broadcast %106 : vector<16x1xf32> to vector<16x128xf32>
    %108 = arith.mulf %98, %107 : vector<16x128xf32>
    %109 = vector.broadcast %91 : vector<1x128xf32> to vector<16x128xf32>
    %110 = arith.mulf %108, %109 : vector<16x128xf32>
    %111 = vector.broadcast %92 : vector<1x128xf32> to vector<16x128xf32>
    %112 = arith.addf %110, %111 : vector<16x128xf32>
    %c0_54 = arith.constant 0 : index
    %c0_55 = arith.constant 0 : index
    %113 = vector.load %arg17[%c0_54, %c0_55] : memref<16x128xf32, #tpu.memory_space<vmem>>, vector<16x128xf32>
    tpu.vector_store %arg17[%c0_54, %c0_55], %112 {strides = array<i32>} : memref<16x128xf32, #tpu.memory_space<vmem>>, vector<16x128xf32>,
    %114 = arith.truncf %112 : vector<16x128xf32> to vector<16x128xbf16>
    %c0_56 = arith.constant 0 : index
    %c0_57 = arith.constant 0 : index
    %115 = vector.load %arg15[%c0_56, %c0_57] : memref<128x384xbf16, #tpu.memory_space<vmem>>, vector<128x384xbf16>
    %cst_58 = arith.constant dense<0.000000e+00> : vector<16x384xf32>
    %116 = tpu.matmul %114, %115, %cst_58 {dimension_numbers = #tpu.dot_dimension_numbers<[1], [0], [0], [1], [0, 0, 1, 1], [], []>} : vector<16x128xbf16>, vector<128x384xbf16>, vector<16x384xf32> -> vector<16x384xf32>
    %c0_59 = arith.constant 0 : index
    %c0_60 = arith.constant 0 : index
    %117 = vector.load %arg16[%c0_59, %c0_60] : memref<1x384xf32, #tpu.memory_space<vmem>>, vector<1x384xf32>
    %118 = vector.broadcast %117 : vector<1x384xf32> to vector<16x384xf32>
    %119 = arith.addf %116, %118 : vector<16x384xf32>
    %120 = arith.truncf %119 : vector<16x384xf32> to vector<16x384xbf16>
    %c0_61 = arith.constant 0 : index
    %c0_62 = arith.constant 0 : index
    %121 = vector.load %arg18[%c0_61, %c0_62] : memref<16x384xbf16, #tpu.memory_space<vmem>>, vector<16x384xbf16>
    tpu.vector_store %arg18[%c0_61, %c0_62], %120 {strides = array<i32>} : memref<16x384xbf16, #tpu.memory_space<vmem>>, vector<16x384xbf16>,
    return
  }
  func.func @transform_0(%arg0: i32) -> (i32, i32) {
    %c0_i32 = arith.constant 0 : i32
    %c0_i32_0 = arith.constant 0 : i32
    return %arg0, %c0_i32 : i32, i32
  }
  func.func @transform_1(%arg0: i32) -> (i32, i32) {
    %c0_i32 = arith.constant 0 : i32
    %c0_i32_0 = arith.constant 0 : i32
    return %arg0, %c0_i32 : i32, i32
  }
  func.func @transform_2(%arg0: i32) -> (i32, i32) {
    %c0_i32 = arith.constant 0 : i32
    %c0_i32_0 = arith.constant 0 : i32
    %c0_i32_1 = arith.constant 0 : i32
    return %c0_i32, %c0_i32_0 : i32, i32
  }
  func.func @transform_3(%arg0: i32) -> (i32, i32) {
    %c0_i32 = arith.constant 0 : i32
    %c0_i32_0 = arith.constant 0 : i32
    %c0_i32_1 = arith.constant 0 : i32
    return %c0_i32, %c0_i32_0 : i32, i32
  }
  func.func @transform_4(%arg0: i32) -> (i32, i32) {
    %c0_i32 = arith.constant 0 : i32
    %c0_i32_0 = arith.constant 0 : i32
    %c0_i32_1 = arith.constant 0 : i32
    return %c0_i32, %c0_i32_0 : i32, i32
  }
  func.func @transform_5(%arg0: i32) -> (i32, i32) {
    %c0_i32 = arith.constant 0 : i32
    %c0_i32_0 = arith.constant 0 : i32
    %c0_i32_1 = arith.constant 0 : i32
    return %c0_i32, %c0_i32_0 : i32, i32
  }
  func.func @transform_6(%arg0: i32) -> (i32, i32) {
    %c0_i32 = arith.constant 0 : i32
    %c0_i32_0 = arith.constant 0 : i32
    %c0_i32_1 = arith.constant 0 : i32
    return %c0_i32, %c0_i32_0 : i32, i32
  }
  func.func @transform_7(%arg0: i32) -> (i32, i32) {
    %c0_i32 = arith.constant 0 : i32
    %c0_i32_0 = arith.constant 0 : i32
    %c0_i32_1 = arith.constant 0 : i32
    return %c0_i32, %c0_i32_0 : i32, i32
  }
  func.func @transform_8(%arg0: i32) -> (i32, i32) {
    %c0_i32 = arith.constant 0 : i32
    %c0_i32_0 = arith.constant 0 : i32
    %c0_i32_1 = arith.constant 0 : i32
    return %c0_i32, %c0_i32_0 : i32, i32
  }
  func.func @transform_9(%arg0: i32) -> (i32, i32) {
    %c0_i32 = arith.constant 0 : i32
    %c0_i32_0 = arith.constant 0 : i32
    %c0_i32_1 = arith.constant 0 : i32
    return %c0_i32, %c0_i32_0 : i32, i32
  }
  func.func @transform_10(%arg0: i32) -> (i32, i32) {
    %c0_i32 = arith.constant 0 : i32
    %c0_i32_0 = arith.constant 0 : i32
    %c0_i32_1 = arith.constant 0 : i32
    return %c0_i32, %c0_i32_0 : i32, i32
  }
  func.func @transform_11(%arg0: i32) -> (i32, i32) {
    %c0_i32 = arith.constant 0 : i32
    %c0_i32_0 = arith.constant 0 : i32
    %c0_i32_1 = arith.constant 0 : i32
    return %c0_i32, %c0_i32_0 : i32, i32
  }
  func.func @transform_12(%arg0: i32) -> (i32, i32) {
    %c0_i32 = arith.constant 0 : i32
    %c0_i32_0 = arith.constant 0 : i32
    %c0_i32_1 = arith.constant 0 : i32
    return %c0_i32, %c0_i32_0 : i32, i32
  }
  func.func @transform_13(%arg0: i32) -> (i32, i32) {
    %c0_i32 = arith.constant 0 : i32
    %c0_i32_0 = arith.constant 0 : i32
    %c0_i32_1 = arith.constant 0 : i32
    return %c0_i32, %c0_i32_0 : i32, i32
  }
  func.func @transform_14(%arg0: i32) -> (i32, i32) {
    %c0_i32 = arith.constant 0 : i32
    %c0_i32_0 = arith.constant 0 : i32
    %c0_i32_1 = arith.constant 0 : i32
    return %c0_i32, %c0_i32_0 : i32, i32
  }
  func.func @transform_15(%arg0: i32) -> (i32, i32) {
    %c0_i32 = arith.constant 0 : i32
    %c0_i32_0 = arith.constant 0 : i32
    %c0_i32_1 = arith.constant 0 : i32
    return %c0_i32, %c0_i32_0 : i32, i32
  }
  func.func @transform_16(%arg0: i32) -> (i32, i32) {
    %c0_i32 = arith.constant 0 : i32
    %c0_i32_0 = arith.constant 0 : i32
    return %arg0, %c0_i32 : i32, i32
  }
  func.func @transform_17(%arg0: i32) -> (i32, i32) {
    %c0_i32 = arith.constant 0 : i32
    %c0_i32_0 = arith.constant 0 : i32
    return %arg0, %c0_i32 : i32, i32
  }
}

module attributes {stable_mosaic.version = 11 : i64} {
  func.func @_tail_kernel(%arg0: i32, %arg1: memref<16x128xbf16, #tpu.memory_space<vmem>>, %arg2: memref<16x128xf32, #tpu.memory_space<vmem>>, %arg3: memref<128x128xbf16, #tpu.memory_space<vmem>>, %arg4: memref<1x128xf32, #tpu.memory_space<vmem>>, %arg5: memref<1x128xf32, #tpu.memory_space<vmem>>, %arg6: memref<1x128xf32, #tpu.memory_space<vmem>>, %arg7: memref<128x256xbf16, #tpu.memory_space<vmem>>, %arg8: memref<1x256xf32, #tpu.memory_space<vmem>>, %arg9: memref<256x128xbf16, #tpu.memory_space<vmem>>, %arg10: memref<1x128xf32, #tpu.memory_space<vmem>>, %arg11: memref<1x128xf32, #tpu.memory_space<vmem>>, %arg12: memref<1x128xf32, #tpu.memory_space<vmem>>, %arg13: memref<1x128xf32, #tpu.memory_space<vmem>>, %arg14: memref<1x128xf32, #tpu.memory_space<vmem>>, %arg15: memref<16x128xf32, #tpu.memory_space<vmem>>) attributes {dimension_semantics = [#tpu.dimension_semantics<parallel>], iteration_bounds = array<i64: 2>, scalar_prefetch = 0 : i64, scratch_operands = 0 : i64, tpu.core_type = #tpu.core_type<tc>, window_params = [{transform_indices = @transform_0, window_bounds = array<i64: 16, 128>}, {transform_indices = @transform_1, window_bounds = array<i64: 16, 128>}, {pipeline_mode = #tpu.pipeline_mode<synchronous>, transform_indices = @transform_2, window_bounds = array<i64: 128, 128>}, {pipeline_mode = #tpu.pipeline_mode<synchronous>, transform_indices = @transform_3, window_bounds = array<i64: 1, 128>}, {pipeline_mode = #tpu.pipeline_mode<synchronous>, transform_indices = @transform_4, window_bounds = array<i64: 1, 128>}, {pipeline_mode = #tpu.pipeline_mode<synchronous>, transform_indices = @transform_5, window_bounds = array<i64: 1, 128>}, {pipeline_mode = #tpu.pipeline_mode<synchronous>, transform_indices = @transform_6, window_bounds = array<i64: 128, 256>}, {pipeline_mode = #tpu.pipeline_mode<synchronous>, transform_indices = @transform_7, window_bounds = array<i64: 1, 256>}, {pipeline_mode = #tpu.pipeline_mode<synchronous>, transform_indices = @transform_8, window_bounds = array<i64: 256, 128>}, {pipeline_mode = #tpu.pipeline_mode<synchronous>, transform_indices = @transform_9, window_bounds = array<i64: 1, 128>}, {pipeline_mode = #tpu.pipeline_mode<synchronous>, transform_indices = @transform_10, window_bounds = array<i64: 1, 128>}, {pipeline_mode = #tpu.pipeline_mode<synchronous>, transform_indices = @transform_11, window_bounds = array<i64: 1, 128>}, {pipeline_mode = #tpu.pipeline_mode<synchronous>, transform_indices = @transform_12, window_bounds = array<i64: 1, 128>}, {pipeline_mode = #tpu.pipeline_mode<synchronous>, transform_indices = @transform_13, window_bounds = array<i64: 1, 128>}, {transform_indices = @transform_14, window_bounds = array<i64: 16, 128>}]} {
    %c0 = arith.constant 0 : index
    %c0_0 = arith.constant 0 : index
    %0 = vector.load %arg2[%c0, %c0_0] : memref<16x128xf32, #tpu.memory_space<vmem>>, vector<16x128xf32>
    %c0_1 = arith.constant 0 : index
    %c0_2 = arith.constant 0 : index
    %1 = vector.load %arg1[%c0_1, %c0_2] : memref<16x128xbf16, #tpu.memory_space<vmem>>, vector<16x128xbf16>
    %c0_3 = arith.constant 0 : index
    %c0_4 = arith.constant 0 : index
    %2 = vector.load %arg3[%c0_3, %c0_4] : memref<128x128xbf16, #tpu.memory_space<vmem>>, vector<128x128xbf16>
    %cst = arith.constant dense<0.000000e+00> : vector<16x128xf32>
    %3 = tpu.matmul %1, %2, %cst {dimension_numbers = #tpu.dot_dimension_numbers<[1], [0], [0], [1], [0, 0, 1, 1], [], []>} : vector<16x128xbf16>, vector<128x128xbf16>, vector<16x128xf32> -> vector<16x128xf32>
    %c0_5 = arith.constant 0 : index
    %c0_6 = arith.constant 0 : index
    %4 = vector.load %arg4[%c0_5, %c0_6] : memref<1x128xf32, #tpu.memory_space<vmem>>, vector<1x128xf32>
    %5 = vector.broadcast %4 : vector<1x128xf32> to vector<16x128xf32>
    %6 = arith.addf %3, %5 : vector<16x128xf32>
    %7 = arith.addf %6, %0 : vector<16x128xf32>
    %c0_7 = arith.constant 0 : index
    %c0_8 = arith.constant 0 : index
    %8 = vector.load %arg5[%c0_7, %c0_8] : memref<1x128xf32, #tpu.memory_space<vmem>>, vector<1x128xf32>
    %c0_9 = arith.constant 0 : index
    %c0_10 = arith.constant 0 : index
    %9 = vector.load %arg6[%c0_9, %c0_10] : memref<1x128xf32, #tpu.memory_space<vmem>>, vector<1x128xf32>
    %cst_11 = arith.constant dense<0.000000e+00> : vector<16xf32>
    %10 = vector.multi_reduction <add>, %7, %cst_11 [1] : vector<16x128xf32> to vector<16xf32>
    %11 = vector.shape_cast %10 : vector<16xf32> to vector<16x1xf32>
    %cst_12 = arith.constant 1.280000e+02 : f32
    %12 = vector.broadcast %cst_12 : f32 to vector<16x1xf32>
    %13 = arith.divf %11, %12 : vector<16x1xf32>
    %14 = vector.broadcast %13 : vector<16x1xf32> to vector<16x128xf32>
    %15 = arith.subf %7, %14 : vector<16x128xf32>
    %16 = arith.mulf %15, %15 : vector<16x128xf32>
    %cst_13 = arith.constant dense<0.000000e+00> : vector<16xf32>
    %17 = vector.multi_reduction <add>, %16, %cst_13 [1] : vector<16x128xf32> to vector<16xf32>
    %18 = vector.shape_cast %17 : vector<16xf32> to vector<16x1xf32>
    %cst_14 = arith.constant 1.280000e+02 : f32
    %19 = vector.broadcast %cst_14 : f32 to vector<16x1xf32>
    %20 = arith.divf %18, %19 : vector<16x1xf32>
    %cst_15 = arith.constant 9.99999997E-7 : f32
    %21 = vector.broadcast %cst_15 : f32 to vector<16x1xf32>
    %22 = arith.addf %20, %21 : vector<16x1xf32>
    %23 = math.rsqrt %22 : vector<16x1xf32>
    %24 = vector.broadcast %23 : vector<16x1xf32> to vector<16x128xf32>
    %25 = arith.mulf %15, %24 : vector<16x128xf32>
    %26 = vector.broadcast %8 : vector<1x128xf32> to vector<16x128xf32>
    %27 = arith.mulf %25, %26 : vector<16x128xf32>
    %28 = vector.broadcast %9 : vector<1x128xf32> to vector<16x128xf32>
    %29 = arith.addf %27, %28 : vector<16x128xf32>
    %30 = arith.addf %29, %0 : vector<16x128xf32>
    %c0_16 = arith.constant 0 : index
    %c0_17 = arith.constant 0 : index
    %31 = vector.load %arg13[%c0_16, %c0_17] : memref<1x128xf32, #tpu.memory_space<vmem>>, vector<1x128xf32>
    %c0_18 = arith.constant 0 : index
    %c0_19 = arith.constant 0 : index
    %32 = vector.load %arg14[%c0_18, %c0_19] : memref<1x128xf32, #tpu.memory_space<vmem>>, vector<1x128xf32>
    %cst_20 = arith.constant dense<0.000000e+00> : vector<16xf32>
    %33 = vector.multi_reduction <add>, %30, %cst_20 [1] : vector<16x128xf32> to vector<16xf32>
    %34 = vector.shape_cast %33 : vector<16xf32> to vector<16x1xf32>
    %cst_21 = arith.constant 1.280000e+02 : f32
    %35 = vector.broadcast %cst_21 : f32 to vector<16x1xf32>
    %36 = arith.divf %34, %35 : vector<16x1xf32>
    %37 = vector.broadcast %36 : vector<16x1xf32> to vector<16x128xf32>
    %38 = arith.subf %30, %37 : vector<16x128xf32>
    %39 = arith.mulf %38, %38 : vector<16x128xf32>
    %cst_22 = arith.constant dense<0.000000e+00> : vector<16xf32>
    %40 = vector.multi_reduction <add>, %39, %cst_22 [1] : vector<16x128xf32> to vector<16xf32>
    %41 = vector.shape_cast %40 : vector<16xf32> to vector<16x1xf32>
    %cst_23 = arith.constant 1.280000e+02 : f32
    %42 = vector.broadcast %cst_23 : f32 to vector<16x1xf32>
    %43 = arith.divf %41, %42 : vector<16x1xf32>
    %cst_24 = arith.constant 9.99999997E-7 : f32
    %44 = vector.broadcast %cst_24 : f32 to vector<16x1xf32>
    %45 = arith.addf %43, %44 : vector<16x1xf32>
    %46 = math.rsqrt %45 : vector<16x1xf32>
    %47 = vector.broadcast %46 : vector<16x1xf32> to vector<16x128xf32>
    %48 = arith.mulf %38, %47 : vector<16x128xf32>
    %49 = vector.broadcast %31 : vector<1x128xf32> to vector<16x128xf32>
    %50 = arith.mulf %48, %49 : vector<16x128xf32>
    %51 = vector.broadcast %32 : vector<1x128xf32> to vector<16x128xf32>
    %52 = arith.addf %50, %51 : vector<16x128xf32>
    %53 = arith.truncf %52 : vector<16x128xf32> to vector<16x128xbf16>
    %c0_25 = arith.constant 0 : index
    %c0_26 = arith.constant 0 : index
    %54 = vector.load %arg7[%c0_25, %c0_26] : memref<128x256xbf16, #tpu.memory_space<vmem>>, vector<128x256xbf16>
    %cst_27 = arith.constant dense<0.000000e+00> : vector<16x256xf32>
    %55 = tpu.matmul %53, %54, %cst_27 {dimension_numbers = #tpu.dot_dimension_numbers<[1], [0], [0], [1], [0, 0, 1, 1], [], []>} : vector<16x128xbf16>, vector<128x256xbf16>, vector<16x256xf32> -> vector<16x256xf32>
    %c0_28 = arith.constant 0 : index
    %c0_29 = arith.constant 0 : index
    %56 = vector.load %arg8[%c0_28, %c0_29] : memref<1x256xf32, #tpu.memory_space<vmem>>, vector<1x256xf32>
    %57 = vector.broadcast %56 : vector<1x256xf32> to vector<16x256xf32>
    %58 = arith.addf %55, %57 : vector<16x256xf32>
    %cst_30 = arith.constant 0.000000e+00 : f32
    %59 = vector.broadcast %cst_30 : f32 to vector<16x256xf32>
    %60 = arith.maximumf %58, %59 : vector<16x256xf32>
    %61 = arith.truncf %60 : vector<16x256xf32> to vector<16x256xbf16>
    %c0_31 = arith.constant 0 : index
    %c0_32 = arith.constant 0 : index
    %62 = vector.load %arg9[%c0_31, %c0_32] : memref<256x128xbf16, #tpu.memory_space<vmem>>, vector<256x128xbf16>
    %cst_33 = arith.constant dense<0.000000e+00> : vector<16x128xf32>
    %63 = tpu.matmul %61, %62, %cst_33 {dimension_numbers = #tpu.dot_dimension_numbers<[1], [0], [0], [1], [0, 0, 1, 1], [], []>} : vector<16x256xbf16>, vector<256x128xbf16>, vector<16x128xf32> -> vector<16x128xf32>
    %c0_34 = arith.constant 0 : index
    %c0_35 = arith.constant 0 : index
    %64 = vector.load %arg10[%c0_34, %c0_35] : memref<1x128xf32, #tpu.memory_space<vmem>>, vector<1x128xf32>
    %65 = vector.broadcast %64 : vector<1x128xf32> to vector<16x128xf32>
    %66 = arith.addf %63, %65 : vector<16x128xf32>
    %67 = arith.addf %66, %52 : vector<16x128xf32>
    %c0_36 = arith.constant 0 : index
    %c0_37 = arith.constant 0 : index
    %68 = vector.load %arg11[%c0_36, %c0_37] : memref<1x128xf32, #tpu.memory_space<vmem>>, vector<1x128xf32>
    %c0_38 = arith.constant 0 : index
    %c0_39 = arith.constant 0 : index
    %69 = vector.load %arg12[%c0_38, %c0_39] : memref<1x128xf32, #tpu.memory_space<vmem>>, vector<1x128xf32>
    %cst_40 = arith.constant dense<0.000000e+00> : vector<16xf32>
    %70 = vector.multi_reduction <add>, %67, %cst_40 [1] : vector<16x128xf32> to vector<16xf32>
    %71 = vector.shape_cast %70 : vector<16xf32> to vector<16x1xf32>
    %cst_41 = arith.constant 1.280000e+02 : f32
    %72 = vector.broadcast %cst_41 : f32 to vector<16x1xf32>
    %73 = arith.divf %71, %72 : vector<16x1xf32>
    %74 = vector.broadcast %73 : vector<16x1xf32> to vector<16x128xf32>
    %75 = arith.subf %67, %74 : vector<16x128xf32>
    %76 = arith.mulf %75, %75 : vector<16x128xf32>
    %cst_42 = arith.constant dense<0.000000e+00> : vector<16xf32>
    %77 = vector.multi_reduction <add>, %76, %cst_42 [1] : vector<16x128xf32> to vector<16xf32>
    %78 = vector.shape_cast %77 : vector<16xf32> to vector<16x1xf32>
    %cst_43 = arith.constant 1.280000e+02 : f32
    %79 = vector.broadcast %cst_43 : f32 to vector<16x1xf32>
    %80 = arith.divf %78, %79 : vector<16x1xf32>
    %cst_44 = arith.constant 9.99999997E-7 : f32
    %81 = vector.broadcast %cst_44 : f32 to vector<16x1xf32>
    %82 = arith.addf %80, %81 : vector<16x1xf32>
    %83 = math.rsqrt %82 : vector<16x1xf32>
    %84 = vector.broadcast %83 : vector<16x1xf32> to vector<16x128xf32>
    %85 = arith.mulf %75, %84 : vector<16x128xf32>
    %86 = vector.broadcast %68 : vector<1x128xf32> to vector<16x128xf32>
    %87 = arith.mulf %85, %86 : vector<16x128xf32>
    %88 = vector.broadcast %69 : vector<1x128xf32> to vector<16x128xf32>
    %89 = arith.addf %87, %88 : vector<16x128xf32>
    %90 = arith.addf %89, %52 : vector<16x128xf32>
    %c0_45 = arith.constant 0 : index
    %c0_46 = arith.constant 0 : index
    %91 = vector.load %arg13[%c0_45, %c0_46] : memref<1x128xf32, #tpu.memory_space<vmem>>, vector<1x128xf32>
    %c0_47 = arith.constant 0 : index
    %c0_48 = arith.constant 0 : index
    %92 = vector.load %arg14[%c0_47, %c0_48] : memref<1x128xf32, #tpu.memory_space<vmem>>, vector<1x128xf32>
    %cst_49 = arith.constant dense<0.000000e+00> : vector<16xf32>
    %93 = vector.multi_reduction <add>, %90, %cst_49 [1] : vector<16x128xf32> to vector<16xf32>
    %94 = vector.shape_cast %93 : vector<16xf32> to vector<16x1xf32>
    %cst_50 = arith.constant 1.280000e+02 : f32
    %95 = vector.broadcast %cst_50 : f32 to vector<16x1xf32>
    %96 = arith.divf %94, %95 : vector<16x1xf32>
    %97 = vector.broadcast %96 : vector<16x1xf32> to vector<16x128xf32>
    %98 = arith.subf %90, %97 : vector<16x128xf32>
    %99 = arith.mulf %98, %98 : vector<16x128xf32>
    %cst_51 = arith.constant dense<0.000000e+00> : vector<16xf32>
    %100 = vector.multi_reduction <add>, %99, %cst_51 [1] : vector<16x128xf32> to vector<16xf32>
    %101 = vector.shape_cast %100 : vector<16xf32> to vector<16x1xf32>
    %cst_52 = arith.constant 1.280000e+02 : f32
    %102 = vector.broadcast %cst_52 : f32 to vector<16x1xf32>
    %103 = arith.divf %101, %102 : vector<16x1xf32>
    %cst_53 = arith.constant 9.99999997E-7 : f32
    %104 = vector.broadcast %cst_53 : f32 to vector<16x1xf32>
    %105 = arith.addf %103, %104 : vector<16x1xf32>
    %106 = math.rsqrt %105 : vector<16x1xf32>
    %107 = vector.broadcast %106 : vector<16x1xf32> to vector<16x128xf32>
    %108 = arith.mulf %98, %107 : vector<16x128xf32>
    %109 = vector.broadcast %91 : vector<1x128xf32> to vector<16x128xf32>
    %110 = arith.mulf %108, %109 : vector<16x128xf32>
    %111 = vector.broadcast %92 : vector<1x128xf32> to vector<16x128xf32>
    %112 = arith.addf %110, %111 : vector<16x128xf32>
    %c0_54 = arith.constant 0 : index
    %c0_55 = arith.constant 0 : index
    %113 = vector.load %arg15[%c0_54, %c0_55] : memref<16x128xf32, #tpu.memory_space<vmem>>, vector<16x128xf32>
    tpu.vector_store %arg15[%c0_54, %c0_55], %112 {strides = array<i32>} : memref<16x128xf32, #tpu.memory_space<vmem>>, vector<16x128xf32>,
    return
  }
  func.func @transform_0(%arg0: i32) -> (i32, i32) {
    %c0_i32 = arith.constant 0 : i32
    %c0_i32_0 = arith.constant 0 : i32
    return %arg0, %c0_i32 : i32, i32
  }
  func.func @transform_1(%arg0: i32) -> (i32, i32) {
    %c0_i32 = arith.constant 0 : i32
    %c0_i32_0 = arith.constant 0 : i32
    return %arg0, %c0_i32 : i32, i32
  }
  func.func @transform_2(%arg0: i32) -> (i32, i32) {
    %c0_i32 = arith.constant 0 : i32
    %c0_i32_0 = arith.constant 0 : i32
    %c0_i32_1 = arith.constant 0 : i32
    return %c0_i32, %c0_i32_0 : i32, i32
  }
  func.func @transform_3(%arg0: i32) -> (i32, i32) {
    %c0_i32 = arith.constant 0 : i32
    %c0_i32_0 = arith.constant 0 : i32
    %c0_i32_1 = arith.constant 0 : i32
    return %c0_i32, %c0_i32_0 : i32, i32
  }
  func.func @transform_4(%arg0: i32) -> (i32, i32) {
    %c0_i32 = arith.constant 0 : i32
    %c0_i32_0 = arith.constant 0 : i32
    %c0_i32_1 = arith.constant 0 : i32
    return %c0_i32, %c0_i32_0 : i32, i32
  }
  func.func @transform_5(%arg0: i32) -> (i32, i32) {
    %c0_i32 = arith.constant 0 : i32
    %c0_i32_0 = arith.constant 0 : i32
    %c0_i32_1 = arith.constant 0 : i32
    return %c0_i32, %c0_i32_0 : i32, i32
  }
  func.func @transform_6(%arg0: i32) -> (i32, i32) {
    %c0_i32 = arith.constant 0 : i32
    %c0_i32_0 = arith.constant 0 : i32
    %c0_i32_1 = arith.constant 0 : i32
    return %c0_i32, %c0_i32_0 : i32, i32
  }
  func.func @transform_7(%arg0: i32) -> (i32, i32) {
    %c0_i32 = arith.constant 0 : i32
    %c0_i32_0 = arith.constant 0 : i32
    %c0_i32_1 = arith.constant 0 : i32
    return %c0_i32, %c0_i32_0 : i32, i32
  }
  func.func @transform_8(%arg0: i32) -> (i32, i32) {
    %c0_i32 = arith.constant 0 : i32
    %c0_i32_0 = arith.constant 0 : i32
    %c0_i32_1 = arith.constant 0 : i32
    return %c0_i32, %c0_i32_0 : i32, i32
  }
  func.func @transform_9(%arg0: i32) -> (i32, i32) {
    %c0_i32 = arith.constant 0 : i32
    %c0_i32_0 = arith.constant 0 : i32
    %c0_i32_1 = arith.constant 0 : i32
    return %c0_i32, %c0_i32_0 : i32, i32
  }
  func.func @transform_10(%arg0: i32) -> (i32, i32) {
    %c0_i32 = arith.constant 0 : i32
    %c0_i32_0 = arith.constant 0 : i32
    %c0_i32_1 = arith.constant 0 : i32
    return %c0_i32, %c0_i32_0 : i32, i32
  }
  func.func @transform_11(%arg0: i32) -> (i32, i32) {
    %c0_i32 = arith.constant 0 : i32
    %c0_i32_0 = arith.constant 0 : i32
    %c0_i32_1 = arith.constant 0 : i32
    return %c0_i32, %c0_i32_0 : i32, i32
  }
  func.func @transform_12(%arg0: i32) -> (i32, i32) {
    %c0_i32 = arith.constant 0 : i32
    %c0_i32_0 = arith.constant 0 : i32
    %c0_i32_1 = arith.constant 0 : i32
    return %c0_i32, %c0_i32_0 : i32, i32
  }
  func.func @transform_13(%arg0: i32) -> (i32, i32) {
    %c0_i32 = arith.constant 0 : i32
    %c0_i32_0 = arith.constant 0 : i32
    %c0_i32_1 = arith.constant 0 : i32
    return %c0_i32, %c0_i32_0 : i32, i32
  }
  func.func @transform_14(%arg0: i32) -> (i32, i32) {
    %c0_i32 = arith.constant 0 : i32
    %c0_i32_0 = arith.constant 0 : i32
    return %arg0, %c0_i32 : i32, i32
  }
}

</mosaic_0001>

<bundles_post_ra>
// kernel: _lambda_.5
= control target key start
LH: loop header
LB: loop body
LE: loop exit
PB: predicated region body
PF: predicated region fallthrough
CT: control target
= control target key end

     0   :  { %s670_s12 = smov 0   ;;  %s768_s0 = inlined_call_operand.vmem [shape: f32[32,128], index: 0, kind: input, shape index: {}]   ;;  %s769_s1 = inlined_call_operand.vmem [shape: bf16[128,384], index: 1, kind: input, shape index: {}]   ;;  %s770_s2 = inlined_call_operand.vmem [shape: f32[1,384], index: 2, kind: input, shape index: {}]   ;;  %s771_s3 = inlined_call_operand.vmem [shape: bf16[32,384], index: 3, kind: output, shape index: {}]  }
   0x1 LB: > { %s523_s13 = sadd.s32 4294967295, %s645_s12   ;;  %p527_p0 = scmp.ge.s32.totalorder %s645_s12, 1  ;;  %s645_s12 = sphi %s670_s12, %s13_s12  }
   0x2   : > { %p138_p1 = scmp.lt.s32.totalorder %s645_s12, 3 }
   0x4   : > { %p139_p2 = pnand %p527_p0, %p138_p1 }
   0x5   : > { %v607_v0 = vld [vmem:[%s769_s1 + $0x4] ss:$12 sps:$4 sm:$0xff] (!%p139_p2)   ;;  %v647_v1 = vmov (!%p139_p2), 0.0   ;;  %v609_v2 = vld [vmem:[%s769_s1 + $0x8] ss:$12 sps:$4 sm:$0xff] (!%p139_p2)   ;;  %vm648_vm0 = vmmov (!%p139_p2), 0   ;;  %v214_v29 = vlaneseq (!%p139_p2) }
   0x6   : > { %142 = sbr.rel (%p139_p2) target bundleno = 259 (0x103), region = 32  ;;  %575 = vmatprep.subr.bf16.mxu1 (!%p139_p2), %v647_v1  ;;  %591 = vmatprep.mubr.msk.bf16.mxu1 (!%p139_p2), %vm648_vm0, %v647_v1  ;;  %v610_v3 = vld [vmem:[%s769_s1] ss:$12 sps:$4 sm:$0xff] (!%p139_p2)   ;;  %v611_v4 = vld [vmem:[%s769_s1 + $0x1c] ss:$12 sps:$4 sm:$0xff] (!%p139_p2)   ;;  %v649_v5 = vmov (!%p139_p2), 0  }
   0x7   : > { %357 = vmatprep.subr.bf16.mxu0 (!%p139_p2), %v607_v0  ;;  %576 = vmatpush3.bf16.msra.mxu1 (!%p139_p2), %v609_v2  ;;  %v613_v6 = vld [vmem:[%s769_s1 + $0x20] ss:$12 sps:$4 sm:$0xff] (!%p139_p2)   ;;  %v614_v7 = vld [vmem:[%s769_s1 + $0x18] ss:$12 sps:$4 sm:$0xff] (!%p139_p2)   ;;  %v618_v10 = vld [vmem:[%s769_s1 + $0x30] ss:$12 sps:$4 sm:$0xff] (!%p139_p2)  }
   0x8   : > { %389 = vmatprep.mubr.bf16.mxu0 (!%p139_p2), %v649_v5  ;;  %358 = vmatpush1.bf16.msra.mxu0 (!%p139_p2), %v610_v3  ;;  %v615_v8 = vld [vmem:[%s769_s1 + $0x34] ss:$12 sps:$4 sm:$0xff] (!%p139_p2)   ;;  %v617_v9 = vld [vmem:[%s769_s1 + $0x38] ss:$12 sps:$4 sm:$0xff] (!%p139_p2)   ;;  %s528_s7 = sshll.u32 (!%p139_p2), %s523_s13, 1  ;;  %v215_v30 = vshrl.u32 (!%p139_p2), %v214_v29, 7 }
   0x9   : > { %577 = vmatprep.subr.bf16.mxu1 (!%p139_p2), %v647_v1  ;;  %359 = vmatprep.subr.bf16.mxu0 (!%p139_p2), %v611_v4  ;;  %v619_v11 = vld [vmem:[%s769_s1 + $0x4c] ss:$12 sps:$4 sm:$0xff] (!%p139_p2)   ;;  %v621_v12 = vld [vmem:[%s769_s1 + $0x50] ss:$12 sps:$4 sm:$0xff] (!%p139_p2)   ;;  %v622_v13 = vld [vmem:[%s769_s1 + $0x48] ss:$12 sps:$4 sm:$0xff] (!%p139_p2)  }
   0xa   : > { %p164_p3 = scmp.lt.s32.totalorder (!%p139_p2), %s528_s7, 3  ;;  %v623_v14 = vld [vmem:[%s769_s1 + $0x64] ss:$12 sps:$4 sm:$0xff] (!%p139_p2)   ;;  %v625_v15 = vld [vmem:[%s769_s1 + $0x68] ss:$12 sps:$4 sm:$0xff] (!%p139_p2)   ;;  %v224_v31 = vsub.s32 (!%p139_p2), 2, %v215_v30 }
   0xb   : > { %578 = vmatpush3.bf16.msra.mxu1 (!%p139_p2), %v613_v6  ;;  %v626_v16 = vld [vmem:[%s769_s1 + $0x60] ss:$12 sps:$4 sm:$0xff] (!%p139_p2)   ;;  %v627_v17 = vld [vmem:[%s769_s1 + $0x7c] ss:$12 sps:$4 sm:$0xff] (!%p139_p2)   ;;  %v630_v19 = vld [vmem:[%s769_s1 + $0x78] ss:$12 sps:$4 sm:$0xff] (!%p139_p2)  }
   0xc   : > { %360 = vmatpush1.bf16.msra.mxu0 (!%p139_p2), %v614_v7  ;;  %579 = vmatprep.subr.bf16.mxu1 (!%p139_p2), %v647_v1  ;;  %v629_v18 = vld [vmem:[%s769_s1 + $0x80] ss:$12 sps:$4 sm:$0xff] (!%p139_p2)   ;;  %v633_v21 = vld [vmem:[%s769_s1 + $0x98] ss:$12 sps:$4 sm:$0xff] (!%p139_p2)   ;;  %v634_v22 = vld [vmem:[%s769_s1 + $0x90] ss:$12 sps:$4 sm:$0xff] (!%p139_p2)  }
   0xd   : > { %361 = vmatprep.subr.bf16.mxu0 %v615_v8  ;;  %s773_s7 = smov (!%p164_p3, %s528_s7), 3  ;;  %v631_v20 = vld [vmem:[%s769_s1 + $0x94] ss:$12 sps:$4 sm:$0xff]   ;;  %v635_v23 = vld [vmem:[%s769_s1 + $0xac] ss:$12 sps:$4 sm:$0xff]   ;;  %v216_v33 = vsub.s32 0, %v215_v30 }
   0xe   : > { %s529_s27 = sshll.u32 %s773_s7, 3  ;;  %v637_v24 = vld [vmem:[%s769_s1 + $0xb0] ss:$12 sps:$4 sm:$0xff]   ;;  %v638_v27 = vld [vmem:[%s769_s1 + $0xa8] ss:$12 sps:$4 sm:$0xff]   ;;  %v220_v34 = vsub.s32 1, %v215_v30 }
   0xf   : > { %580 = vmatpush3.bf16.msra.mxu1 %v617_v9  ;;  %s167_s8 = scalar_lea.vmem %s768_s0, %s529_s27  ;;  %v212_v32 = vld [vmem:[%s770_s2] sm:$0x7]  ;;  %s595_s18 = smul.u32 12, %s773_s7 }
  0x10   : > { %362 = vmatpush1.bf16.msra.mxu0 %v618_v10  ;;  %581 = vmatprep.subr.bf16.mxu1 %v647_v1  ;;  %v177_v25 = vld [vmem:[%s167_s8] sm:$0xff]  ;;  %v178_v26 = vld [vmem:[%s167_s8 + $0x8] sm:$0xff]  ;;  %v225_v35 = vrot.slane %v212_v32, %v224_v31  ;;  %v217_v36 = vrot.slane %v212_v32, %v216_v33  ;;  %v221_v37 = vrot.slane %v212_v32, %v220_v34 }
  0x11   : > { %363 = vmatprep.subr.bf16.mxu0 %v619_v11  ;;  %v179_v28 = vpack.c.bf16 %v178_v26, %v177_v25  ;;  %s174_s21 = scalar_lea.vmem %s771_s3, %s595_s18 }
  0x13   : > { %582 = vmatpush3.bf16.msra.mxu1 %v621_v12 }
  0x14   : > { %364 = vmatpush1.bf16.msra.mxu0 %v622_v13  ;;  %583 = vmatprep.subr.bf16.mxu1 %v647_v1 }
  0x15   : > { %365 = vmatprep.subr.bf16.mxu0 %v623_v14 }
  0x17   : > { %584 = vmatpush3.bf16.msra.mxu1 %v625_v15 }
  0x18   : > { %366 = vmatpush1.bf16.msra.mxu0 %v626_v16  ;;  %585 = vmatprep.subr.bf16.mxu1 %v647_v1 }
  0x19   : > { %367 = vmatprep.subr.bf16.mxu0 %v627_v17 }
  0x1b   : > { %586 = vmatpush3.bf16.msra.mxu1 %v629_v18 }
  0x1c   : > { %368 = vmatpush1.bf16.msra.mxu0 %v630_v19  ;;  %587 = vmatprep.subr.bf16.mxu1 %v647_v1 }
  0x1d   : > { %369 = vmatprep.subr.bf16.mxu0 %v631_v20 }
  0x1f   : > { %588 = vmatpush3.bf16.msra.mxu1 %v633_v21 }
  0x20   : > { %370 = vmatpush1.bf16.msra.mxu0 %v634_v22  ;;  %589 = vmatprep.subr.bf16.mxu1 %v647_v1 }
  0x21   : > { %371 = vmatprep.subr.bf16.mxu0 %v635_v23 }
  0x23   : > { %590 = vmatpush3.bf16.msra.mxu1 %v637_v24 }
  0x24   : > { %372 = vmatpush1.bf16.msra.mxu0 %v638_v27 }
  0x26   : > { %592 = vmatmul.mubr.bf16.vlgmr.msra.gmra.mrb[0].mxu1 %v179_v28 }
  0x27   : > { %390 = vmatmul.mubr.bf16.vlgmr.msra.gmra.mrb[0].mxu0 %v179_v28 }
  0xf9   : > { %v434_v38 = vpop.f32.mrb[0].mxu1 }
  0xfa   : > { %v435_v39 = vadd.f32 %v434_v38, %v225_v35  ;;  %v391_v40 = vpop.f32.mrb[0].mxu0  ;;  %v593_v41 = vpop.f32.mrb[1].mxu1 }
  0xfb   : > { %v392_v42 = vadd.f32 %v391_v40, %v217_v36  ;;  %v393_v43 = vpop.f32.mrb[1].mxu0  ;;  %v437_v44 = vpop.f32.mrb[2].mxu1 }
  0xfc   : > { %v563_v45 = vpack.c.bf16 %v435_v39, %v435_v39  ;;  %v394_v46 = vadd.f32 %v393_v43, %v221_v37  ;;  %v438_v47 = vadd.f32 %v437_v44, %v225_v35  ;;  %v395_v48 = vpop.f32.mrb[2].mxu0  ;;  %v594_v49 = vpop.f32.mrb[3].mxu1 }
  0xfd   : > { %v396_v50 = vadd.f32 %v395_v48, %v217_v36  ;;  %v397_v51 = vpop.f32.mrb[3].mxu0 }
  0xfe   : > { %462 = vst [vmem:[%s174_s21 + $0x8] sm:$0xf] %v563_v45  ;;  %v562_v52 = vpack.c.bf16 %v394_v46, %v392_v42  ;;  %v565_v53 = vpack.c.bf16 %v438_v47, %v438_v47  ;;  %v398_v54 = vadd.f32 %v397_v51, %v221_v37 }
 0x100   : > { %461 = vst [vmem:[%s174_s21] sm:$0xff] %v562_v52  ;;  %464 = vst [vmem:[%s174_s21 + $0x14] sm:$0xf] %v565_v53  ;;  %v564_v55 = vpack.c.bf16 %v398_v54, %v396_v50 }
 0x102   : > { %463 = vst [vmem:[%s174_s21 + $0xc] sm:$0xff] %v564_v55 }
 0x103 PF: > { %s13_s12 = sadd.s32 1, %s645_s12  }
 0x104   : > { %p10_p4 = scmp.ge.s32.totalorder %s13_s12, 4  }
 0x106   :  { %12 = sbr.rel (!%p10_p4) target bundleno = 1 (0x1), region = 62 }

// kernel: _lambda_.6
= control target key start
LH: loop header
LB: loop body
LE: loop exit
PB: predicated region body
PF: predicated region fallthrough
CT: control target
= control target key end

     0   :  { %11 = vsyncpa [#allocation3], 0  ;;  %s1589_s0 = inlined_call_operand.vmem [shape: bf16[2,4,16,32], index: 0, kind: input, shape index: {}]   ;;  %s1590_s1 = inlined_call_operand.vmem [shape: bf16[2,4,16,32], index: 1, kind: input, shape index: {}]   ;;  %s1591_s2 = inlined_call_operand.vmem [shape: bf16[2,4,16,32], index: 2, kind: input, shape index: {}]   ;;  %s1592_s3 = inlined_call_operand.vmem [shape: f32[2,1,16], index: 3, kind: input, shape index: {}]   ;;  %s1593_s4 = inlined_call_operand.vmem [shape: bf16[2,4,16,32], index: 4, kind: output, shape index: {0}]   ;;  %s1594_s5 = inlined_call_operand.hbm [shape: f32[2,4,16,16], index: 5, kind: output, shape index: {1}]  }
   0x1   :  { %13 = vsyncpa [#allocation3 + $0x1], 0  ;;  %s1361_s18 = smov 0   ;;  %s1363_s19 = smov 0  }
   0x2   :  { %s1365_s20 = smov 0   ;;  %s1367_s21 = smov 0  }
   0x3 LB: > { %s1382_s22 = sadd.s32 4294967295, %s1324_s21   ;;  %s1051_s23 = sadd.s32 4294967294, %s1324_s21   ;;  %s1324_s21 = sphi %s1367_s21, %s1600_s21   ;;  %s1320_s20 = sphi %s1365_s20, %s1599_s20   ;;  %s1316_s19 = sphi %s1363_s19, %s1598_s19   ;;  %s1312_s18 = sphi %s1361_s18, %s1597_s18  }
   0x4   : > { %s1386_s24 = sadd.s32 1, %s1324_s21   ;;  %s156_s25 = sadd.s32 1, %s1320_s20 }
   0x5   : > { %s153_s26 = ssub.s32 %s1324_s21, %s1386_s24  ;;  %p166_p0 = scmp.ne.s32.totalorder %s1320_s20, %s1316_s19 }
   0x6   : > { %p154_p1 = scmp.eq.s32.totalorder %s153_s26, 0  ;;  %p167_p2 = scmp.eq.s32.totalorder %s1382_s22, 1 }
   0x7   : > { %p172_p3 = scmp.ne.s32.totalorder %s1316_s19, %s1312_s18  ;;  %p173_p4 = scmp.eq.s32.totalorder %s1051_s23, 1 }
   0x8   : > { %s1397_s27 = scalar_select %p154_p1, %s1320_s20, %s156_s25  }
   0x9   : > { %p1399_p5 = por %p167_p2, %p166_p0  ;;  %p1403_p6 = por %p173_p4, %p172_p3 }
   0xa   : > { %p1054_p7 = scmp.ge.s32.totalorder %s1324_s21, 1  ;;  %p221_p8 = scmp.lt.s32.totalorder %s1324_s21, 3 }
   0xc   : > { %p222_p9 = pnand %p1054_p7, %p221_p8 }
   0xd   : > { %p267_p10 = scmp.lt.s32.totalorder (!%p222_p9), %s1382_s22, 1  ;;  %v1326_v0 = vmov (!%p222_p9), 0.0   ;;  %vm1327_vm0 = vmmov (!%p222_p9), 0   ;;  %vm317_vm1 = vcmask (!%p222_p9), 261120   ;;  %vm559_vm2 = vcmask (!%p222_p9), 130048   ;;  %s264_s25 = sand.u32 (!%p222_p9), 1, %s1316_s19  }
   0xe   : > { %225 = sbr.rel (%p222_p9) target bundleno = 800 (0x320), region = 36  ;;  %1127 = vmatprep.subr.bf16.mxu0 (!%p222_p9), %v1326_v0  ;;  %1133 = vmatprep.subr.bf16.mxu1 (!%p222_p9), %v1326_v0  ;;  %s1055_s26 = sshll.u32 (!%p222_p9), %s264_s25, 6 }
   0xf   : > { %1129 = vmatprep.mubr.msk.bf16.mxu0 (!%p222_p9), %vm1327_vm0, %v1326_v0  ;;  %1135 = vmatprep.mubr.msk.bf16.mxu1 (!%p222_p9), %vm1327_vm0, %v1326_v0  ;;  %s1110_s7 = sshll.u32 (!%p222_p9), %s1382_s22, 10 }
  0x10   : > { %s1520_s11 = scalar_lea.hbm (!%p222_p9), %s1594_s5, %s1110_s7 }
  0x15   : > { %s1413_s30 = scalar_select %p267_p10, %s1382_s22, 1 }
  0x16   : > { %s1328_s22 = smov [#allocation2]  }
  0x17   : > { %s1420_s6 = sshll.u32 %s1413_s30, 5  ;;  %s284_s15 = scalar_lea.vmem %s1592_s3, %s1413_s30 }
  0x18   : > { %s276_s9 = scalar_lea.vmem %s1590_s1, %s1420_s6  ;;  %s271_s12 = scalar_lea.vmem %s1589_s0, %s1420_s6  ;;  %v1076_v14 = vld [vmem:[%s284_s15] ss:$0 sm:$0xff] }
  0x19   : > { %v1218_v1 = vld [vmem:[%s276_s9] sm:$0xff]   ;;  %v1219_v2 = vld [vmem:[%s276_s9 + $0x8] sm:$0xff]   ;;  %v1222_v5 = vld [vmem:[%s276_s9 + $0x10] sm:$0xff]   ;;  %s1477_s23 = scalar_lea.vmem %s1591_s2, %s1420_s6  ;;  %s1486_s30 = scalar_lea.vmem [#allocation2], %s1055_s26 }
  0x1a   : > { %v322_v3 = vsel %vm317_vm1, %v1218_v1, 0  ;;  %v379_v4 = vsel %vm317_vm1, %v1219_v2, 0  ;;  %v1223_v6 = vld [vmem:[%s276_s9 + $0x18] sm:$0xff]   ;;  %v1220_v7 = vld [vmem:[%s271_s12] sm:$0xff]   ;;  %v1221_v8 = vld [vmem:[%s271_s12 + $0x8] sm:$0xff]   ;;  %v436_v9 = vsel %vm317_vm1, %v1222_v5, 0 }
  0x1b   : > { %1128 = vmatpush3.bf16.xpose.msra.mxu0 %v322_v3  ;;  %1134 = vmatpush3.bf16.xpose.msra.mxu1 %v379_v4  ;;  %v493_v10 = vsel %vm317_vm1, %v1223_v6, 0  ;;  %v1224_v11 = vld [vmem:[%s271_s12 + $0x10] sm:$0xff]   ;;  %v1225_v12 = vld [vmem:[%s271_s12 + $0x18] sm:$0xff]   ;;  %s931_s8 = sshll.u32 %s1486_s30, 4  ;;  %s1526_s12 = scalar_lea.sflag [#allocation3], %s264_s25  ;;  %s1522_s8 = int_to_ptr.vmem [resolvable:$true] %s931_s8 }
  0x1c   : > { %1139 = vmatprep.subr.bf16.mxu0 %v1326_v0  ;;  %1145 = vmatprep.subr.bf16.mxu1 %v1326_v0  ;;  %s1262_s13 = scalar_lea.vmem %s1522_s8, 1024  ;;  %s1266_s14 = sshll.u32 %s1328_s22, 4  ;;  %s1267_s14 = int_to_ptr.vmem [resolvable:$false] %s1266_s14 }
  0x1d   : > { %p1263_p11 = scmp.ne.s32.totalorder %s1522_s8, %s1262_s13  ;;  %s1268_s15 = scalar_lea.vmem %s1267_s14, 2048 }
  0x1e   : > { %p1269_p0 = scmp.lt.s32.totalorder %s1522_s8, %s1267_s14  ;;  %p1270_p1 = scmp.lt.s32.totalorder %s1268_s15, %s1262_s13 }
  0x1f   : > { %p1264_p12 = pnand %p1263_p11, %p1399_p5 }
  0x20   : > { %p1271_p2 = por %p1270_p1, %p1269_p0 }
  0x21   : > { %p1265_p13 = pneg %p1264_p12 }
  0x22   : > { %1130 = vmatmul.mubr.msk.bf16.vlgmr.msra.gmra.mrb[0].mxu0 %vm317_vm1, %v1220_v7  ;;  %1136 = vmatmul.mubr.msk.bf16.vlgmr.msra.gmra.mrb[0].mxu1 %vm317_vm1, %v1221_v8 }
  0x23   : > { %1140 = vmatpush3.bf16.xpose.msra.mxu0 %v436_v9  ;;  %1146 = vmatpush3.bf16.xpose.msra.mxu1 %v493_v10  ;;  %p1272_p3 = pnand %p1271_p2, %p1265_p13 }
  0x24   : > { %1141 = vmatprep.mubr.msk.bf16.mxu0 %vm1327_vm0, %v1326_v0  ;;  %1147 = vmatprep.mubr.msk.bf16.mxu1 %vm1327_vm0, %v1326_v0 }
  0x25   : > { %1151 = vmatprep.subr.bf16.mxu0 %v1326_v0  ;;  %1157 = vmatprep.subr.bf16.mxu1 %v1326_v0 }
  0x2a   : > { %1142 = vmatmul.mubr.msk.bf16.vlgmr.msra.gmra.mrb[4].mxu0 %vm317_vm1, %v1224_v11  ;;  %1148 = vmatmul.mubr.msk.bf16.vlgmr.msra.gmra.mrb[4].mxu1 %vm317_vm1, %v1225_v12 }
  0x2b   : > { %1153 = vmatprep.mubr.msk.bf16.mxu0 %vm1327_vm0, %v1326_v0  ;;  %1159 = vmatprep.mubr.msk.bf16.mxu1 %vm1327_vm0, %v1326_v0 }
  0xf5   : > { %v358_v13 = vpop.f32.mrb[0].mxu0  ;;  %v415_v16 = vpop.f32.mrb[0].mxu1 }
  0xf6   : > { %v536_v15 = vmul.f32 0.17677669, %v358_v13  ;;  %v1131_v17 = vpop.f32.mrb[1].mxu0  ;;  %v538_v18 = vmul.f32 0.17677669, %v415_v16  ;;  %v1137_v20 = vpop.f32.mrb[1].mxu1 }
  0xf7   : > { %v361_v19 = vpop.f32.mrb[2].mxu0  ;;  %v418_v23 = vpop.f32.mrb[2].mxu1 }
  0xf8   : > { %v537_v21 = vmul.f32 0.17677669, %v361_v19  ;;  %v1132_v22 = vpop.f32.mrb[3].mxu0  ;;  %v551_v24 = vadd.f32 %v1076_v14, %v536_v15  ;;  %v539_v25 = vmul.f32 0.17677669, %v418_v23  ;;  %v1138_v26 = vpop.f32.mrb[3].mxu1  ;;  %v553_v27 = vadd.f32 %v1076_v14, %v538_v18 }
  0xfa   : > { %v560_v28 = vsel %vm559_vm2, %v551_v24, -inf  ;;  %v552_v29 = vadd.f32 %v1076_v14, %v537_v21  ;;  %v566_v30 = vsel %vm559_vm2, %v553_v27, -inf  ;;  %v554_v31 = vadd.f32 %v1076_v14, %v539_v25 }
  0xfb   : > { %561 = vmax.xlane.f32.xlu0 %v560_v28  ;;  %567 = vmax.xlane.f32.xlu1 %v566_v30 }
  0xfc   : > { %v569_v33 = vsel %vm559_vm2, %v554_v31, -inf  ;;  %v563_v36 = vsel %vm559_vm2, %v552_v29, -inf }
  0xfd   : > { %v472_v32 = vpop.f32.mrb[4].mxu0  ;;  %v529_v37 = vpop.f32.mrb[4].mxu1 }
  0xfe   : > { %v540_v34 = vmul.f32 0.17677669, %v472_v32  ;;  %v1143_v35 = vpop.f32.mrb[5].mxu0  ;;  %v542_v39 = vmul.f32 0.17677669, %v529_v37  ;;  %v1149_v40 = vpop.f32.mrb[5].mxu1 }
  0xff   : > { %564 = vmax.xlane.f32.xlu0 %v563_v36  ;;  %v475_v38 = vpop.f32.mrb[6].mxu0  ;;  %570 = vmax.xlane.f32.xlu1 %v569_v33  ;;  %v532_v43 = vpop.f32.mrb[6].mxu1  ;;  %v1227_v32 = vld [vmem:[%s1477_s23 + $0x8] sm:$0xff]  }
 0x100   : > { %v541_v41 = vmul.f32 0.17677669, %v475_v38  ;;  %v1144_v42 = vpop.f32.mrb[7].mxu0  ;;  %v555_v44 = vadd.f32 %v1076_v14, %v540_v34  ;;  %v543_v45 = vmul.f32 0.17677669, %v532_v43  ;;  %v1150_v46 = vpop.f32.mrb[7].mxu1  ;;  %v557_v47 = vadd.f32 %v1076_v14, %v542_v39  ;;  %1158 = vmatpush3.bf16.msra.mxu1 %v1227_v32 }
 0x101   : > { %1169 = vmatprep.subr.bf16.mxu1 %v1326_v0 }
 0x102   : > { %v572_v48 = vsel %vm559_vm2, %v555_v44, -inf  ;;  %v556_v49 = vadd.f32 %v1076_v14, %v541_v41  ;;  %v558_v50 = vadd.f32 %v1076_v14, %v543_v45  ;;  %v578_v52 = vsel %vm559_vm2, %v557_v47, -inf }
 0x103   : > { %573 = vmax.xlane.f32.xlu0 %v572_v48 }
 0x104   : > { %v575_v51 = vsel %vm559_vm2, %v556_v49, -inf  ;;  %v581_v53 = vsel %vm559_vm2, %v558_v50, -inf }
 0x105   : > { %576 = vmax.xlane.f32.xlu1 %v575_v51 }
 0x107   : > { %579 = vmax.xlane.f32.xlu0 %v578_v52 }
 0x109   : > { %582 = vmax.xlane.f32.xlu1 %v581_v53  ;;  %v1229_v53 = vld [vmem:[%s1477_s23 + $0x18] sm:$0xff]  }
 0x188   : > { %v562_v54 = vpop.xlane.xlu0 %561  ;;  %v568_v55 = vpop.xlane.xlu1 %567 }
 0x189   : > { %v584_v56 = vsub.f32 %v551_v24, %v562_v54  ;;  %v586_v57 = vsub.f32 %v553_v27, %v568_v55 }
 0x18b   : > { %v592_v58 = vmul.f32 1.442695, %v584_v56  ;;  %v596_v59 = vmul.f32 1.442695, %v586_v57 }
 0x18c   : > { %v565_v60 = vpop.xlane.xlu0 %564  ;;  %v571_v61 = vpop.xlane.xlu1 %570 }
 0x18d   : > { %1230 = vpow2.f32 %v592_v58  ;;  %v585_v62 = vsub.f32 %v552_v29, %v565_v60  ;;  %v587_v63 = vsub.f32 %v554_v31, %v571_v61  ;;  %v1226_v31 = vld [vmem:[%s1477_s23] sm:$0xff]  }
 0x18e   : > { %1232 = vpow2.f32 %v596_v59  ;;  %1152 = vmatpush3.bf16.msra.mxu0 %v1226_v31 }
 0x18f   : > { %v594_v1 = vmul.f32 1.442695, %v585_v62  ;;  %v598_v2 = vmul.f32 1.442695, %v587_v63  ;;  %1163 = vmatprep.subr.bf16.mxu0 %v1326_v0 }
 0x190   : > { %v574_v3 = vpop.xlane.xlu0 %573 }
 0x191   : > { %1234 = vpow2.f32 %v594_v1  ;;  %v588_v4 = vsub.f32 %v555_v44, %v574_v3 }
 0x192   : > { %v577_v5 = vpop.xlane.xlu1 %576  ;;  %1236 = vpow2.f32 %v598_v2 }
 0x193   : > { %v600_v6 = vmul.f32 1.442695, %v588_v4  ;;  %v589_v7 = vsub.f32 %v556_v49, %v577_v5 }
 0x194   : > { %v580_v8 = vpop.xlane.xlu0 %579 }
 0x195   : > { %1238 = vpow2.f32 %v600_v6  ;;  %v602_v9 = vmul.f32 1.442695, %v589_v7  ;;  %v590_v10 = vsub.f32 %v557_v47, %v580_v8  ;;  %v1228_v47 = vld [vmem:[%s1477_s23 + $0x10] sm:$0xff]  }
 0x196   : > { %v583_v11 = vpop.xlane.xlu1 %582 }
 0x197   : > { %v1231_v12 = vpop.eup %1230  ;;  %1240 = vpow2.f32 %v602_v9  ;;  %v604_v13 = vmul.f32 1.442695, %v590_v10  ;;  %v591_v14 = vsub.f32 %v558_v50, %v583_v11 }
 0x198   : > { %v608_v15 = vsel %vm559_vm2, %v1231_v12, 0.0  ;;  %v1233_v16 = vpop.eup %1232 }
 0x199   : > { %1242 = vpow2.f32 %v604_v13  ;;  %v606_v17 = vmul.f32 1.442695, %v591_v14  ;;  %609 = vadd.xlane.f32.xlu0 %v608_v15  ;;  %v614_v19 = vsel %vm559_vm2, %v1233_v16, 0.0 }
 0x19b   : > { %v1235_v18 = vpop.eup %1234  ;;  %1244 = vpow2.f32 %v606_v17 }
 0x19c   : > { %v611_v20 = vsel %vm559_vm2, %v1235_v18, 0.0  ;;  %v1237_v21 = vpop.eup %1236 }
 0x19d   : > { %615 = vadd.xlane.f32.xlu0 %v614_v19  ;;  %612 = vadd.xlane.f32.xlu1 %v611_v20  ;;  %v617_v24 = vsel %vm559_vm2, %v1237_v21, 0.0 }
 0x19f   : > { %v1239_v22 = vpop.eup %1238 }
 0x1a0   : > { %v620_v23 = vsel %vm559_vm2, %v1239_v22, 0.0 }
 0x1a1   : > { %v1241_v25 = vpop.eup %1240  ;;  %621 = vadd.xlane.f32.xlu0 %v620_v23  ;;  %618 = vadd.xlane.f32.xlu1 %v617_v24 }
 0x1a2   : > { %v623_v28 = vsel %vm559_vm2, %v1241_v25, 0.0 }
 0x1a3   : > { %v1243_v26 = vpop.eup %1242 }
 0x1a4   : > { %v626_v27 = vsel %vm559_vm2, %v1243_v26, 0.0 }
 0x1a5   : > { %v1469_v29 = vpop.eup %1244  ;;  %627 = vadd.xlane.f32.xlu0 %v626_v27  ;;  %624 = vadd.xlane.f32.xlu1 %v623_v28 }
 0x1a6   : > { %v629_v30 = vsel %vm559_vm2, %v1469_v29, 0.0 }
 0x1a9   : > { %630 = vadd.xlane.f32.xlu1 %v629_v30 }
 0x226   : > { %v610_v33 = vpop.xlane.xlu0 %609 }
 0x227   : > { %1246 = vrcp.f32 %v610_v33 }
 0x22a   : > { %v616_v34 = vpop.xlane.xlu0 %615  ;;  %v613_v35 = vpop.xlane.xlu1 %612 }
 0x22b   : > { %1248 = vrcp.f32 %v616_v34 }
 0x22c   : > { %1250 = vrcp.f32 %v613_v35 }
 0x22e   : > { %v622_v36 = vpop.xlane.xlu0 %621  ;;  %v619_v37 = vpop.xlane.xlu1 %618 }
 0x22f   : > { %1252 = vrcp.f32 %v622_v36 }
 0x230   : > { %1254 = vrcp.f32 %v619_v37 }
 0x231   : > { %v1247_v38 = vpop.eup %1246 }
 0x232   : > { %v640_v39 = vmul.f32 %v1247_v38, %v1231_v12  ;;  %v628_v40 = vpop.xlane.xlu0 %627  ;;  %v625_v41 = vpop.xlane.xlu1 %624 }
 0x233   : > { %1256 = vrcp.f32 %v628_v40 }
 0x234   : > { %648 = vst.msk [vmem:[%s1486_s30] sm:$0xff] %vm559_vm2, %v640_v39  ;;  %1258 = vrcp.f32 %v625_v41 }
 0x235   : > { %v1249_v42 = vpop.eup %1248 }
 0x236   : > { %v1251_v43 = vpop.eup %1250  ;;  %v642_v44 = vmul.f32 %v1249_v42, %v1233_v16  ;;  %v631_v45 = vpop.xlane.xlu1 %630 }
 0x237   : > { %v641_v46 = vmul.f32 %v1251_v43, %v1235_v18  ;;  %1260 = vrcp.f32 %v631_v45 }
 0x238   : > { %650 = vst.msk [vmem:[%s1486_s30 + $0x10] sm:$0xff] %vm559_vm2, %v642_v44 }
 0x239   : > { %v1253_v48 = vpop.eup %1252  ;;  %649 = vst.msk [vmem:[%s1486_s30 + $0x8] sm:$0xff] %vm559_vm2, %v641_v46  ;;  %v656_v49 = vpack.c.bf16 %v641_v46, %v640_v39 }
 0x23a   : > { %v1255_v50 = vpop.eup %1254  ;;  %v644_v51 = vmul.f32 %v1253_v48, %v1239_v22 }
 0x23b   : > { %v643_v52 = vmul.f32 %v1255_v50, %v1237_v21  ;;  %1154 = vmatmul.mubr.msk.bf16.vlgmr.msra.gmra.mrb[8].mxu0 %vm559_vm2, %v656_v49 }
 0x23c   : > { %652 = vst.msk [vmem:[%s1486_s30 + $0x20] sm:$0xff] %vm559_vm2, %v644_v51  ;;  %1164 = vmatpush3.bf16.msra.mxu0 %v1228_v47  ;;  %1165 = vmatprep.mubr.msk.bf16.mxu0 %vm1327_vm0, %v1326_v0 }
 0x23d   : > { %v1257_v54 = vpop.eup %1256  ;;  %651 = vst.msk [vmem:[%s1486_s30 + $0x18] sm:$0xff] %vm559_vm2, %v643_v52  ;;  %v657_v55 = vpack.c.bf16 %v643_v52, %v642_v44 }
 0x23e   : > { %v1259_v56 = vpop.eup %1258  ;;  %v646_v57 = vmul.f32 %v1257_v54, %v1243_v26 }
 0x23f   : > { %v645_v58 = vmul.f32 %v1259_v56, %v1241_v25  ;;  %1160 = vmatmul.mubr.msk.bf16.vlgmr.msra.gmra.mrb[8].mxu1 %vm559_vm2, %v657_v55 }
 0x240   : > { %654 = vst.msk [vmem:[%s1486_s30 + $0x30] sm:$0xff] %vm559_vm2, %v646_v57  ;;  %1170 = vmatpush3.bf16.msra.mxu1 %v1229_v53  ;;  %1171 = vmatprep.mubr.msk.bf16.mxu1 %vm1327_vm0, %v1326_v0 }
 0x241   : > { %v1261_v59 = vpop.eup %1260  ;;  %653 = vst.msk [vmem:[%s1486_s30 + $0x28] sm:$0xff] %vm559_vm2, %v645_v58  ;;  %v658_v60 = vpack.c.bf16 %v645_v58, %v644_v51 }
 0x242   : > { %v647_v61 = vmul.f32 %v1261_v59, %v1469_v29 }
 0x243   : > { %1166 = vmatmul.mubr.msk.bf16.vlgmr.msra.gmra.mrb[12].mxu0 %vm559_vm2, %v658_v60 }
 0x244   : > { %655 = vst.msk [vmem:[%s1486_s30 + $0x38] sm:$0xff] %vm559_vm2, %v647_v61  ;;  %v659_v62 = vpack.c.bf16 %v647_v61, %v646_v57 }
 0x247   : > { %1172 = vmatmul.mubr.msk.bf16.vlgmr.msra.gmra.mrb[12].mxu1 %vm559_vm2, %v659_v62 }
 0x248   : > { %1275 = shalt.err (!%p1272_p3)
}
 0x249   : > { %s1276_s16 = scalar_lea.hbm %s1520_s11, 1024  ;;  %s1280_s25 = scalar_lea.hbm %s1594_s5, 2048 }
 0x24a   : > { %p1277_p4 = scmp.ne.s32.totalorder %s1520_s11, %s1276_s16  ;;  %p1281_p9 = scmp.lt.u32.totalorder %s1520_s11, %s1594_s5 }
 0x24b   : > { %p1282_p10 = scmp.lt.u32.totalorder %s1280_s25, %s1276_s16  ;;  %p1284_p12 = scmp.lt.u32.totalorder %s1276_s16, %s1520_s11 }
 0x24c   : > { %p1278_p7 = pnand %p1277_p4, %p1399_p5 }
 0x24d   : > { %p1283_p11 = por %p1282_p10, %p1281_p9 }
 0x24e   : > { %p1279_p8 = pneg %p1278_p7 }
 0x24f   : > { %p1285_p13 = por %p1284_p12, %p1283_p11 }
 0x251   : > { %p1286_p0 = pnand %p1285_p13, %p1279_p8 }
 0x253   : > { %1289 = shalt.err (!%p1286_p0)
}
 0x254   : > { %s1329_s7 = smov 128   ;;  %s1330_s9 = smov 8   ;;  %vm900_vm3 = vcmask 257024  }
 0x255   : > { %1175 = dma.vmem_to_hbm [thread:$0]  (%p1399_p5), %s1522_s8, 1024, %s1520_s11, %s1526_s12, %s1329_s7, %s1329_s7, %s1330_s9  }
 0x256   : > { %s1554_s22 = scalar_lea.vmem %s1593_s4, %s1420_s6 }
 0x30e   : > { %v711_v0 = vpop.f32.mrb[8].mxu0 }
 0x30f   : > { %v1102_v63 = vpack.c.bf16 %v711_v0, %v711_v0  ;;  %v1155_v1 = vpop.f32.mrb[9].mxu0 }
 0x310   : > { %v714_v2 = vpop.f32.mrb[10].mxu0 }
 0x311   : > { %901 = vst.msk [vmem:[%s1554_s22] sm:$0xf] %vm900_vm3, %v1102_v63  ;;  %v1103_v3 = vpack.c.bf16 %v714_v2, %v714_v2  ;;  %v1156_v4 = vpop.f32.mrb[11].mxu0 }
 0x312   : > { %v761_v5 = vpop.f32.mrb[8].mxu1 }
 0x313   : > { %902 = vst.msk [vmem:[%s1554_s22 + $0x4] sm:$0xf] %vm900_vm3, %v1103_v3  ;;  %v1104_v6 = vpack.c.bf16 %v761_v5, %v761_v5  ;;  %v1161_v7 = vpop.f32.mrb[9].mxu1 }
 0x314   : > { %v764_v8 = vpop.f32.mrb[10].mxu1 }
 0x315   : > { %903 = vst.msk [vmem:[%s1554_s22 + $0x8] sm:$0xf] %vm900_vm3, %v1104_v6  ;;  %v1105_v9 = vpack.c.bf16 %v764_v8, %v764_v8  ;;  %v1162_v10 = vpop.f32.mrb[11].mxu1 }
 0x316   : > { %v811_v11 = vpop.f32.mrb[12].mxu0 }
 0x317   : > { %904 = vst.msk [vmem:[%s1554_s22 + $0xc] sm:$0xf] %vm900_vm3, %v1105_v9  ;;  %v1106_v12 = vpack.c.bf16 %v811_v11, %v811_v11  ;;  %v1167_v13 = vpop.f32.mrb[13].mxu0 }
 0x318   : > { %v814_v14 = vpop.f32.mrb[14].mxu0 }
 0x319   : > { %905 = vst.msk [vmem:[%s1554_s22 + $0x10] sm:$0xf] %vm900_vm3, %v1106_v12  ;;  %v1107_v15 = vpack.c.bf16 %v814_v14, %v814_v14  ;;  %v1168_v16 = vpop.f32.mrb[15].mxu0 }
 0x31a   : > { %v861_v17 = vpop.f32.mrb[12].mxu1 }
 0x31b   : > { %906 = vst.msk [vmem:[%s1554_s22 + $0x14] sm:$0xf] %vm900_vm3, %v1107_v15  ;;  %v1108_v18 = vpack.c.bf16 %v861_v17, %v861_v17  ;;  %v1173_v19 = vpop.f32.mrb[13].mxu1 }
 0x31c   : > { %v864_v20 = vpop.f32.mrb[14].mxu1 }
 0x31d   : > { %907 = vst.msk [vmem:[%s1554_s22 + $0x18] sm:$0xf] %vm900_vm3, %v1108_v18  ;;  %v1109_v21 = vpack.c.bf16 %v864_v20, %v864_v20  ;;  %v1174_v22 = vpop.f32.mrb[15].mxu1 }
 0x31f   : > { %908 = vst.msk [vmem:[%s1554_s22 + $0x1c] sm:$0xf] %vm900_vm3, %v1109_v21 }
 0x320 PF: > { %p1181_p5 = scmp.ge.s32.totalorder %s1324_s21, 2  ;;  %s954_s28 = sand.u32 1, %s1312_s18  }
 0x321   : > { %s955_s6 = scalar_lea.sflag [#allocation3], %s954_s28 }
 0x322   : > { %p1178_p1 = pnand %p1181_p5, %p1403_p6 }
 0x324   : > { %1307 = dma.done.wait (!%p1178_p1), %s955_s6, 1024  }
 0x325   : > { %1309 = vsyncadd (!%p1178_p1), %s955_s6, 4294966272  ;;  %p16_p2 = scmp.ge.s32.totalorder %s1386_s24, 4   ;;  %s1597_s18 = smov %s1316_s19 }
 0x326   : > { %s1598_s19 = smov %s1320_s20  ;;  %s1599_s20 = smov %s1397_s27 }
 0x327   : > { %s1600_s21 = smov %s1386_s24  ;;  %18 = sbr.rel (!%p16_p2) target bundleno = 3 (0x3), region = 92 }
 0x32e   :  { %960 = vsyncpa [#allocation3], 1 }
 0x32f   :  { %962 = vsyncpa [#allocation3 + $0x1], 1 }

// kernel: _lambda_.9
= control target key start
LH: loop header
LB: loop body
LE: loop exit
PB: predicated region body
PF: predicated region fallthrough
CT: control target
= control target key end

     0   :  { %s1846_s0 = inlined_call_operand.vmem [shape: bf16[32,128], index: 0, kind: input, shape index: {}]   ;;  %s1847_s1 = inlined_call_operand.vmem [shape: f32[32,128], index: 1, kind: input, shape index: {}]   ;;  %s1848_s2 = inlined_call_operand.vmem [shape: bf16[128,128], index: 2, kind: input, shape index: {}]   ;;  %s1849_s3 = inlined_call_operand.vmem [shape: f32[1,128], index: 3, kind: input, shape index: {}]   ;;  %s1850_s4 = inlined_call_operand.vmem [shape: f32[1,128], index: 4, kind: input, shape index: {}]   ;;  %s1851_s5 = inlined_call_operand.vmem [shape: f32[1,128], index: 5, kind: input, shape index: {}]   ;;  %s1852_s6 = inlined_call_operand.vmem [shape: bf16[128,256], index: 6, kind: input, shape index: {}]   ;;  %s1853_s7 = inlined_call_operand.vmem [shape: f32[1,256], index: 7, kind: input, shape index: {}]   ;;  %s1854_s8 = inlined_call_operand.vmem [shape: bf16[256,128], index: 8, kind: input, shape index: {}]   ;;  %s1855_s9 = inlined_call_operand.vmem [shape: f32[1,128], index: 9, kind: input, shape index: {}]   ;;  %s1856_s10 = inlined_call_operand.vmem [shape: f32[1,128], index: 10, kind: input, shape index: {}]   ;;  %s1857_s11 = inlined_call_operand.vmem [shape: f32[1,128], index: 11, kind: input, shape index: {}]   ;;  %s1858_s12 = inlined_call_operand.vmem [shape: f32[1,128], index: 12, kind: input, shape index: {}]   ;;  %s1859_s13 = inlined_call_operand.vmem [shape: f32[1,128], index: 13, kind: input, shape index: {}]   ;;  %s1860_s14 = inlined_call_operand.hbm [shape: f32[32,128], index: 14, kind: output, shape index: {}]  }
   0x1   :  { %1865 = sst [smem:[#allocation9_spill]] %s1846_s0 }
   0x2   :  { %19 = vsyncpa [#allocation3], 0 }
   0x3   :  { %21 = vsyncpa [#allocation3 + $0x1], 0  ;;  %s1562_s29 = smov 0   ;;  %s1564_s30 = smov 0  }
   0x4   :  { %s1566_s15 = smov 0   ;;  %s1568_s16 = smov 0  }
   0x5 LB: > { %1866 = sst [smem:[#allocation5_spill]] %s1475_s15  ;;  %s1583_s17 = sadd.s32 4294967295, %s1479_s16   ;;  %s1479_s16 = sphi %s1568_s16, %s1874_s16   ;;  %s1475_s15 = sphi %s1566_s15, %s1876_s15   ;;  %s1471_s30 = sphi %s1564_s30, %s1878_s30   ;;  %s1467_s29 = sphi %s1562_s29, %s1877_s29  }
   0x6   : > { %s1193_s18 = sadd.s32 4294967294, %s1479_s16   ;;  %s1587_s19 = sadd.s32 1, %s1479_s16  }
   0x7   : > { %1867 = sst [smem:[#allocation6_spill]] %s1587_s19  ;;  %s338_s20 = sadd.s32 1, %s1475_s15 }
   0x8   : > { %s335_s21 = ssub.s32 %s1479_s16, %s1587_s19  ;;  %p348_p0 = scmp.ne.s32.totalorder %s1475_s15, %s1471_s30 }
   0x9   : > { %p336_p1 = scmp.eq.s32.totalorder %s335_s21, 0  ;;  %p349_p2 = scmp.eq.s32.totalorder %s1583_s17, 1 }
   0xa   : > { %p354_p3 = scmp.ne.s32.totalorder %s1471_s30, %s1467_s29  ;;  %p355_p4 = scmp.eq.s32.totalorder %s1193_s18, 1 }
   0xb   : > { %s1598_s22 = scalar_select %p336_p1, %s1475_s15, %s338_s20  }
   0xc   : > { %p1600_p5 = por %p349_p2, %p348_p0  ;;  %p1604_p6 = por %p355_p4, %p354_p3 }
   0xd   : > { %1868 = sst [smem:[#allocation7_spill]] %s1598_s22  ;;  %p1196_p7 = scmp.ge.s32.totalorder %s1479_s16, 1 }
   0xe   : > { %s1870_s24 = scalar_select %p1604_p6, 1, 0 }
   0xf   : > { %p427_p8 = scmp.lt.s32.totalorder %s1479_s16, 3 }
  0x10   : > { %1871 = sst [smem:[#allocation8_spill]] %s1870_s24 }
  0x11   : > { %p428_p9 = pnand %p1196_p7, %p427_p8 }
  0x12   : > { %v1352_v0 = vld [vmem:[%s1848_s2] sm:$0xff] (!%p428_p9)   ;;  %v1481_v1 = vmov (!%p428_p9), 0.0   ;;  %v1353_v2 = vld [vmem:[%s1848_s2 + $0x8] sm:$0xff] (!%p428_p9)   ;;  %vm1482_vm0 = vmmov (!%p428_p9), 0   ;;  %s1198_s18 = sshll.u32 (!%p428_p9), %s1583_s17, 1  ;;  %v1354_v3 = vld [vmem:[%s1848_s2 + $0x10] sm:$0xff] (!%p428_p9)  }
  0x13   : > { %431 = sbr.rel (%p428_p9) target bundleno = 1979 (0x7bb), region = 76  ;;  %1288 = vmatprep.subr.bf16.mxu0 (!%p428_p9), %v1481_v1  ;;  %1304 = vmatprep.mubr.msk.bf16.mxu0 (!%p428_p9), %vm1482_vm0, %v1481_v1  ;;  %p479_p10 = scmp.lt.s32.totalorder (!%p428_p9), %s1198_s18, 3  ;;  %v1355_v4 = vld [vmem:[%s1848_s2 + $0x18] sm:$0xff] (!%p428_p9)   ;;  %v1356_v5 = vld [vmem:[%s1848_s2 + $0x20] sm:$0xff] (!%p428_p9)   ;;  %v1357_v6 = vld [vmem:[%s1848_s2 + $0x28] sm:$0xff] (!%p428_p9)  }
  0x14   : > { %1289 = vmatpush3.bf16.msra.mxu0 (!%p428_p9), %v1352_v0  ;;  %s1872_s0 = sld [smem:[#allocation9_spill]] (!%p428_p9)  ;;  %v1358_v7 = vld [vmem:[%s1848_s2 + $0x30] sm:$0xff] (!%p428_p9)   ;;  %v1359_v8 = vld [vmem:[%s1848_s2 + $0x38] sm:$0xff] (!%p428_p9)   ;;  %v1202_v10 = vld [vmem:[%s1849_s3] ss:$0 sm:$0xff] (!%p428_p9)  ;;  %s475_s27 = sand.u32 (!%p428_p9), 1, %s1471_s30  }
  0x15   : > { %1290 = vmatprep.subr.bf16.mxu0 (!%p428_p9), %v1481_v1  ;;  %v1212_v36 = vld [vmem:[%s1850_s4] ss:$0 sm:$0xff] (!%p428_p9)  ;;  %v1361_v47 = vld [vmem:[%s1852_s6 + $0x4] ss:$8 sps:$4 sm:$0xff] (!%p428_p9)   ;;  %v1364_v49 = vld [vmem:[%s1852_s6 + $0x14] ss:$8 sps:$4 sm:$0xff] (!%p428_p9)  }
  0x16   : > { %v1213_v38 = vld [vmem:[%s1851_s5] ss:$0 sm:$0xff] (!%p428_p9)  ;;  %808 = vmatprep.subr.bf16.mxu1 (!%p428_p9), %v1361_v47  ;;  %v1366_v58 = vld [vmem:[%s1852_s6 + $0x10] ss:$8 sps:$4 sm:$0xff] (!%p428_p9)   ;;  %v1367_v59 = vld [vmem:[%s1852_s6 + $0x24] ss:$8 sps:$4 sm:$0xff] (!%p428_p9)  }
  0x17   : > { %v1363_v48 = vld [vmem:[%s1852_s6] ss:$8 sps:$4 sm:$0xff] (!%p428_p9)   ;;  %v1370_v61 = vld [vmem:[%s1852_s6 + $0x34] ss:$8 sps:$4 sm:$0xff] (!%p428_p9)   ;;  %v1372_v62 = vld [vmem:[%s1852_s6 + $0x30] ss:$8 sps:$4 sm:$0xff] (!%p428_p9)  }
  0x18   : > { %1291 = vmatpush3.bf16.msra.mxu0 (!%p428_p9), %v1353_v2  ;;  %809 = vmatpush1.bf16.msra.mxu1 (!%p428_p9), %v1363_v48  ;;  %v1369_v60 = vld [vmem:[%s1852_s6 + $0x20] ss:$8 sps:$4 sm:$0xff] (!%p428_p9)   ;;  %v1373_v63 = vld [vmem:[%s1852_s6 + $0x44] ss:$8 sps:$4 sm:$0xff] (!%p428_p9)   ;;  %v1483_v2 = vmov (!%p428_p9), 0   ;;  %s1197_s28 = sshll.u32 (!%p428_p9), %s475_s27, 4 }
  0x19   : > { %1292 = vmatprep.subr.bf16.mxu0 (!%p428_p9), %v1481_v1  ;;  %810 = vmatprep.subr.bf16.mxu1 (!%p428_p9), %v1364_v49  ;;  %v1375_v0 = vld [vmem:[%s1852_s6 + $0x40] ss:$8 sps:$4 sm:$0xff] (!%p428_p9)   ;;  %s477_s21 = scalar_lea.vmem (!%p428_p9), [#allocation2], %s1197_s28  ;;  %s1484_s19 = smov (!%p428_p9), [#allocation2]  }
  0x1a   : > { %s1880_s18 = smov (!%p479_p10, %s1198_s18), 3  ;;  %840 = vmatprep.mubr.bf16.mxu1 %v1483_v2  ;;  %s1421_s26 = sshll.u32 %s1484_s19, 4  ;;  %s1422_s26 = int_to_ptr.vmem [resolvable:$false] %s1421_s26 }
  0x1b   : > { %s1199_s25 = sshll.u32 %s1880_s18, 2  ;;  %s1201_s24 = sshll.u32 %s1880_s18, 3 }
  0x1c   : > { %s482_s15 = scalar_lea.vmem %s1872_s0, %s1199_s25  ;;  %1293 = vmatpush3.bf16.msra.mxu0 %v1354_v3  ;;  %s488_s20 = scalar_lea.vmem %s1847_s1, %s1201_s24  ;;  %811 = vmatpush1.bf16.msra.mxu1 %v1366_v58  ;;  %v1378_v3 = vld [vmem:[%s1852_s6 + $0x50] ss:$8 sps:$4 sm:$0xff]  }
  0x1d   : > { %1294 = vmatprep.subr.bf16.mxu0 %v1481_v1  ;;  %v1360_v9 = vld [vmem:[%s482_s15] sm:$0xff]   ;;  %v493_v19 = vld [vmem:[%s488_s20 + $0x8] sm:$0xff]  ;;  %812 = vmatprep.subr.bf16.mxu1 %v1367_v59  ;;  %s1119_s0 = sshll.u32 %s477_s21, 4  ;;  %s1423_s24 = scalar_lea.vmem %s1422_s26, 512  ;;  %s1802_s0 = int_to_ptr.vmem [resolvable:$true] %s1119_s0 }
  0x1e   : > { %v492_v12 = vld [vmem:[%s488_s20] sm:$0xff]  ;;  %s1256_s20 = sshll.u32 %s1583_s17, 8  ;;  %s1805_s17 = scalar_lea.sflag [#allocation3], %s475_s27 }
  0x1f   : > { %s1800_s22 = scalar_lea.hbm %s1860_s14, %s1256_s20  ;;  %s1417_s25 = scalar_lea.vmem %s1802_s0, 256 }
  0x20   : > { %1295 = vmatpush3.bf16.msra.mxu0 %v1355_v4  ;;  %813 = vmatpush1.bf16.msra.mxu1 %v1369_v60  ;;  %v1379_v4 = vld [vmem:[%s1852_s6 + $0x64] ss:$8 sps:$4 sm:$0xff]   ;;  %p1418_p11 = scmp.ne.s32.totalorder %s1802_s0, %s1417_s25  ;;  %p1424_p0 = scmp.lt.s32.totalorder %s1802_s0, %s1422_s26 }
  0x21   : > { %1296 = vmatprep.subr.bf16.mxu0 %v1481_v1  ;;  %814 = vmatprep.subr.bf16.mxu1 %v1370_v61  ;;  %p1425_p1 = scmp.lt.s32.totalorder %s1423_s24, %s1417_s25 }
  0x22   : > { %p1419_p12 = pnand %p1418_p11, %p1600_p5 }
  0x23   : > { %p1426_p2 = por %p1425_p1, %p1424_p0 }
  0x24   : > { %1297 = vmatpush3.bf16.msra.mxu0 %v1356_v5  ;;  %815 = vmatpush1.bf16.msra.mxu1 %v1372_v62  ;;  %v1381_v5 = vld [vmem:[%s1852_s6 + $0x60] ss:$8 sps:$4 sm:$0xff]   ;;  %p1420_p13 = pneg %p1419_p12 }
  0x25   : > { %1298 = vmatprep.subr.bf16.mxu0 %v1481_v1  ;;  %816 = vmatprep.subr.bf16.mxu1 %v1373_v63  ;;  %v1232_v63 = vld [vmem:[%s1855_s9] ss:$0 sm:$0xff] }
  0x26   : > { %p1427_p3 = pnand %p1426_p2, %p1420_p13 }
  0x28   : > { %1299 = vmatpush3.bf16.msra.mxu0 %v1357_v6  ;;  %817 = vmatpush1.bf16.msra.mxu1 %v1375_v0  ;;  %v1382_v6 = vld [vmem:[%s1852_s6 + $0x74] ss:$8 sps:$4 sm:$0xff]  }
  0x29   : > { %1300 = vmatprep.subr.bf16.mxu0 %v1481_v1 }
  0x2c   : > { %1301 = vmatpush3.bf16.msra.mxu0 %v1358_v7  ;;  %v1384_v7 = vld [vmem:[%s1852_s6 + $0x70] ss:$8 sps:$4 sm:$0xff]  }
  0x2d   : > { %1302 = vmatprep.subr.bf16.mxu0 %v1481_v1  ;;  %v1376_v1 = vld [vmem:[%s1852_s6 + $0x54] ss:$8 sps:$4 sm:$0xff]  }
  0x2e   : > { %818 = vmatprep.subr.bf16.mxu1 %v1376_v1 }
  0x2f   : > { %819 = vmatpush1.bf16.msra.mxu1 %v1378_v3 }
  0x30   : > { %1303 = vmatpush3.bf16.msra.mxu0 %v1359_v8  ;;  %820 = vmatprep.subr.bf16.mxu1 %v1379_v4  ;;  %v1385_v8 = vld [vmem:[%s1854_s8 + $0x40] sm:$0xff]  }
  0x31   : > { %1266 = vmatprep.subr.bf16.mxu0 %v1385_v8 }
  0x33   : > { %1305 = vmatmul.mubr.bf16.vlgmr.msra.gmra.mrb[0].mxu0 %v1360_v9  ;;  %821 = vmatpush1.bf16.msra.mxu1 %v1381_v5  ;;  %v1386_v9 = vld [vmem:[%s1854_s8] sm:$0xff]  }
  0x34   : > { %822 = vmatprep.subr.bf16.mxu1 %v1382_v6  ;;  %1267 = vmatpush3.bf16.msra.mxu0 %v1386_v9 }
  0x37   : > { %823 = vmatpush1.bf16.msra.mxu1 %v1384_v7 }
 0x106   : > { %v607_v11 = vpop.f32.mrb[0].mxu0 }
 0x107   : > { %v608_v13 = vadd.f32 %v1202_v10, %v607_v11  ;;  %v1306_v14 = vpop.f32.mrb[1].mxu0  ;;  %v1388_v11 = vld [vmem:[%s1854_s8 + $0x8] sm:$0xff]  }
 0x108   : > { %v610_v15 = vpop.f32.mrb[2].mxu0  ;;  %v1391_v14 = vld [vmem:[%s1854_s8 + $0x58] sm:$0xff]  }
 0x109   : > { %v611_v16 = vadd.f32 %v1202_v10, %v610_v15  ;;  %v1307_v17 = vpop.f32.mrb[3].mxu0  ;;  %v614_v18 = vadd.f32 %v608_v13, %v492_v12  ;;  %v1387_v10 = vld [vmem:[%s1854_s8 + $0x48] sm:$0xff]   ;;  %v1390_v13 = vld [vmem:[%s1854_s8 + $0x10] sm:$0xff]   ;;  %v1392_v15 = vld [vmem:[%s1854_s8 + $0x18] sm:$0xff]  }
 0x10a   : > { %1268 = vmatprep.subr.bf16.mxu0 %v1387_v10  ;;  %v1394_v17 = vld [vmem:[%s1854_s8 + $0x20] sm:$0xff]  }
 0x10b   : > { %618 = vadd.xlane.f32.xlu0 %v614_v18  ;;  %v615_v20 = vadd.f32 %v611_v16, %v493_v19  ;;  %1269 = vmatpush3.bf16.msra.mxu0 %v1388_v11  ;;  %v1393_v16 = vld [vmem:[%s1854_s8 + $0x60] sm:$0xff]  }
 0x10f   : > { %620 = vadd.xlane.f32.xlu0 %v615_v20 }
 0x198   : > { %v619_v21 = vpop.xlane.xlu0 %618 }
 0x199   : > { %v623_v22 = vmul.f32 0.0078125, %v619_v21 }
 0x19b   : > { %v625_v23 = vsub.f32 %v614_v18, %v623_v22  ;;  %v1395_v18 = vld [vmem:[%s1854_s8 + $0x68] sm:$0xff]  }
 0x19c   : > { %v621_v24 = vpop.xlane.xlu0 %620 }
 0x19d   : > { %v624_v25 = vmul.f32 0.0078125, %v621_v24  ;;  %v627_v26 = vmul.f32 %v625_v23, %v625_v23 }
 0x19f   : > { %v626_v27 = vsub.f32 %v615_v20, %v624_v25  ;;  %629 = vadd.xlane.f32.xlu1 %v627_v26 }
 0x1a1   : > { %v628_v28 = vmul.f32 %v626_v27, %v626_v27 }
 0x1a3   : > { %631 = vadd.xlane.f32.xlu1 %v628_v28 }
 0x22c   : > { %v630_v29 = vpop.xlane.xlu1 %629 }
 0x22d   : > { %v633_v30 = vmul.f32 0.0078125, %v630_v29 }
 0x22f   : > { %v635_v31 = vadd.f32 1e-06, %v633_v30 }
 0x230   : > { %v632_v32 = vpop.xlane.xlu1 %631 }
 0x231   : > { %1401 = vrsqrt.f32 %v635_v31  ;;  %v634_v33 = vmul.f32 0.0078125, %v632_v32  ;;  %v1750_v31 = vld [vmem:[%s1859_s13] ss:$0 sm:$0xff] }
 0x233   : > { %v636_v34 = vadd.f32 1e-06, %v634_v33 }
 0x235   : > { %1403 = vrsqrt.f32 %v636_v34 }
 0x23b   : > { %v1402_v35 = vpop.eup %1401 }
 0x23c   : > { %v639_v37 = vmul.f32 %v1402_v35, %v625_v23 }
 0x23e   : > { %v647_v39 = vmul.f32 %v1212_v36, %v639_v37  ;;  %v1397_v37 = vld [vmem:[%s1854_s8 + $0x70] sm:$0xff]  }
 0x23f   : > { %v1404_v40 = vpop.eup %1403 }
 0x240   : > { %v655_v41 = vadd.f32 %v1213_v38, %v647_v39  ;;  %v640_v42 = vmul.f32 %v1404_v40, %v626_v27  ;;  %v1743_v27 = vld [vmem:[%s1858_s12] ss:$0 sm:$0xff]  ;;  %v1399_v39 = vld [vmem:[%s1854_s8 + $0x78] sm:$0xff]  }
 0x241   : > { %v1400_v40 = vld [vmem:[%s1854_s8 + $0x38] sm:$0xff]  }
 0x242   : > { %v657_v43 = vadd.f32 %v655_v41, %v492_v12  ;;  %v648_v44 = vmul.f32 %v1212_v36, %v640_v42  ;;  %v1389_v12 = vld [vmem:[%s1854_s8 + $0x50] sm:$0xff]   ;;  %v1396_v36 = vld [vmem:[%s1854_s8 + $0x28] sm:$0xff]   ;;  %v718_v41 = vlaneseq }
 0x243   : > { %1270 = vmatprep.subr.bf16.mxu0 %v1389_v12 }
 0x244   : > { %661 = vadd.xlane.f32.xlu0 %v657_v43  ;;  %v656_v45 = vadd.f32 %v1213_v38, %v648_v44  ;;  %1271 = vmatpush3.bf16.msra.mxu0 %v1390_v13  ;;  %v1398_v38 = vld [vmem:[%s1854_s8 + $0x30] sm:$0xff]   ;;  %v719_v42 = vshrl.u32 %v718_v41, 7  ;;  %v716_v44 = vld [vmem:[%s1853_s7] sm:$0x3] }
 0x245   : > { %1272 = vmatprep.subr.bf16.mxu0 %v1391_v14 }
 0x246   : > { %v658_v46 = vadd.f32 %v656_v45, %v493_v19  ;;  %v724_v45 = vsub.s32 1, %v719_v42 }
 0x248   : > { %663 = vadd.xlane.f32.xlu1 %v658_v46  ;;  %1273 = vmatpush3.bf16.msra.mxu0 %v1392_v15  ;;  %v725_v47 = vrot.slane %v716_v44, %v724_v45 }
 0x249   : > { %1274 = vmatprep.subr.bf16.mxu0 %v1393_v16 }
 0x24c   : > { %1275 = vmatpush3.bf16.msra.mxu0 %v1394_v17 }
 0x24d   : > { %1276 = vmatprep.subr.bf16.mxu0 %v1395_v18 }
 0x250   : > { %1277 = vmatpush3.bf16.msra.mxu0 %v1396_v36 }
 0x251   : > { %1278 = vmatprep.subr.bf16.mxu0 %v1397_v37 }
 0x254   : > { %1279 = vmatpush3.bf16.msra.mxu0 %v1398_v38 }
 0x255   : > { %1280 = vmatprep.subr.bf16.mxu0 %v1399_v39 }
 0x258   : > { %1281 = vmatpush3.bf16.msra.mxu0 %v1400_v40 }
 0x2d1   : > { %v662_v50 = vpop.xlane.xlu0 %661 }
 0x2d2   : > { %v665_v51 = vmul.f32 0.0078125, %v662_v50 }
 0x2d4   : > { %v1659_v52 = vsub.f32 %v657_v43, %v665_v51  ;;  %v720_v43 = vsub.s32 0, %v719_v42 }
 0x2d5   : > { %v664_v53 = vpop.xlane.xlu1 %663 }
 0x2d6   : > { %v666_v54 = vmul.f32 0.0078125, %v664_v53  ;;  %v669_v55 = vmul.f32 %v1659_v52, %v1659_v52 }
 0x2d8   : > { %v1663_v56 = vsub.f32 %v658_v46, %v666_v54  ;;  %671 = vadd.xlane.f32.xlu0 %v669_v55  ;;  %v721_v46 = vrot.slane %v716_v44, %v720_v43 }
 0x2da   : > { %v670_v57 = vmul.f32 %v1663_v56, %v1663_v56 }
 0x2dc   : > { %673 = vadd.xlane.f32.xlu1 %v670_v57 }
 0x365   : > { %v672_v19 = vpop.xlane.xlu0 %671 }
 0x366   : > { %v675_v20 = vmul.f32 0.0078125, %v672_v19 }
 0x368   : > { %v677_v21 = vadd.f32 1e-06, %v675_v20 }
 0x369   : > { %v674_v22 = vpop.xlane.xlu1 %673 }
 0x36a   : > { %1405 = vrsqrt.f32 %v677_v21  ;;  %v676_v23 = vmul.f32 0.0078125, %v674_v22 }
 0x36c   : > { %v678_v24 = vadd.f32 1e-06, %v676_v23 }
 0x36e   : > { %1407 = vrsqrt.f32 %v678_v24  ;;  %v1249_v24 = vld [vmem:[%s1856_s10] ss:$0 sm:$0xff] }
 0x374   : > { %v1406_v25 = vpop.eup %1405 }
 0x375   : > { %v681_v26 = vmul.f32 %v1406_v25, %v1659_v52 }
 0x377   : > { %v689_v30 = vmul.f32 %v1743_v27, %v681_v26 }
 0x378   : > { %v1408_v28 = vpop.eup %1407 }
 0x379   : > { %v682_v29 = vmul.f32 %v1408_v28, %v1663_v56  ;;  %v1754_v33 = vadd.f32 %v1750_v31, %v689_v30  ;;  %v1250_v28 = vld [vmem:[%s1857_s11] ss:$0 sm:$0xff] }
 0x37b   : > { %v690_v32 = vmul.f32 %v1743_v27, %v682_v29 }
 0x37d   : > { %v1757_v34 = vadd.f32 %v1750_v31, %v690_v32 }
 0x37f   : > { %v699_v35 = vpack.c.bf16 %v1757_v34, %v1754_v33 }
 0x381   : > { %841 = vmatmul.mubr.bf16.vlgmr.msra.gmra.mrb[0].mxu1 %v699_v35 }
 0x454   : > { %v842_v48 = vpop.f32.mrb[0].mxu1 }
 0x455   : > { %v843_v49 = vadd.f32 %v842_v48, %v721_v46  ;;  %v844_v50 = vpop.f32.mrb[1].mxu1 }
 0x456   : > { %v845_v51 = vadd.f32 %v844_v50, %v725_v47  ;;  %v846_v52 = vpop.f32.mrb[2].mxu1 }
 0x457   : > { %v847_v53 = vadd.f32 %v846_v52, %v721_v46  ;;  %v848_v54 = vpop.f32.mrb[3].mxu1  ;;  %v851_v56 = vmax.f32 %v843_v49, 0.0 }
 0x458   : > { %v849_v55 = vadd.f32 %v848_v54, %v725_v47  ;;  %v852_v58 = vmax.f32 %v845_v51, 0.0 }
 0x459   : > { %v853_v57 = vmax.f32 %v847_v53, 0.0 }
 0x45a   : > { %v854_v59 = vmax.f32 %v849_v55, 0.0 }
 0x45b   : > { %v855_v60 = vpack.c.bf16 %v853_v57, %v851_v56 }
 0x45c   : > { %v856_v61 = vpack.c.bf16 %v854_v59, %v852_v58 }
 0x45e   : > { %1024 = vmatprep.mubr.bf16.mxu0 %v856_v61 }
 0x45f   : > { %1025 = vmatmul.mubr.bf16.vlgmr.msra.gmra.mrb[4].mxu0 %v855_v60 }
 0x532   : > { %v1282_v62 = vpop.f32.mrb[4].mxu0 }
 0x533   : > { %v1283_v0 = vpop.f32.mrb[5].mxu0 }
 0x534   : > { %v1284_v1 = vadd.f32 %v1283_v0, %v1282_v62  ;;  %v1285_v2 = vpop.f32.mrb[6].mxu0 }
 0x535   : > { %v1286_v3 = vpop.f32.mrb[7].mxu0 }
 0x536   : > { %v1027_v4 = vadd.f32 %v1284_v1, %v1232_v63  ;;  %v1287_v5 = vadd.f32 %v1286_v3, %v1285_v2 }
 0x538   : > { %v1030_v6 = vadd.f32 %v1287_v5, %v1232_v63  ;;  %v1033_v7 = vadd.f32 %v1027_v4, %v1754_v33 }
 0x53a   : > { %1037 = vadd.xlane.f32.xlu0 %v1033_v7  ;;  %v1034_v8 = vadd.f32 %v1030_v6, %v1757_v34 }
 0x53c   : > { %1039 = vadd.xlane.f32.xlu1 %v1034_v8 }
 0x5c7   : > { %v1038_v9 = vpop.xlane.xlu0 %1037 }
 0x5c8   : > { %v1041_v10 = vmul.f32 0.0078125, %v1038_v9 }
 0x5c9   : > { %v1040_v11 = vpop.xlane.xlu1 %1039 }
 0x5ca   : > { %v1043_v12 = vsub.f32 %v1033_v7, %v1041_v10  ;;  %v1042_v13 = vmul.f32 0.0078125, %v1040_v11 }
 0x5cc   : > { %v1044_v14 = vsub.f32 %v1034_v8, %v1042_v13  ;;  %v1045_v15 = vmul.f32 %v1043_v12, %v1043_v12 }
 0x5ce   : > { %1047 = vadd.xlane.f32.xlu0 %v1045_v15  ;;  %v1046_v16 = vmul.f32 %v1044_v14, %v1044_v14 }
 0x5d0   : > { %1049 = vadd.xlane.f32.xlu1 %v1046_v16 }
 0x65b   : > { %v1048_v17 = vpop.xlane.xlu0 %1047 }
 0x65c   : > { %v1051_v18 = vmul.f32 0.0078125, %v1048_v17 }
 0x65d   : > { %v1050_v19 = vpop.xlane.xlu1 %1049 }
 0x65e   : > { %v1053_v20 = vadd.f32 1e-06, %v1051_v18  ;;  %v1052_v21 = vmul.f32 0.0078125, %v1050_v19 }
 0x660   : > { %1409 = vrsqrt.f32 %v1053_v20  ;;  %v1054_v22 = vadd.f32 1e-06, %v1052_v21 }
 0x662   : > { %1411 = vrsqrt.f32 %v1054_v22 }
 0x66a   : > { %v1410_v23 = vpop.eup %1409 }
 0x66b   : > { %v1057_v25 = vmul.f32 %v1410_v23, %v1043_v12 }
 0x66c   : > { %v1412_v26 = vpop.eup %1411 }
 0x66d   : > { %v1065_v29 = vmul.f32 %v1249_v24, %v1057_v25  ;;  %v1058_v30 = vmul.f32 %v1412_v26, %v1044_v14 }
 0x66f   : > { %v1073_v32 = vadd.f32 %v1250_v28, %v1065_v29  ;;  %v1066_v35 = vmul.f32 %v1249_v24, %v1058_v30 }
 0x671   : > { %v1075_v36 = vadd.f32 %v1073_v32, %v1754_v33  ;;  %v1074_v37 = vadd.f32 %v1250_v28, %v1066_v35 }
 0x673   : > { %1077 = vadd.xlane.f32.xlu0 %v1075_v36  ;;  %v1076_v38 = vadd.f32 %v1074_v37, %v1757_v34 }
 0x675   : > { %1079 = vadd.xlane.f32.xlu1 %v1076_v38 }
 0x700   : > { %v1078_v39 = vpop.xlane.xlu0 %1077 }
 0x701   : > { %v1081_v40 = vmul.f32 0.0078125, %v1078_v39 }
 0x702   : > { %v1080_v41 = vpop.xlane.xlu1 %1079 }
 0x703   : > { %v1083_v42 = vsub.f32 %v1075_v36, %v1081_v40  ;;  %v1082_v43 = vmul.f32 0.0078125, %v1080_v41 }
 0x705   : > { %v1084_v44 = vsub.f32 %v1076_v38, %v1082_v43  ;;  %v1085_v45 = vmul.f32 %v1083_v42, %v1083_v42 }
 0x707   : > { %1087 = vadd.xlane.f32.xlu0 %v1085_v45  ;;  %v1086_v46 = vmul.f32 %v1084_v44, %v1084_v44 }
 0x709   : > { %1089 = vadd.xlane.f32.xlu1 %v1086_v46 }
 0x794   : > { %v1088_v47 = vpop.xlane.xlu0 %1087 }
 0x795   : > { %v1091_v48 = vmul.f32 0.0078125, %v1088_v47 }
 0x796   : > { %v1090_v33 = vpop.xlane.xlu1 %1089 }
 0x797   : > { %v1093_v49 = vadd.f32 1e-06, %v1091_v48  ;;  %v1092_v50 = vmul.f32 0.0078125, %v1090_v33 }
 0x799   : > { %1413 = vrsqrt.f32 %v1093_v49  ;;  %v1094_v34 = vadd.f32 1e-06, %v1092_v50 }
 0x79b   : > { %1415 = vrsqrt.f32 %v1094_v34 }
 0x7a3   : > { %v1414_v51 = vpop.eup %1413 }
 0x7a4   : > { %v1097_v52 = vmul.f32 %v1414_v51, %v1083_v42 }
 0x7a5   : > { %v1416_v53 = vpop.eup %1415 }
 0x7a6   : > { %v1099_v54 = vmul.f32 %v1743_v27, %v1097_v52  ;;  %v1098_v55 = vmul.f32 %v1416_v53, %v1084_v44 }
 0x7a8   : > { %v1100_v56 = vmul.f32 %v1743_v27, %v1098_v55  ;;  %v1101_v57 = vadd.f32 %v1750_v31, %v1099_v54 }
 0x7aa   : > { %v1102_v58 = vadd.f32 %v1750_v31, %v1100_v56  ;;  %1103 = vst [vmem:[%s477_s21] sm:$0xff] %v1101_v57 }
 0x7ac   : > { %1104 = vst [vmem:[%s477_s21 + $0x8] sm:$0xff] %v1102_v58 }
 0x7ad   : > { %1430 = shalt.err (!%p1427_p3)
}
 0x7ae   : > { %s1431_s27 = scalar_lea.hbm %s1800_s22, 256  ;;  %s1435_s21 = scalar_lea.hbm %s1860_s14, 512 }
 0x7af   : > { %p1432_p4 = scmp.ne.s32.totalorder %s1800_s22, %s1431_s27  ;;  %p1436_p9 = scmp.lt.u32.totalorder %s1800_s22, %s1860_s14 }
 0x7b0   : > { %p1437_p10 = scmp.lt.u32.totalorder %s1435_s21, %s1431_s27  ;;  %p1439_p12 = scmp.lt.u32.totalorder %s1431_s27, %s1800_s22 }
 0x7b1   : > { %p1433_p7 = pnand %p1432_p4, %p1600_p5 }
 0x7b2   : > { %p1438_p11 = por %p1437_p10, %p1436_p9 }
 0x7b3   : > { %p1434_p8 = pneg %p1433_p7 }
 0x7b4   : > { %p1440_p13 = por %p1439_p12, %p1438_p11 }
 0x7b6   : > { %p1441_p0 = pnand %p1440_p13, %p1434_p8 }
 0x7b8   : > { %1444 = shalt.err (!%p1441_p0)
}
 0x7b9   : > { %s1485_s25 = smov 128   ;;  %s1486_s19 = smov 8  }
 0x7ba   : > { %1308 = dma.vmem_to_hbm [thread:$0]  (%p1600_p5), %s1802_s0, 256, %s1800_s22, %s1805_s17, %s1485_s25, %s1485_s25, %s1486_s19  }
 0x7bb PF: > { %p1314_p1 = scmp.ge.s32.totalorder %s1479_s16, 2  ;;  %s1134_s24 = sand.u32 1, %s1467_s29  }
 0x7bc   : > { %s1135_s27 = scalar_lea.sflag [#allocation3], %s1134_s24 }
 0x7bd   : > { %p1311_p2 = pnand %p1314_p1, %p1604_p6 }
 0x7bf   : > { %1462 = dma.done.wait (!%p1311_p2), %s1135_s27, 256  }
 0x7c0   : > { %1464 = vsyncadd (!%p1311_p2), %s1135_s27, 4294967040  ;;  %s1874_s16 = sld [smem:[#allocation6_spill]]  ;;  %s1875_s28 = sld [smem:[#allocation5_spill]] }
 0x7c1   : > { %s1876_s15 = sld [smem:[#allocation7_spill]]  ;;  %s1877_s29 = smov %s1471_s30 }
 0x7c6   : > { %p24_p3 = scmp.ge.s32.totalorder %s1874_s16, 4   ;;  %s1878_s30 = smov %s1875_s28 }
 0x7c8   :  { %26 = sbr.rel (!%p24_p3) target bundleno = 5 (0x5), region = 114 }
 0x7cf   :  { %1140 = vsyncpa [#allocation3], 1 }
 0x7d0   :  { %1142 = vsyncpa [#allocation3 + $0x1], 1 }

// kernel: _lambda_.7
= control target key start
LH: loop header
LB: loop body
LE: loop exit
PB: predicated region body
PF: predicated region fallthrough
CT: control target
= control target key end

     0   :  { %s1980_s24 = smov 0   ;;  %s2299_s0 = inlined_call_operand.vmem [shape: bf16[32,128], index: 0, kind: input, shape index: {}]   ;;  %s2300_s1 = inlined_call_operand.vmem [shape: f32[32,128], index: 1, kind: input, shape index: {}]   ;;  %s2301_s2 = inlined_call_operand.vmem [shape: bf16[128,128], index: 2, kind: input, shape index: {}]   ;;  %s2302_s3 = inlined_call_operand.vmem [shape: f32[1,128], index: 3, kind: input, shape index: {}]   ;;  %s2303_s4 = inlined_call_operand.vmem [shape: f32[1,128], index: 4, kind: input, shape index: {}]   ;;  %s2304_s5 = inlined_call_operand.vmem [shape: f32[1,128], index: 5, kind: input, shape index: {}]   ;;  %s2305_s6 = inlined_call_operand.vmem [shape: bf16[128,256], index: 6, kind: input, shape index: {}]   ;;  %s2306_s7 = inlined_call_operand.vmem [shape: f32[1,256], index: 7, kind: input, shape index: {}]   ;;  %s2307_s8 = inlined_call_operand.vmem [shape: bf16[256,128], index: 8, kind: input, shape index: {}]   ;;  %s2308_s9 = inlined_call_operand.vmem [shape: f32[1,128], index: 9, kind: input, shape index: {}]   ;;  %s2309_s10 = inlined_call_operand.vmem [shape: f32[1,128], index: 10, kind: input, shape index: {}]   ;;  %s2310_s11 = inlined_call_operand.vmem [shape: f32[1,128], index: 11, kind: input, shape index: {}]   ;;  %s2311_s12 = inlined_call_operand.vmem [shape: f32[1,128], index: 12, kind: input, shape index: {}]   ;;  %s2312_s13 = inlined_call_operand.vmem [shape: f32[1,128], index: 13, kind: input, shape index: {}]   ;;  %s2313_s14 = inlined_call_operand.vmem [shape: bf16[128,384], index: 14, kind: input, shape index: {}]   ;;  %s2314_s15 = inlined_call_operand.vmem [shape: f32[1,384], index: 15, kind: input, shape index: {}]   ;;  %s2315_s16 = inlined_call_operand.vmem [shape: f32[32,128], index: 16, kind: output, shape index: {0}]   ;;  %s2316_s17 = inlined_call_operand.vmem [shape: bf16[32,384], index: 17, kind: output, shape index: {1}]  }
   0x1   :  { %2317 = sst [smem:[#allocation2_spill]] %s2299_s0 }
   0x2   :  { %2318 = sst [smem:[#allocation3_spill]] %s2300_s1 }
   0x3 LB: > { %s1594_s25 = sadd.s32 4294967295, %s1885_s24   ;;  %p1598_p0 = scmp.ge.s32.totalorder %s1885_s24, 1  ;;  %s1885_s24 = sphi %s1980_s24, %s28_s24  }
   0x4   : > { %p502_p1 = scmp.lt.s32.totalorder %s1885_s24, 3 }
   0x6   : > { %p503_p2 = pnand %p1598_p0, %p502_p1 }
   0x7   : > { %v1782_v0 = vld [vmem:[%s2301_s2] sm:$0xff] (!%p503_p2)   ;;  %v1887_v1 = vmov (!%p503_p2), 0.0   ;;  %v1783_v2 = vld [vmem:[%s2301_s2 + $0x8] sm:$0xff] (!%p503_p2)   ;;  %vm1888_vm0 = vmmov (!%p503_p2), 0   ;;  %s1599_s0 = sshll.u32 (!%p503_p2), %s1594_s25, 1  ;;  %v1784_v3 = vld [vmem:[%s2301_s2 + $0x10] sm:$0xff] (!%p503_p2)  }
   0x8   : > { %506 = sbr.rel (%p503_p2) target bundleno = 2175 (0x87f), region = 84  ;;  %1730 = vmatprep.subr.bf16.mxu0 (!%p503_p2), %v1887_v1  ;;  %1746 = vmatprep.mubr.msk.bf16.mxu0 (!%p503_p2), %vm1888_vm0, %v1887_v1  ;;  %p566_p3 = scmp.lt.s32.totalorder (!%p503_p2), %s1599_s0, 3  ;;  %v1785_v4 = vld [vmem:[%s2301_s2 + $0x18] sm:$0xff] (!%p503_p2)   ;;  %v1786_v5 = vld [vmem:[%s2301_s2 + $0x20] sm:$0xff] (!%p503_p2)   ;;  %v1787_v6 = vld [vmem:[%s2301_s2 + $0x28] sm:$0xff] (!%p503_p2)  }
   0x9   : > { %1731 = vmatpush3.bf16.msra.mxu0 (!%p503_p2), %v1782_v0  ;;  %s2319_s21 = sld [smem:[#allocation2_spill]] (!%p503_p2)  ;;  %v1788_v7 = vld [vmem:[%s2301_s2 + $0x30] sm:$0xff] (!%p503_p2)   ;;  %v1789_v8 = vld [vmem:[%s2301_s2 + $0x38] sm:$0xff] (!%p503_p2)   ;;  %s2320_s25 = sld [smem:[#allocation3_spill]] (!%p503_p2)  ;;  %v1607_v10 = vld [vmem:[%s2302_s3] ss:$0 sm:$0xff] (!%p503_p2) }
   0xa   : > { %1732 = vmatprep.subr.bf16.mxu0 (!%p503_p2), %v1887_v1  ;;  %v1617_v36 = vld [vmem:[%s2303_s4] ss:$0 sm:$0xff] (!%p503_p2)  ;;  %v1791_v47 = vld [vmem:[%s2305_s6 + $0x4] ss:$8 sps:$4 sm:$0xff] (!%p503_p2)   ;;  %v1794_v49 = vld [vmem:[%s2305_s6 + $0x14] ss:$8 sps:$4 sm:$0xff] (!%p503_p2)  }
   0xb   : > { %v1618_v38 = vld [vmem:[%s2304_s5] ss:$0 sm:$0xff] (!%p503_p2)  ;;  %907 = vmatprep.subr.bf16.mxu1 (!%p503_p2), %v1791_v47  ;;  %v1796_v58 = vld [vmem:[%s2305_s6 + $0x10] ss:$8 sps:$4 sm:$0xff] (!%p503_p2)   ;;  %v1797_v59 = vld [vmem:[%s2305_s6 + $0x24] ss:$8 sps:$4 sm:$0xff] (!%p503_p2)  }
   0xc   : > { %v1793_v48 = vld [vmem:[%s2305_s6] ss:$8 sps:$4 sm:$0xff] (!%p503_p2)   ;;  %v1800_v61 = vld [vmem:[%s2305_s6 + $0x34] ss:$8 sps:$4 sm:$0xff] (!%p503_p2)   ;;  %v1802_v62 = vld [vmem:[%s2305_s6 + $0x30] ss:$8 sps:$4 sm:$0xff] (!%p503_p2)  }
   0xd   : > { %1733 = vmatpush3.bf16.msra.mxu0 (!%p503_p2), %v1783_v2  ;;  %908 = vmatpush1.bf16.msra.mxu1 (!%p503_p2), %v1793_v48  ;;  %v1799_v60 = vld [vmem:[%s2305_s6 + $0x20] ss:$8 sps:$4 sm:$0xff] (!%p503_p2)   ;;  %v1803_v63 = vld [vmem:[%s2305_s6 + $0x44] ss:$8 sps:$4 sm:$0xff] (!%p503_p2)   ;;  %v1806_v2 = vld [vmem:[%s2305_s6 + $0x54] ss:$8 sps:$4 sm:$0xff] (!%p503_p2)  }
   0xe   : > { %1734 = vmatprep.subr.bf16.mxu0 (!%p503_p2), %v1887_v1  ;;  %909 = vmatprep.subr.bf16.mxu1 (!%p503_p2), %v1794_v49  ;;  %v1805_v0 = vld [vmem:[%s2305_s6 + $0x40] ss:$8 sps:$4 sm:$0xff] (!%p503_p2)  }
   0xf   : > { %s2322_s0 = smov (!%p566_p3, %s1599_s0), 3 }
  0x10   : > { %s1600_s19 = sshll.u32 %s2322_s0, 2  ;;  %s1602_s20 = sshll.u32 %s2322_s0, 3 }
  0x11   : > { %s569_s22 = scalar_lea.vmem %s2319_s21, %s1600_s19  ;;  %1735 = vmatpush3.bf16.msra.mxu0 %v1784_v3  ;;  %s575_s26 = scalar_lea.vmem %s2320_s25, %s1602_s20  ;;  %910 = vmatpush1.bf16.msra.mxu1 %v1796_v58  ;;  %v1889_v3 = vmov 0  }
  0x12   : > { %1736 = vmatprep.subr.bf16.mxu0 %v1887_v1  ;;  %v1790_v9 = vld [vmem:[%s569_s22] sm:$0xff]   ;;  %v592_v19 = vld [vmem:[%s575_s26 + $0x8] sm:$0xff]  ;;  %911 = vmatprep.subr.bf16.mxu1 %v1797_v59  ;;  %s581_s27 = scalar_lea.vmem %s2315_s16, %s1602_s20  ;;  %s1770_s20 = smul.u32 12, %s2322_s0 }
  0x13   : > { %v591_v12 = vld [vmem:[%s575_s26] sm:$0xff]  ;;  %939 = vmatprep.mubr.bf16.mxu1 %v1889_v3 }
  0x14   : > { %s588_s18 = scalar_lea.vmem %s2316_s17, %s1770_s20 }
  0x15   : > { %1737 = vmatpush3.bf16.msra.mxu0 %v1785_v4  ;;  %912 = vmatpush1.bf16.msra.mxu1 %v1799_v60  ;;  %v1808_v4 = vld [vmem:[%s2305_s6 + $0x50] ss:$8 sps:$4 sm:$0xff]  }
  0x16   : > { %1738 = vmatprep.subr.bf16.mxu0 %v1887_v1  ;;  %913 = vmatprep.subr.bf16.mxu1 %v1800_v61 }
  0x19   : > { %1739 = vmatpush3.bf16.msra.mxu0 %v1786_v5  ;;  %914 = vmatpush1.bf16.msra.mxu1 %v1802_v62  ;;  %v1809_v5 = vld [vmem:[%s2305_s6 + $0x64] ss:$8 sps:$4 sm:$0xff]  }
  0x1a   : > { %1740 = vmatprep.subr.bf16.mxu0 %v1887_v1  ;;  %915 = vmatprep.subr.bf16.mxu1 %v1803_v63 }
  0x1d   : > { %1741 = vmatpush3.bf16.msra.mxu0 %v1787_v6  ;;  %916 = vmatpush1.bf16.msra.mxu1 %v1805_v0  ;;  %v1811_v6 = vld [vmem:[%s2305_s6 + $0x60] ss:$8 sps:$4 sm:$0xff]  }
  0x1e   : > { %1742 = vmatprep.subr.bf16.mxu0 %v1887_v1  ;;  %917 = vmatprep.subr.bf16.mxu1 %v1806_v2  ;;  %v1637_v0 = vld [vmem:[%s2308_s9] ss:$0 sm:$0xff] }
  0x21   : > { %1743 = vmatpush3.bf16.msra.mxu0 %v1788_v7  ;;  %918 = vmatpush1.bf16.msra.mxu1 %v1808_v4  ;;  %v1812_v7 = vld [vmem:[%s2305_s6 + $0x74] ss:$8 sps:$4 sm:$0xff]  }
  0x22   : > { %1744 = vmatprep.subr.bf16.mxu0 %v1887_v1  ;;  %919 = vmatprep.subr.bf16.mxu1 %v1809_v5 }
  0x25   : > { %1745 = vmatpush3.bf16.msra.mxu0 %v1789_v8  ;;  %920 = vmatpush1.bf16.msra.mxu1 %v1811_v6  ;;  %v1814_v8 = vld [vmem:[%s2305_s6 + $0x70] ss:$8 sps:$4 sm:$0xff]  }
  0x26   : > { %921 = vmatprep.subr.bf16.mxu1 %v1812_v7 }
  0x28   : > { %1747 = vmatmul.mubr.bf16.vlgmr.msra.gmra.mrb[0].mxu0 %v1790_v9  ;;  %v1815_v9 = vld [vmem:[%s2307_s8 + $0x40] sm:$0xff]  }
  0x29   : > { %922 = vmatpush1.bf16.msra.mxu1 %v1814_v8  ;;  %1699 = vmatprep.subr.bf16.mxu0 %v1815_v9 }
  0xfb   : > { %v706_v11 = vpop.f32.mrb[0].mxu0 }
  0xfc   : > { %v707_v13 = vadd.f32 %v1607_v10, %v706_v11  ;;  %v1748_v14 = vpop.f32.mrb[1].mxu0  ;;  %v1817_v11 = vld [vmem:[%s2307_s8 + $0x48] sm:$0xff]  }
  0xfd   : > { %v709_v15 = vpop.f32.mrb[2].mxu0  ;;  %v1820_v14 = vld [vmem:[%s2307_s8 + $0x10] sm:$0xff]  }
  0xfe   : > { %v710_v16 = vadd.f32 %v1607_v10, %v709_v15  ;;  %v1749_v17 = vpop.f32.mrb[3].mxu0  ;;  %v713_v18 = vadd.f32 %v707_v13, %v591_v12  ;;  %v1816_v10 = vld [vmem:[%s2307_s8] sm:$0xff]   ;;  %v1819_v13 = vld [vmem:[%s2307_s8 + $0x50] sm:$0xff]   ;;  %v1821_v15 = vld [vmem:[%s2307_s8 + $0x58] sm:$0xff]  }
  0xff   : > { %1700 = vmatpush3.bf16.msra.mxu0 %v1816_v10  ;;  %v1823_v17 = vld [vmem:[%s2307_s8 + $0x60] sm:$0xff]  }
 0x100   : > { %717 = vadd.xlane.f32.xlu0 %v713_v18  ;;  %v714_v20 = vadd.f32 %v710_v16, %v592_v19  ;;  %1701 = vmatprep.subr.bf16.mxu0 %v1817_v11  ;;  %v1822_v16 = vld [vmem:[%s2307_s8 + $0x18] sm:$0xff]  }
 0x104   : > { %719 = vadd.xlane.f32.xlu0 %v714_v20 }
 0x18d   : > { %v718_v21 = vpop.xlane.xlu0 %717 }
 0x18e   : > { %v722_v22 = vmul.f32 0.0078125, %v718_v21 }
 0x190   : > { %v724_v23 = vsub.f32 %v713_v18, %v722_v22  ;;  %v1824_v18 = vld [vmem:[%s2307_s8 + $0x20] sm:$0xff]  }
 0x191   : > { %v720_v24 = vpop.xlane.xlu0 %719 }
 0x192   : > { %v723_v25 = vmul.f32 0.0078125, %v720_v24  ;;  %v726_v26 = vmul.f32 %v724_v23, %v724_v23 }
 0x194   : > { %v725_v27 = vsub.f32 %v714_v20, %v723_v25  ;;  %728 = vadd.xlane.f32.xlu1 %v726_v26 }
 0x196   : > { %v727_v28 = vmul.f32 %v725_v27, %v725_v27 }
 0x198   : > { %730 = vadd.xlane.f32.xlu1 %v727_v28  ;;  %v2136_v28 = vld [vmem:[%s2311_s12] ss:$0 sm:$0xff] }
 0x221   : > { %v729_v29 = vpop.xlane.xlu1 %728 }
 0x222   : > { %v732_v30 = vmul.f32 0.0078125, %v729_v29 }
 0x224   : > { %v734_v31 = vadd.f32 1e-06, %v732_v30 }
 0x225   : > { %v731_v32 = vpop.xlane.xlu1 %730 }
 0x226   : > { %1863 = vrsqrt.f32 %v734_v31  ;;  %v733_v33 = vmul.f32 0.0078125, %v731_v32  ;;  %v2143_v32 = vld [vmem:[%s2312_s13] ss:$0 sm:$0xff] }
 0x228   : > { %v735_v34 = vadd.f32 1e-06, %v733_v33 }
 0x22a   : > { %1865 = vrsqrt.f32 %v735_v34 }
 0x230   : > { %v1864_v35 = vpop.eup %1863 }
 0x231   : > { %v738_v37 = vmul.f32 %v1864_v35, %v724_v23 }
 0x233   : > { %v746_v39 = vmul.f32 %v1617_v36, %v738_v37  ;;  %v1826_v37 = vld [vmem:[%s2307_s8 + $0x28] sm:$0xff]  }
 0x234   : > { %v1866_v40 = vpop.eup %1865 }
 0x235   : > { %v754_v41 = vadd.f32 %v1618_v38, %v746_v39  ;;  %v739_v42 = vmul.f32 %v1866_v40, %v725_v27  ;;  %v1828_v39 = vld [vmem:[%s2307_s8 + $0x30] sm:$0xff]   ;;  %v1829_v40 = vld [vmem:[%s2307_s8 + $0x78] sm:$0xff]  }
 0x237   : > { %v756_v43 = vadd.f32 %v754_v41, %v591_v12  ;;  %v747_v44 = vmul.f32 %v1617_v36, %v739_v42  ;;  %v1818_v12 = vld [vmem:[%s2307_s8 + $0x8] sm:$0xff]   ;;  %v1830_v41 = vld [vmem:[%s2307_s8 + $0x38] sm:$0xff]   ;;  %v817_v42 = vlaneseq }
 0x238   : > { %1702 = vmatpush3.bf16.msra.mxu0 %v1818_v12 }
 0x239   : > { %760 = vadd.xlane.f32.xlu0 %v756_v43  ;;  %v755_v45 = vadd.f32 %v1618_v38, %v747_v44  ;;  %1703 = vmatprep.subr.bf16.mxu0 %v1819_v13  ;;  %v1827_v38 = vld [vmem:[%s2307_s8 + $0x70] sm:$0xff]  }
 0x23b   : > { %v757_v46 = vadd.f32 %v755_v45, %v592_v19  ;;  %v1825_v19 = vld [vmem:[%s2307_s8 + $0x68] sm:$0xff]   ;;  %v815_v45 = vld [vmem:[%s2306_s7] sm:$0x3] }
 0x23c   : > { %1704 = vmatpush3.bf16.msra.mxu0 %v1820_v14 }
 0x23d   : > { %762 = vadd.xlane.f32.xlu1 %v757_v46  ;;  %1705 = vmatprep.subr.bf16.mxu0 %v1821_v15 }
 0x240   : > { %1706 = vmatpush3.bf16.msra.mxu0 %v1822_v16 }
 0x241   : > { %1707 = vmatprep.subr.bf16.mxu0 %v1823_v17 }
 0x244   : > { %1708 = vmatpush3.bf16.msra.mxu0 %v1824_v18 }
 0x245   : > { %1709 = vmatprep.subr.bf16.mxu0 %v1825_v19 }
 0x248   : > { %1710 = vmatpush3.bf16.msra.mxu0 %v1826_v37 }
 0x249   : > { %1711 = vmatprep.subr.bf16.mxu0 %v1827_v38 }
 0x24c   : > { %1712 = vmatpush3.bf16.msra.mxu0 %v1828_v39 }
 0x24d   : > { %1713 = vmatprep.subr.bf16.mxu0 %v1829_v40 }
 0x250   : > { %1714 = vmatpush3.bf16.msra.mxu0 %v1830_v41  ;;  %v1831_v41 = vld [vmem:[%s2313_s14] ss:$12 sps:$4 sm:$0xff]  }
 0x251   : > { %1750 = vmatprep.subr.bf16.mxu0 %v1887_v1 }
 0x2c6   : > { %v761_v50 = vpop.xlane.xlu0 %760 }
 0x2c7   : > { %v764_v51 = vmul.f32 0.0078125, %v761_v50 }
 0x2c9   : > { %v2052_v52 = vsub.f32 %v756_v43, %v764_v51  ;;  %v2170_v43 = vshrl.u32 %v817_v42, 7  ;;  %v1833_v42 = vld [vmem:[%s2313_s14 + $0x4] ss:$12 sps:$4 sm:$0xff]  }
 0x2ca   : > { %v763_v53 = vpop.xlane.xlu1 %762  ;;  %1382 = vmatprep.subr.bf16.mxu1 %v1833_v42 }
 0x2cb   : > { %v765_v54 = vmul.f32 0.0078125, %v763_v53  ;;  %v768_v55 = vmul.f32 %v2052_v52, %v2052_v52  ;;  %v819_v44 = vsub.s32 0, %v2170_v43 }
 0x2cd   : > { %v2056_v56 = vsub.f32 %v757_v46, %v765_v54  ;;  %770 = vadd.xlane.f32.xlu0 %v768_v55  ;;  %v823_v46 = vsub.s32 1, %v2170_v43  ;;  %v820_v47 = vrot.slane %v815_v45, %v819_v44 }
 0x2cf   : > { %v769_v57 = vmul.f32 %v2056_v56, %v2056_v56  ;;  %v824_v48 = vrot.slane %v815_v45, %v823_v46  ;;  %v1834_v45 = vld [vmem:[%s2313_s14 + $0x8] ss:$12 sps:$4 sm:$0xff]  }
 0x2d1   : > { %772 = vadd.xlane.f32.xlu1 %v769_v57 }
 0x35a   : > { %v771_v20 = vpop.xlane.xlu0 %770 }
 0x35b   : > { %v774_v21 = vmul.f32 0.0078125, %v771_v20 }
 0x35d   : > { %v776_v22 = vadd.f32 1e-06, %v774_v21 }
 0x35e   : > { %v773_v23 = vpop.xlane.xlu1 %772 }
 0x35f   : > { %1867 = vrsqrt.f32 %v776_v22  ;;  %v775_v24 = vmul.f32 0.0078125, %v773_v23 }
 0x361   : > { %v777_v25 = vadd.f32 1e-06, %v775_v24 }
 0x363   : > { %1869 = vrsqrt.f32 %v777_v25 }
 0x369   : > { %v1868_v26 = vpop.eup %1867 }
 0x36a   : > { %v780_v27 = vmul.f32 %v1868_v26, %v2052_v52  ;;  %v1654_v26 = vld [vmem:[%s2309_s10] ss:$0 sm:$0xff] }
 0x36c   : > { %v788_v31 = vmul.f32 %v2136_v28, %v780_v27 }
 0x36d   : > { %v1870_v29 = vpop.eup %1869 }
 0x36e   : > { %v781_v30 = vmul.f32 %v1870_v29, %v2056_v56  ;;  %v2147_v34 = vadd.f32 %v2143_v32, %v788_v31 }
 0x370   : > { %v789_v33 = vmul.f32 %v2136_v28, %v781_v30  ;;  %v1655_v30 = vld [vmem:[%s2310_s11] ss:$0 sm:$0xff] }
 0x372   : > { %v2150_v35 = vadd.f32 %v2143_v32, %v789_v33 }
 0x374   : > { %v798_v36 = vpack.c.bf16 %v2150_v35, %v2147_v34 }
 0x376   : > { %940 = vmatmul.mubr.bf16.vlgmr.msra.gmra.mrb[0].mxu1 %v798_v36 }
 0x377   : > { %1414 = vmatprep.mubr.bf16.mxu1 %v1889_v3  ;;  %1383 = vmatpush1.bf16.msra.mxu1 %v1831_v41 }
 0x449   : > { %v941_v49 = vpop.f32.mrb[0].mxu1 }
 0x44a   : > { %v942_v50 = vadd.f32 %v941_v49, %v820_v47  ;;  %v943_v51 = vpop.f32.mrb[1].mxu1 }
 0x44b   : > { %v944_v52 = vadd.f32 %v943_v51, %v824_v48  ;;  %v945_v53 = vpop.f32.mrb[2].mxu1 }
 0x44c   : > { %v946_v54 = vadd.f32 %v945_v53, %v820_v47  ;;  %v947_v55 = vpop.f32.mrb[3].mxu1  ;;  %v950_v57 = vmax.f32 %v942_v50, 0.0  ;;  %v1835_v47 = vld [vmem:[%s2313_s14 + $0x18] ss:$12 sps:$4 sm:$0xff]  }
 0x44d   : > { %v948_v56 = vadd.f32 %v947_v55, %v824_v48  ;;  %v951_v59 = vmax.f32 %v944_v52, 0.0 }
 0x44e   : > { %v952_v58 = vmax.f32 %v946_v54, 0.0 }
 0x44f   : > { %v953_v60 = vmax.f32 %v948_v56, 0.0  ;;  %v1841_v56 = vld [vmem:[%s2313_s14 + $0x34] ss:$12 sps:$4 sm:$0xff]  }
 0x450   : > { %v954_v61 = vpack.c.bf16 %v952_v58, %v950_v57  ;;  %v1839_v57 = vld [vmem:[%s2313_s14 + $0x30] ss:$12 sps:$4 sm:$0xff]   ;;  %v1842_v58 = vld [vmem:[%s2313_s14 + $0x38] ss:$12 sps:$4 sm:$0xff]  }
 0x451   : > { %v955_v62 = vpack.c.bf16 %v953_v60, %v951_v59  ;;  %v1845_v59 = vld [vmem:[%s2313_s14 + $0x4c] ss:$12 sps:$4 sm:$0xff]   ;;  %v1843_v60 = vld [vmem:[%s2313_s14 + $0x48] ss:$12 sps:$4 sm:$0xff]  }
 0x453   : > { %1123 = vmatprep.mubr.bf16.mxu0 %v955_v62  ;;  %v1849_v62 = vld [vmem:[%s2313_s14 + $0x64] ss:$12 sps:$4 sm:$0xff]  }
 0x454   : > { %1124 = vmatmul.mubr.bf16.vlgmr.msra.gmra.mrb[4].mxu0 %v954_v61  ;;  %v1846_v61 = vld [vmem:[%s2313_s14 + $0x50] ss:$12 sps:$4 sm:$0xff]  }
 0x455   : > { %1766 = vmatprep.mubr.msk.bf16.mxu0 %vm1888_vm0, %v1887_v1  ;;  %1751 = vmatpush3.bf16.msra.mxu0 %v1834_v45 }
 0x456   : > { %1752 = vmatprep.subr.bf16.mxu0 %v1887_v1 }
 0x527   : > { %v1715_v63 = vpop.f32.mrb[4].mxu0 }
 0x528   : > { %v1716_v2 = vpop.f32.mrb[5].mxu0 }
 0x529   : > { %v1717_v3 = vadd.f32 %v1716_v2, %v1715_v63  ;;  %v1718_v4 = vpop.f32.mrb[6].mxu0  ;;  %v1847_v63 = vld [vmem:[%s2313_s14 + $0x60] ss:$12 sps:$4 sm:$0xff]   ;;  %v1853_v2 = vld [vmem:[%s2313_s14 + $0x7c] ss:$12 sps:$4 sm:$0xff]  }
 0x52a   : > { %v1719_v5 = vpop.f32.mrb[7].mxu0 }
 0x52b   : > { %v1126_v6 = vadd.f32 %v1717_v3, %v1637_v0  ;;  %v1720_v7 = vadd.f32 %v1719_v5, %v1718_v4  ;;  %v1851_v3 = vld [vmem:[%s2313_s14 + $0x78] ss:$12 sps:$4 sm:$0xff]   ;;  %v1854_v4 = vld [vmem:[%s2313_s14 + $0x80] ss:$12 sps:$4 sm:$0xff]  }
 0x52c   : > { %v1857_v5 = vld [vmem:[%s2313_s14 + $0x94] ss:$12 sps:$4 sm:$0xff]  }
 0x52d   : > { %v1129_v8 = vadd.f32 %v1720_v7, %v1637_v0  ;;  %v1132_v9 = vadd.f32 %v1126_v6, %v2147_v34  ;;  %v1850_v0 = vld [vmem:[%s2313_s14 + $0x68] ss:$12 sps:$4 sm:$0xff]   ;;  %v1855_v6 = vld [vmem:[%s2313_s14 + $0x90] ss:$12 sps:$4 sm:$0xff]   ;;  %v1858_v7 = vld [vmem:[%s2313_s14 + $0x98] ss:$12 sps:$4 sm:$0xff]  }
 0x52f   : > { %1136 = vadd.xlane.f32.xlu0 %v1132_v9  ;;  %v1133_v10 = vadd.f32 %v1129_v8, %v2150_v35  ;;  %v1861_v8 = vld [vmem:[%s2313_s14 + $0xac] ss:$12 sps:$4 sm:$0xff]  }
 0x531   : > { %1138 = vadd.xlane.f32.xlu1 %v1133_v10 }
 0x5bc   : > { %v1137_v11 = vpop.xlane.xlu0 %1136 }
 0x5bd   : > { %v1140_v12 = vmul.f32 0.0078125, %v1137_v11 }
 0x5be   : > { %v1139_v13 = vpop.xlane.xlu1 %1138 }
 0x5bf   : > { %v1142_v14 = vsub.f32 %v1132_v9, %v1140_v12  ;;  %v1141_v15 = vmul.f32 0.0078125, %v1139_v13  ;;  %v1859_v9 = vld [vmem:[%s2313_s14 + $0xa8] ss:$12 sps:$4 sm:$0xff]  }
 0x5c1   : > { %v1143_v16 = vsub.f32 %v1133_v10, %v1141_v15  ;;  %v1144_v17 = vmul.f32 %v1142_v14, %v1142_v14  ;;  %v1862_v10 = vld [vmem:[%s2313_s14 + $0xb0] ss:$12 sps:$4 sm:$0xff]  }
 0x5c3   : > { %1146 = vadd.xlane.f32.xlu0 %v1144_v17  ;;  %v1145_v18 = vmul.f32 %v1143_v16, %v1143_v16 }
 0x5c5   : > { %1148 = vadd.xlane.f32.xlu1 %v1145_v18 }
 0x650   : > { %v1147_v19 = vpop.xlane.xlu0 %1146 }
 0x651   : > { %v1150_v20 = vmul.f32 0.0078125, %v1147_v19 }
 0x652   : > { %v1149_v21 = vpop.xlane.xlu1 %1148 }
 0x653   : > { %v1152_v22 = vadd.f32 1e-06, %v1150_v20  ;;  %v1151_v23 = vmul.f32 0.0078125, %v1149_v21 }
 0x655   : > { %1871 = vrsqrt.f32 %v1152_v22  ;;  %v1153_v24 = vadd.f32 1e-06, %v1151_v23 }
 0x657   : > { %1873 = vrsqrt.f32 %v1153_v24 }
 0x65f   : > { %v1872_v25 = vpop.eup %1871 }
 0x660   : > { %v1156_v27 = vmul.f32 %v1872_v25, %v1142_v14  ;;  %v1249_v25 = vsub.s32 2, %v2170_v43 }
 0x661   : > { %v1874_v29 = vpop.eup %1873 }
 0x662   : > { %v1164_v31 = vmul.f32 %v1654_v26, %v1156_v27  ;;  %v1157_v33 = vmul.f32 %v1874_v29, %v1143_v16 }
 0x664   : > { %v1172_v36 = vadd.f32 %v1655_v30, %v1164_v31  ;;  %v1165_v37 = vmul.f32 %v1654_v26, %v1157_v33  ;;  %v1237_v26 = vld [vmem:[%s2314_s15] sm:$0x7] }
 0x665   : > { %v1242_v27 = vrot.slane %v1237_v26, %v819_v44  ;;  %v1250_v29 = vrot.slane %v1237_v26, %v1249_v25 }
 0x666   : > { %v1174_v38 = vadd.f32 %v1172_v36, %v2147_v34  ;;  %v1173_v39 = vadd.f32 %v1655_v30, %v1165_v37  ;;  %v1837_v34 = vld [vmem:[%s2313_s14 + $0x1c] ss:$12 sps:$4 sm:$0xff]  }
 0x667   : > { %1384 = vmatprep.subr.bf16.mxu1 %v1837_v34 }
 0x668   : > { %1176 = vadd.xlane.f32.xlu0 %v1174_v38  ;;  %v1175_v40 = vadd.f32 %v1173_v39, %v2150_v35  ;;  %v1838_v35 = vld [vmem:[%s2313_s14 + $0x20] ss:$12 sps:$4 sm:$0xff]   ;;  %1385 = vmatpush1.bf16.msra.mxu1 %v1835_v47 }
 0x669   : > { %1753 = vmatpush3.bf16.msra.mxu0 %v1838_v35  ;;  %1386 = vmatprep.subr.bf16.mxu1 %v1841_v56 }
 0x66a   : > { %1178 = vadd.xlane.f32.xlu1 %v1175_v40  ;;  %1754 = vmatprep.subr.bf16.mxu0 %v1887_v1 }
 0x66c   : > { %1387 = vmatpush1.bf16.msra.mxu1 %v1839_v57 }
 0x66d   : > { %1755 = vmatpush3.bf16.msra.mxu0 %v1842_v58  ;;  %1388 = vmatprep.subr.bf16.mxu1 %v1845_v59 }
 0x66e   : > { %1756 = vmatprep.subr.bf16.mxu0 %v1887_v1 }
 0x670   : > { %1389 = vmatpush1.bf16.msra.mxu1 %v1843_v60 }
 0x671   : > { %1757 = vmatpush3.bf16.msra.mxu0 %v1846_v61  ;;  %1390 = vmatprep.subr.bf16.mxu1 %v1849_v62 }
 0x672   : > { %1758 = vmatprep.subr.bf16.mxu0 %v1887_v1 }
 0x674   : > { %1391 = vmatpush1.bf16.msra.mxu1 %v1847_v63 }
 0x675   : > { %1759 = vmatpush3.bf16.msra.mxu0 %v1850_v0  ;;  %1392 = vmatprep.subr.bf16.mxu1 %v1853_v2 }
 0x676   : > { %1760 = vmatprep.subr.bf16.mxu0 %v1887_v1 }
 0x678   : > { %1393 = vmatpush1.bf16.msra.mxu1 %v1851_v3 }
 0x679   : > { %1761 = vmatpush3.bf16.msra.mxu0 %v1854_v4  ;;  %1394 = vmatprep.subr.bf16.mxu1 %v1857_v5 }
 0x67a   : > { %1762 = vmatprep.subr.bf16.mxu0 %v1887_v1 }
 0x67c   : > { %1395 = vmatpush1.bf16.msra.mxu1 %v1855_v6 }
 0x67d   : > { %1763 = vmatpush3.bf16.msra.mxu0 %v1858_v7  ;;  %1396 = vmatprep.subr.bf16.mxu1 %v1861_v8 }
 0x67e   : > { %1764 = vmatprep.subr.bf16.mxu0 %v1887_v1 }
 0x680   : > { %1397 = vmatpush1.bf16.msra.mxu1 %v1859_v9 }
 0x681   : > { %1765 = vmatpush3.bf16.msra.mxu0 %v1862_v10 }
 0x6f5   : > { %v1177_v48 = vpop.xlane.xlu0 %1176 }
 0x6f6   : > { %v1180_v49 = vmul.f32 0.0078125, %v1177_v48 }
 0x6f7   : > { %v1179_v50 = vpop.xlane.xlu1 %1178 }
 0x6f8   : > { %v1182_v51 = vsub.f32 %v1174_v38, %v1180_v49  ;;  %v1181_v52 = vmul.f32 0.0078125, %v1179_v50 }
 0x6fa   : > { %v1183_v53 = vsub.f32 %v1175_v40, %v1181_v52  ;;  %v1184_v54 = vmul.f32 %v1182_v51, %v1182_v51 }
 0x6fc   : > { %1186 = vadd.xlane.f32.xlu0 %v1184_v54  ;;  %v1185_v55 = vmul.f32 %v1183_v53, %v1183_v53 }
 0x6fe   : > { %1188 = vadd.xlane.f32.xlu1 %v1185_v55 }
 0x789   : > { %v1187_v11 = vpop.xlane.xlu0 %1186 }
 0x78a   : > { %v1190_v12 = vmul.f32 0.0078125, %v1187_v11 }
 0x78b   : > { %v1189_v13 = vpop.xlane.xlu1 %1188 }
 0x78c   : > { %v1192_v14 = vadd.f32 1e-06, %v1190_v12  ;;  %v1191_v15 = vmul.f32 0.0078125, %v1189_v13 }
 0x78e   : > { %1875 = vrsqrt.f32 %v1192_v14  ;;  %v1193_v16 = vadd.f32 1e-06, %v1191_v15 }
 0x790   : > { %1877 = vrsqrt.f32 %v1193_v16 }
 0x798   : > { %v1876_v17 = vpop.eup %1875 }
 0x799   : > { %v1196_v18 = vmul.f32 %v1876_v17, %v1182_v51 }
 0x79a   : > { %v1878_v19 = vpop.eup %1877 }
 0x79b   : > { %v1197_v20 = vmul.f32 %v1878_v19, %v1183_v53  ;;  %v1198_v21 = vmul.f32 %v2136_v28, %v1196_v18 }
 0x79d   : > { %v1199_v1 = vmul.f32 %v2136_v28, %v1197_v20  ;;  %v1200_v22 = vadd.f32 %v2143_v32, %v1198_v21  ;;  %v1246_v28 = vrot.slane %v1237_v26, %v823_v46 }
 0x79f   : > { %v1201_v23 = vadd.f32 %v2143_v32, %v1199_v1  ;;  %1202 = vst [vmem:[%s581_s27] sm:$0xff] %v1200_v22 }
 0x7a1   : > { %1203 = vst [vmem:[%s581_s27 + $0x8] sm:$0xff] %v1201_v23  ;;  %v1204_v24 = vpack.c.bf16 %v1201_v23, %v1200_v22 }
 0x7a3   : > { %1415 = vmatmul.mubr.bf16.vlgmr.msra.gmra.mrb[4].mxu1 %v1204_v24  ;;  %1767 = vmatmul.mubr.bf16.vlgmr.msra.gmra.mrb[8].mxu0 %v1204_v24 }
 0x876   : > { %v1416_v32 = vpop.f32.mrb[4].mxu1  ;;  %v1459_v30 = vpop.f32.mrb[8].mxu0 }
 0x877   : > { %v1417_v31 = vadd.f32 %v1416_v32, %v1242_v27  ;;  %v1460_v33 = vadd.f32 %v1459_v30, %v1250_v29  ;;  %v1418_v36 = vpop.f32.mrb[5].mxu1  ;;  %v1768_v37 = vpop.f32.mrb[9].mxu0 }
 0x878   : > { %v1419_v38 = vadd.f32 %v1418_v36, %v1246_v28  ;;  %v1420_v39 = vpop.f32.mrb[6].mxu1  ;;  %v1462_v40 = vpop.f32.mrb[10].mxu0 }
 0x879   : > { %v1687_v41 = vpack.c.bf16 %v1460_v33, %v1460_v33  ;;  %v1421_v44 = vadd.f32 %v1420_v39, %v1242_v27  ;;  %v1463_v42 = vadd.f32 %v1462_v40, %v1250_v29  ;;  %v1422_v45 = vpop.f32.mrb[7].mxu1  ;;  %v1769_v34 = vpop.f32.mrb[11].mxu0 }
 0x87a   : > { %v1686_v43 = vpack.c.bf16 %v1419_v38, %v1417_v31  ;;  %v1423_v46 = vadd.f32 %v1422_v45, %v1246_v28 }
 0x87b   : > { %1487 = vst [vmem:[%s588_s18 + $0x8] sm:$0xf] %v1687_v41  ;;  %v1689_v35 = vpack.c.bf16 %v1463_v42, %v1463_v42 }
 0x87c   : > { %1486 = vst [vmem:[%s588_s18] sm:$0xff] %v1686_v43  ;;  %v1688_v47 = vpack.c.bf16 %v1423_v46, %v1421_v44 }
 0x87d   : > { %1489 = vst [vmem:[%s588_s18 + $0x14] sm:$0xf] %v1689_v35 }
 0x87e   : > { %1488 = vst [vmem:[%s588_s18 + $0xc] sm:$0xff] %v1688_v47 }
 0x87f PF: > { %s28_s24 = sadd.s32 1, %s1885_s24  }
 0x880   : > { %p25_p4 = scmp.ge.s32.totalorder %s28_s24, 4  }
 0x882   :  { %27 = sbr.rel (!%p25_p4) target bundleno = 3 (0x3), region = 129 }

</bundles_post_ra>
